<compile_context>
chip_gen: v5e
topology: v5e:2x2
jax: 0.10.0
libtpu: 0.0.40
codegen_flags: <defaults>
</compile_context>

<pallas_src>
import functools

import jax
import jax.numpy as jnp
from jax.experimental import pallas as pl
from jax.experimental.pallas import tpu as pltpu


# ----------------------------------------------------------------------------------
# Pallas kernel: one frequency-tile step of the AFNO block-MLP, all channel blocks.
#   x_ref : [nb, 2*bs, tile]  rows 0..bs-1 = real, bs..2bs-1 = imag (lane = frequency)
#   w1_ref: [nb, 2*hf, 2*bs]  packed complex weight  [[w1r^T, -w1i^T], [w1i^T, w1r^T]]
#   b1_ref: [nb, 2*hf, 1]     packed bias  [b1r ; b1i]                 (f32)
#   w2_ref: [nb, 2*bs, 2*hf]  packed complex weight  [[w2r^T, -w2i^T], [w2i^T, w2r^T]]
#   b2_ref: [nb, 2*bs, 1]     packed bias  [b2r ; b2i]                 (f32)
#   o_ref : [nb, 2*bs, tile]  packed output [o2r^T ; o2i^T], softshrink applied
# ----------------------------------------------------------------------------------
def _afno_block_mlp_kernel(sparsity_threshold, num_blocks,
                           x_ref, w1_ref, b1_ref, w2_ref, b2_ref, o_ref):
    lam = jnp.float32(sparsity_threshold)
    # num_blocks is small (4-16); static unroll keeps one MXU dot per layer per block.
    for b in range(num_blocks):
        x = x_ref[b]                                              # [2bs, tile]

        # layer 1: single packed complex matmul + bias + ReLU (f32 accumulate)
        h = jnp.dot(w1_ref[b], x, preferred_element_type=jnp.float32) + b1_ref[b]
        h = jnp.maximum(h, 0.0)

        # layer 2: single packed complex matmul + bias
        o = (jnp.dot(w2_ref[b], h.astype(w2_ref.dtype),
                     preferred_element_type=jnp.float32) + b2_ref[b])

        # softshrink
        o = jnp.where(o > lam, o - lam, jnp.where(o < -lam, o + lam, 0.0))
        o_ref[b] = o.astype(o_ref.dtype)


def _round_up(a, m):
    return -(-a // m) * m


# ----------------------------------------------------------------------------------
# Wrapper: FFT glue in plain JAX, block-MLP hot path in Pallas
# ----------------------------------------------------------------------------------
def afno2d_forward(x, params, *, num_blocks, sparsity_threshold=0.01,
                   hard_thresholding_fraction=1.0, hidden_size_factor=1,
                   tile=None, compute_dtype=jnp.bfloat16):
    bias = x
    dtype = x.dtype
    B, H, W, C = x.shape
    assert C % num_blocks == 0
    bs = C // num_blocks
    hf = bs * hidden_size_factor
    Wf = W // 2 + 1
    N = B * H * Wf
    itemsize_c = jnp.dtype(compute_dtype).itemsize

    # TODO(synk): rfft2/irfft2 have no Pallas TPU primitive; computed in plain JAX.
    xf = jnp.fft.rfft2(x.astype(jnp.float32), axes=(1, 2), norm="ortho")

    # Cast to compute dtype BEFORE the pack transpose (halves repack bytes on bf16),
    # pack [real ; imag] along the (sublane) channel axis, and put the flattened
    # frequency index LAST so every kernel load/store is lane-dense.
    # TODO(synk): the pack/unpack transposes are still host-side HBM passes; fusing
    # them into the pallas_call would need per-frequency Element-indexed gathers.
    xr = jnp.real(xf).astype(compute_dtype)
    xi = jnp.imag(xf).astype(compute_dtype)
    xri = jnp.stack([xr, xi], axis=0).reshape(2, N, num_blocks, bs)   # [2,N,nb,bs]
    xs = xri.transpose(2, 0, 3, 1).reshape(num_blocks, 2 * bs, N)     # [nb, 2bs, N]

    # ------------------------------------------------------------------------------
    # Per-generation VMEM budget (v7x: 64 MiB phys -> ~48 MiB cap; v5e/v6e: 128 MiB
    # -> ~96 MiB cap).  Counts double-buffered in/out slabs, resident weights, and
    # the f32 h/o intermediates.
    # ------------------------------------------------------------------------------
    try:
        vmem_phys = int(pltpu.get_tpu_info().vmem_capacity_bytes)
    except Exception:
        vmem_phys = 64 * 2**20                      # conservative fallback (v7x-safe)
    vmem_cap = min(vmem_phys * 3 // 4, 100 * 2**20)

    w_resident = 2 * (itemsize_c * num_blocks * (2 * hf * 2 * bs + 2 * bs * 2 * hf)
                      + 4 * num_blocks * (2 * hf + 2 * bs))
    # bytes needed per lane column of the tile:
    per_lane = (2 * (2 * num_blocks * 2 * bs * itemsize_c)     # in + out, double-buffered
                + 2 * (2 * hf + 2 * bs) * 4)                    # f32 h + o intermediates
    N128 = _round_up(N, 128)

    if tile is None:
        budget = max(vmem_cap - w_resident - (4 << 20), 8 << 20)
        tile = 128
        for cand in (16384, 8192, 4096, 2048, 1024, 512, 256, 128):
            if cand * per_lane <= budget:
                tile = cand
                break
    tile = max(128, min(_round_up(int(tile), 128), N128))
    n_tiles = pl.cdiv(N, tile)
    Np = n_tiles * tile
    if Np != N:
        xs = jnp.pad(xs, ((0, 0), (0, 0), (0, Np - N)))

    vmem_limit = int(min(vmem_cap,
                         max(16 * 2**20, tile * per_lane + w_resident + (4 << 20))))

    # Pack complex weights into 2x2 real block form (one real matmul per layer).
    w1, b1, w2, b2 = params["w1"], params["b1"], params["w2"], params["b2"]
    w1rT = jnp.swapaxes(w1[0], 1, 2)                                  # [nb, hf, bs]
    w1iT = jnp.swapaxes(w1[1], 1, 2)
    W1p = jnp.concatenate(
        [jnp.concatenate([w1rT, -w1iT], axis=2),
         jnp.concatenate([w1iT,  w1rT], axis=2)], axis=1).astype(compute_dtype)   # [nb,2hf,2bs]
    B1p = jnp.concatenate([b1[0], b1[1]], axis=1)[:, :, None].astype(jnp.float32)  # [nb,2hf,1]
    w2rT = jnp.swapaxes(w2[0], 1, 2)                                  # [nb, bs, hf]
    w2iT = jnp.swapaxes(w2[1], 1, 2)
    W2p = jnp.concatenate(
        [jnp.concatenate([w2rT, -w2iT], axis=2),
         jnp.concatenate([w2iT,  w2rT], axis=2)], axis=1).astype(compute_dtype)   # [nb,2bs,2hf]
    B2p = jnp.concatenate([b2[0], b2[1]], axis=1)[:, :, None].astype(jnp.float32)  # [nb,2bs,1]

    # Grid is only the frequency-tile axis (leading, parallel -> v7x megacore).
    # Weight/bias index maps are constant so they DMA once and stay VMEM-resident.
    data_spec = pl.BlockSpec((num_blocks, 2 * bs, tile), lambda t: (0, 0, t))
    w1_spec = pl.BlockSpec((num_blocks, 2 * hf, 2 * bs), lambda t: (0, 0, 0))
    b1_spec = pl.BlockSpec((num_blocks, 2 * hf, 1), lambda t: (0, 0, 0))
    w2_spec = pl.BlockSpec((num_blocks, 2 * bs, 2 * hf), lambda t: (0, 0, 0))
    b2_spec = pl.BlockSpec((num_blocks, 2 * bs, 1), lambda t: (0, 0, 0))

    kernel = functools.partial(_afno_block_mlp_kernel,
                               float(sparsity_threshold), int(num_blocks))

    out = pl.pallas_call(
        kernel,
        grid=(n_tiles,),
        in_specs=[data_spec, w1_spec, b1_spec, w2_spec, b2_spec],
        out_specs=data_spec,
        out_shape=jax.ShapeDtypeStruct((num_blocks, 2 * bs, Np), compute_dtype),
        compiler_params=pltpu.CompilerParams(
            dimension_semantics=("parallel",),
            vmem_limit_bytes=vmem_limit),
    )(xs, W1p, B1p, W2p, B2p)

    # Unpack: [nb, 2bs, Np] -> real/imag [B, H, Wf, C]  (padded tail dropped).
    # Softshrink of the zero-padded tail is nonzero but is sliced off right here.
    out = out[:, :, :N].reshape(num_blocks, 2, bs, N).transpose(1, 3, 0, 2)  # [2,N,nb,bs]
    out_r = out[0].reshape(B, H, Wf, C)
    out_i = out[1].reshape(B, H, Wf, C)

    # Hard-thresholding mask reproducing torch's zero-init + slice-write semantics
    # (softshrink(0) == 0, so masking post-kernel is equivalent).  Skipped entirely
    # when the kept-mode window covers the whole spectrum (no extra HBM pass).
    total_modes = H // 2 + 1
    kept_modes = int(total_modes * hard_thresholding_fraction)
    full_h = (total_modes - kept_modes) <= 0 and (total_modes + kept_modes) >= H
    full_w = kept_modes >= Wf
    if not (full_h and full_w):
        h_idx = jnp.arange(H)
        h_mask = (h_idx >= total_modes - kept_modes) & (h_idx < total_modes + kept_modes)
        w_mask = jnp.arange(Wf) < kept_modes
        mask = (h_mask[:, None] & w_mask[None, :])[None, :, :, None]
        out_r = jnp.where(mask, out_r, 0.0)
        out_i = jnp.where(mask, out_i, 0.0)

    xc = out_r.astype(jnp.float32) + 1j * out_i.astype(jnp.float32)
    y = jnp.fft.irfft2(xc, s=(H, W), axes=(1, 2), norm="ortho")
    return y.astype(dtype) + bias


# ----------------------------------------------------------------------------------
# Pure-JAX reference (for sanity check only)
# ----------------------------------------------------------------------------------
def afno2d_reference(x, params, *, num_blocks, sparsity_threshold=0.01,
                     hard_thresholding_fraction=1.0, hidden_size_factor=1):
    bias = x
    dtype = x.dtype
    B, H, W, C = x.shape
    bs = C // num_blocks
    Wf = W // 2 + 1
    xf = jnp.fft.rfft2(x.astype(jnp.float32), axes=(1, 2), norm="ortho")
    xf = xf.reshape(B, H, Wf, num_blocks, bs)
    w1, b1, w2, b2 = params["w1"], params["b1"], params["w2"], params["b2"]
    xr, xi = jnp.real(xf), jnp.imag(xf)
    o1r = jax.nn.relu(jnp.einsum("...bi,bio->...bo", xr, w1[0])
                      - jnp.einsum("...bi,bio->...bo", xi, w1[1]) + b1[0])
    o1i = jax.nn.relu(jnp.einsum("...bi,bio->...bo", xi, w1[0])
                      + jnp.einsum("...bi,bio->...bo", xr, w1[1]) + b1[1])
    o2r = (jnp.einsum("...bi,bio->...bo", o1r, w2[0])
           - jnp.einsum("...bi,bio->...bo", o1i, w2[1]) + b2[0])
    o2i = (jnp.einsum("...bi,bio->...bo", o1i, w2[0])
           + jnp.einsum("...bi,bio->...bo", o1r, w2[1]) + b2[1])
    lam = sparsity_threshold

    def ss(v):
        return jnp.where(v > lam, v - lam, jnp.where(v < -lam, v + lam, 0.0))

    o2r, o2i = ss(o2r), ss(o2i)
    total_modes = H // 2 + 1
    kept_modes = int(total_modes * hard_thresholding_fraction)
    h_idx = jnp.arange(H)
    h_mask = (h_idx >= total_modes - kept_modes) & (h_idx < total_modes + kept_modes)
    w_mask = jnp.arange(Wf) < kept_modes
    mask = (h_mask[:, None] & w_mask[None, :])[None, :, :, None, None]
    o2r = jnp.where(mask, o2r, 0.0)
    o2i = jnp.where(mask, o2i, 0.0)
    xc = (o2r + 1j * o2i).reshape(B, H, Wf, C)
    y = jnp.fft.irfft2(xc, s=(H, W), axes=(1, 2), norm="ortho")
    return y.astype(dtype) + bias


# ----------------------------------------------------------------------------------
if __name__ == "__main__":
    hidden_size = 32
    num_blocks = 4
    block_size = hidden_size // num_blocks
    hidden_size_factor = 1
    sparsity_threshold = 0.01
    hard_thresholding_fraction = 1.0
    scale = 0.02

    B, H, W = 2, 16, 16

    key = jax.random.PRNGKey(0)
    kx, k1, k2, k3, k4 = jax.random.split(key, 5)

    x = jax.random.normal(kx, (B, H, W, hidden_size), dtype=jnp.float32)

    params = {
        "w1": scale * jax.random.normal(
            k1, (2, num_blocks, block_size, block_size * hidden_size_factor),
            dtype=jnp.float32),
        "b1": scale * jax.random.normal(
            k2, (2, num_blocks, block_size * hidden_size_factor), dtype=jnp.float32),
        "w2": scale * jax.random.normal(
            k3, (2, num_blocks, block_size * hidden_size_factor, block_size),
            dtype=jnp.float32),
        "b2": scale * jax.random.normal(
            k4, (2, num_blocks, block_size), dtype=jnp.float32),
    }

    common = dict(num_blocks=num_blocks,
                  sparsity_threshold=sparsity_threshold,
                  hard_thresholding_fraction=hard_thresholding_fraction,
                  hidden_size_factor=hidden_size_factor)

    ref = afno2d_reference(x, params, **common)
    ref = jax.block_until_ready(ref)

    # f32 path: bit-faithful to the reference within tight tolerance.
    fwd_f32 = jax.jit(functools.partial(afno2d_forward,
                                        compute_dtype=jnp.float32, **common))
    out_f32 = jax.block_until_ready(fwd_f32(x, params))
    assert out_f32.shape == x.shape and out_f32.dtype == x.dtype
    assert jnp.allclose(out_f32, ref, rtol=1e-4, atol=1e-4), "f32 mismatch vs reference"

    # bf16 bandwidth path (default): relaxed tolerance.
    fwd_bf16 = jax.jit(functools.partial(afno2d_forward, **common))
    out_bf16 = jax.block_until_ready(fwd_bf16(x, params))
    assert out_bf16.shape == x.shape and out_bf16.dtype == x.dtype
    assert jnp.allclose(out_bf16, ref, rtol=5e-2, atol=5e-2), "bf16 mismatch vs reference"

    print("KERNEL_OK")
</pallas_src>

<mosaic_0001>
module attributes {stable_mosaic.version = 11 : i64} {
  func.func @_afno_block_mlp_kernel(%arg0: i32, %arg1: memref<4x16x384xf32, #tpu.memory_space<vmem>>, %arg2: memref<4x16x16xf32, #tpu.memory_space<vmem>>, %arg3: memref<4x16x1xf32, #tpu.memory_space<vmem>>, %arg4: memref<4x16x16xf32, #tpu.memory_space<vmem>>, %arg5: memref<4x16x1xf32, #tpu.memory_space<vmem>>, %arg6: memref<4x16x384xf32, #tpu.memory_space<vmem>>) attributes {dimension_semantics = [#tpu.dimension_semantics<parallel>], iteration_bounds = array<i64: 1>, scalar_prefetch = 0 : i64, scratch_operands = 0 : i64, tpu.core_type = #tpu.core_type<tc>, window_params = [{transform_indices = @transform_0, window_bounds = array<i64: 4, 16, 384>}, {pipeline_mode = #tpu.pipeline_mode<synchronous>, transform_indices = @transform_1, window_bounds = array<i64: 4, 16, 16>}, {pipeline_mode = #tpu.pipeline_mode<synchronous>, transform_indices = @transform_2, window_bounds = array<i64: 4, 16, 1>}, {pipeline_mode = #tpu.pipeline_mode<synchronous>, transform_indices = @transform_3, window_bounds = array<i64: 4, 16, 16>}, {pipeline_mode = #tpu.pipeline_mode<synchronous>, transform_indices = @transform_4, window_bounds = array<i64: 4, 16, 1>}, {transform_indices = @transform_5, window_bounds = array<i64: 4, 16, 384>}]} {
    %c0 = arith.constant 0 : index
    %c0_0 = arith.constant 0 : index
    %c0_1 = arith.constant 0 : index
    %0 = vector.load %arg1[%c0, %c0_0, %c0_1] : memref<4x16x384xf32, #tpu.memory_space<vmem>>, vector<1x16x384xf32>
    %1 = vector.shape_cast %0 : vector<1x16x384xf32> to vector<16x384xf32>
    %c0_2 = arith.constant 0 : index
    %c0_3 = arith.constant 0 : index
    %c0_4 = arith.constant 0 : index
    %2 = vector.load %arg2[%c0_2, %c0_3, %c0_4] : memref<4x16x16xf32, #tpu.memory_space<vmem>>, vector<1x16x16xf32>
    %3 = vector.shape_cast %2 : vector<1x16x16xf32> to vector<16x16xf32>
    %cst = arith.constant dense<0.000000e+00> : vector<16x384xf32>
    %4 = tpu.matmul %3, %1, %cst {dimension_numbers = #tpu.dot_dimension_numbers<[1], [0], [0], [1], [0, 0, 1, 1], [], []>} : vector<16x16xf32>, vector<16x384xf32>, vector<16x384xf32> -> vector<16x384xf32>
    %c0_5 = arith.constant 0 : index
    %c0_6 = arith.constant 0 : index
    %c0_7 = arith.constant 0 : index
    %5 = vector.load %arg3[%c0_5, %c0_6, %c0_7] : memref<4x16x1xf32, #tpu.memory_space<vmem>>, vector<1x16x1xf32>
    %6 = vector.shape_cast %5 : vector<1x16x1xf32> to vector<16x1xf32>
    %7 = vector.broadcast %6 : vector<16x1xf32> to vector<16x384xf32>
    %8 = arith.addf %4, %7 : vector<16x384xf32>
    %cst_8 = arith.constant 0.000000e+00 : f32
    %9 = vector.broadcast %cst_8 : f32 to vector<16x384xf32>
    %10 = arith.maximumf %8, %9 : vector<16x384xf32>
    %c0_9 = arith.constant 0 : index
    %c0_10 = arith.constant 0 : index
    %c0_11 = arith.constant 0 : index
    %11 = vector.load %arg4[%c0_9, %c0_10, %c0_11] : memref<4x16x16xf32, #tpu.memory_space<vmem>>, vector<1x16x16xf32>
    %12 = vector.shape_cast %11 : vector<1x16x16xf32> to vector<16x16xf32>
    %cst_12 = arith.constant dense<0.000000e+00> : vector<16x384xf32>
    %13 = tpu.matmul %12, %10, %cst_12 {dimension_numbers = #tpu.dot_dimension_numbers<[1], [0], [0], [1], [0, 0, 1, 1], [], []>} : vector<16x16xf32>, vector<16x384xf32>, vector<16x384xf32> -> vector<16x384xf32>
    %c0_13 = arith.constant 0 : index
    %c0_14 = arith.constant 0 : index
    %c0_15 = arith.constant 0 : index
    %14 = vector.load %arg5[%c0_13, %c0_14, %c0_15] : memref<4x16x1xf32, #tpu.memory_space<vmem>>, vector<1x16x1xf32>
    %15 = vector.shape_cast %14 : vector<1x16x1xf32> to vector<16x1xf32>
    %16 = vector.broadcast %15 : vector<16x1xf32> to vector<16x384xf32>
    %17 = arith.addf %13, %16 : vector<16x384xf32>
    %cst_16 = arith.constant 0.00999999977 : f32
    %18 = vector.broadcast %cst_16 : f32 to vector<16x384xf32>
    %19 = arith.cmpf ogt, %17, %18 : vector<16x384xf32>
    %cst_17 = arith.constant 0.00999999977 : f32
    %20 = vector.broadcast %cst_17 : f32 to vector<16x384xf32>
    %21 = arith.subf %17, %20 : vector<16x384xf32>
    %cst_18 = arith.constant 0.000000e+00 : f32
    %cst_19 = arith.constant 0.00999999977 : f32
    %22 = arith.subf %cst_18, %cst_19 : f32
    %23 = vector.broadcast %22 : f32 to vector<16x384xf32>
    %24 = arith.cmpf olt, %17, %23 : vector<16x384xf32>
    %cst_20 = arith.constant 0.00999999977 : f32
    %25 = vector.broadcast %cst_20 : f32 to vector<16x384xf32>
    %26 = arith.addf %17, %25 : vector<16x384xf32>
    %cst_21 = arith.constant 0.000000e+00 : f32
    %27 = vector.broadcast %cst_21 : f32 to vector<16x384xf32>
    %28 = arith.select %24, %26, %27 : vector<16x384xi1>, vector<16x384xf32>
    %29 = arith.select %19, %21, %28 : vector<16x384xi1>, vector<16x384xf32>
    %c0_22 = arith.constant 0 : index
    %c0_23 = arith.constant 0 : index
    %c0_24 = arith.constant 0 : index
    %30 = vector.load %arg6[%c0_22, %c0_23, %c0_24] : memref<4x16x384xf32, #tpu.memory_space<vmem>>, vector<1x16x384xf32>
    %31 = vector.shape_cast %30 : vector<1x16x384xf32> to vector<16x384xf32>
    %32 = vector.shape_cast %29 : vector<16x384xf32> to vector<1x16x384xf32>
    tpu.vector_store %arg6[%c0_22, %c0_23, %c0_24], %32 {strides = array<i32>} : memref<4x16x384xf32, #tpu.memory_space<vmem>>, vector<1x16x384xf32>,
    %c1 = arith.constant 1 : index
    %c0_25 = arith.constant 0 : index
    %c0_26 = arith.constant 0 : index
    %33 = vector.load %arg1[%c1, %c0_25, %c0_26] : memref<4x16x384xf32, #tpu.memory_space<vmem>>, vector<1x16x384xf32>
    %34 = vector.shape_cast %33 : vector<1x16x384xf32> to vector<16x384xf32>
    %c1_27 = arith.constant 1 : index
    %c0_28 = arith.constant 0 : index
    %c0_29 = arith.constant 0 : index
    %35 = vector.load %arg2[%c1_27, %c0_28, %c0_29] : memref<4x16x16xf32, #tpu.memory_space<vmem>>, vector<1x16x16xf32>
    %36 = vector.shape_cast %35 : vector<1x16x16xf32> to vector<16x16xf32>
    %cst_30 = arith.constant dense<0.000000e+00> : vector<16x384xf32>
    %37 = tpu.matmul %36, %34, %cst_30 {dimension_numbers = #tpu.dot_dimension_numbers<[1], [0], [0], [1], [0, 0, 1, 1], [], []>} : vector<16x16xf32>, vector<16x384xf32>, vector<16x384xf32> -> vector<16x384xf32>
    %c1_31 = arith.constant 1 : index
    %c0_32 = arith.constant 0 : index
    %c0_33 = arith.constant 0 : index
    %38 = vector.load %arg3[%c1_31, %c0_32, %c0_33] : memref<4x16x1xf32, #tpu.memory_space<vmem>>, vector<1x16x1xf32>
    %39 = vector.shape_cast %38 : vector<1x16x1xf32> to vector<16x1xf32>
    %40 = vector.broadcast %39 : vector<16x1xf32> to vector<16x384xf32>
    %41 = arith.addf %37, %40 : vector<16x384xf32>
    %cst_34 = arith.constant 0.000000e+00 : f32
    %42 = vector.broadcast %cst_34 : f32 to vector<16x384xf32>
    %43 = arith.maximumf %41, %42 : vector<16x384xf32>
    %c1_35 = arith.constant 1 : index
    %c0_36 = arith.constant 0 : index
    %c0_37 = arith.constant 0 : index
    %44 = vector.load %arg4[%c1_35, %c0_36, %c0_37] : memref<4x16x16xf32, #tpu.memory_space<vmem>>, vector<1x16x16xf32>
    %45 = vector.shape_cast %44 : vector<1x16x16xf32> to vector<16x16xf32>
    %cst_38 = arith.constant dense<0.000000e+00> : vector<16x384xf32>
    %46 = tpu.matmul %45, %43, %cst_38 {dimension_numbers = #tpu.dot_dimension_numbers<[1], [0], [0], [1], [0, 0, 1, 1], [], []>} : vector<16x16xf32>, vector<16x384xf32>, vector<16x384xf32> -> vector<16x384xf32>
    %c1_39 = arith.constant 1 : index
    %c0_40 = arith.constant 0 : index
    %c0_41 = arith.constant 0 : index
    %47 = vector.load %arg5[%c1_39, %c0_40, %c0_41] : memref<4x16x1xf32, #tpu.memory_space<vmem>>, vector<1x16x1xf32>
    %48 = vector.shape_cast %47 : vector<1x16x1xf32> to vector<16x1xf32>
    %49 = vector.broadcast %48 : vector<16x1xf32> to vector<16x384xf32>
    %50 = arith.addf %46, %49 : vector<16x384xf32>
    %cst_42 = arith.constant 0.00999999977 : f32
    %51 = vector.broadcast %cst_42 : f32 to vector<16x384xf32>
    %52 = arith.cmpf ogt, %50, %51 : vector<16x384xf32>
    %cst_43 = arith.constant 0.00999999977 : f32
    %53 = vector.broadcast %cst_43 : f32 to vector<16x384xf32>
    %54 = arith.subf %50, %53 : vector<16x384xf32>
    %cst_44 = arith.constant 0.000000e+00 : f32
    %cst_45 = arith.constant 0.00999999977 : f32
    %55 = arith.subf %cst_44, %cst_45 : f32
    %56 = vector.broadcast %55 : f32 to vector<16x384xf32>
    %57 = arith.cmpf olt, %50, %56 : vector<16x384xf32>
    %cst_46 = arith.constant 0.00999999977 : f32
    %58 = vector.broadcast %cst_46 : f32 to vector<16x384xf32>
    %59 = arith.addf %50, %58 : vector<16x384xf32>
    %cst_47 = arith.constant 0.000000e+00 : f32
    %60 = vector.broadcast %cst_47 : f32 to vector<16x384xf32>
    %61 = arith.select %57, %59, %60 : vector<16x384xi1>, vector<16x384xf32>
    %62 = arith.select %52, %54, %61 : vector<16x384xi1>, vector<16x384xf32>
    %c1_48 = arith.constant 1 : index
    %c0_49 = arith.constant 0 : index
    %c0_50 = arith.constant 0 : index
    %63 = vector.load %arg6[%c1_48, %c0_49, %c0_50] : memref<4x16x384xf32, #tpu.memory_space<vmem>>, vector<1x16x384xf32>
    %64 = vector.shape_cast %63 : vector<1x16x384xf32> to vector<16x384xf32>
    %65 = vector.shape_cast %62 : vector<16x384xf32> to vector<1x16x384xf32>
    tpu.vector_store %arg6[%c1_48, %c0_49, %c0_50], %65 {strides = array<i32>} : memref<4x16x384xf32, #tpu.memory_space<vmem>>, vector<1x16x384xf32>,
    %c2 = arith.constant 2 : index
    %c0_51 = arith.constant 0 : index
    %c0_52 = arith.constant 0 : index
    %66 = vector.load %arg1[%c2, %c0_51, %c0_52] : memref<4x16x384xf32, #tpu.memory_space<vmem>>, vector<1x16x384xf32>
    %67 = vector.shape_cast %66 : vector<1x16x384xf32> to vector<16x384xf32>
    %c2_53 = arith.constant 2 : index
    %c0_54 = arith.constant 0 : index
    %c0_55 = arith.constant 0 : index
    %68 = vector.load %arg2[%c2_53, %c0_54, %c0_55] : memref<4x16x16xf32, #tpu.memory_space<vmem>>, vector<1x16x16xf32>
    %69 = vector.shape_cast %68 : vector<1x16x16xf32> to vector<16x16xf32>
    %cst_56 = arith.constant dense<0.000000e+00> : vector<16x384xf32>
    %70 = tpu.matmul %69, %67, %cst_56 {dimension_numbers = #tpu.dot_dimension_numbers<[1], [0], [0], [1], [0, 0, 1, 1], [], []>} : vector<16x16xf32>, vector<16x384xf32>, vector<16x384xf32> -> vector<16x384xf32>
    %c2_57 = arith.constant 2 : index
    %c0_58 = arith.constant 0 : index
    %c0_59 = arith.constant 0 : index
    %71 = vector.load %arg3[%c2_57, %c0_58, %c0_59] : memref<4x16x1xf32, #tpu.memory_space<vmem>>, vector<1x16x1xf32>
    %72 = vector.shape_cast %71 : vector<1x16x1xf32> to vector<16x1xf32>
    %73 = vector.broadcast %72 : vector<16x1xf32> to vector<16x384xf32>
    %74 = arith.addf %70, %73 : vector<16x384xf32>
    %cst_60 = arith.constant 0.000000e+00 : f32
    %75 = vector.broadcast %cst_60 : f32 to vector<16x384xf32>
    %76 = arith.maximumf %74, %75 : vector<16x384xf32>
    %c2_61 = arith.constant 2 : index
    %c0_62 = arith.constant 0 : index
    %c0_63 = arith.constant 0 : index
    %77 = vector.load %arg4[%c2_61, %c0_62, %c0_63] : memref<4x16x16xf32, #tpu.memory_space<vmem>>, vector<1x16x16xf32>
    %78 = vector.shape_cast %77 : vector<1x16x16xf32> to vector<16x16xf32>
    %cst_64 = arith.constant dense<0.000000e+00> : vector<16x384xf32>
    %79 = tpu.matmul %78, %76, %cst_64 {dimension_numbers = #tpu.dot_dimension_numbers<[1], [0], [0], [1], [0, 0, 1, 1], [], []>} : vector<16x16xf32>, vector<16x384xf32>, vector<16x384xf32> -> vector<16x384xf32>
    %c2_65 = arith.constant 2 : index
    %c0_66 = arith.constant 0 : index
    %c0_67 = arith.constant 0 : index
    %80 = vector.load %arg5[%c2_65, %c0_66, %c0_67] : memref<4x16x1xf32, #tpu.memory_space<vmem>>, vector<1x16x1xf32>
    %81 = vector.shape_cast %80 : vector<1x16x1xf32> to vector<16x1xf32>
    %82 = vector.broadcast %81 : vector<16x1xf32> to vector<16x384xf32>
    %83 = arith.addf %79, %82 : vector<16x384xf32>
    %cst_68 = arith.constant 0.00999999977 : f32
    %84 = vector.broadcast %cst_68 : f32 to vector<16x384xf32>
    %85 = arith.cmpf ogt, %83, %84 : vector<16x384xf32>
    %cst_69 = arith.constant 0.00999999977 : f32
    %86 = vector.broadcast %cst_69 : f32 to vector<16x384xf32>
    %87 = arith.subf %83, %86 : vector<16x384xf32>
    %cst_70 = arith.constant 0.000000e+00 : f32
    %cst_71 = arith.constant 0.00999999977 : f32
    %88 = arith.subf %cst_70, %cst_71 : f32
    %89 = vector.broadcast %88 : f32 to vector<16x384xf32>
    %90 = arith.cmpf olt, %83, %89 : vector<16x384xf32>
    %cst_72 = arith.constant 0.00999999977 : f32
    %91 = vector.broadcast %cst_72 : f32 to vector<16x384xf32>
    %92 = arith.addf %83, %91 : vector<16x384xf32>
    %cst_73 = arith.constant 0.000000e+00 : f32
    %93 = vector.broadcast %cst_73 : f32 to vector<16x384xf32>
    %94 = arith.select %90, %92, %93 : vector<16x384xi1>, vector<16x384xf32>
    %95 = arith.select %85, %87, %94 : vector<16x384xi1>, vector<16x384xf32>
    %c2_74 = arith.constant 2 : index
    %c0_75 = arith.constant 0 : index
    %c0_76 = arith.constant 0 : index
    %96 = vector.load %arg6[%c2_74, %c0_75, %c0_76] : memref<4x16x384xf32, #tpu.memory_space<vmem>>, vector<1x16x384xf32>
    %97 = vector.shape_cast %96 : vector<1x16x384xf32> to vector<16x384xf32>
    %98 = vector.shape_cast %95 : vector<16x384xf32> to vector<1x16x384xf32>
    tpu.vector_store %arg6[%c2_74, %c0_75, %c0_76], %98 {strides = array<i32>} : memref<4x16x384xf32, #tpu.memory_space<vmem>>, vector<1x16x384xf32>,
    %c3 = arith.constant 3 : index
    %c0_77 = arith.constant 0 : index
    %c0_78 = arith.constant 0 : index
    %99 = vector.load %arg1[%c3, %c0_77, %c0_78] : memref<4x16x384xf32, #tpu.memory_space<vmem>>, vector<1x16x384xf32>
    %100 = vector.shape_cast %99 : vector<1x16x384xf32> to vector<16x384xf32>
    %c3_79 = arith.constant 3 : index
    %c0_80 = arith.constant 0 : index
    %c0_81 = arith.constant 0 : index
    %101 = vector.load %arg2[%c3_79, %c0_80, %c0_81] : memref<4x16x16xf32, #tpu.memory_space<vmem>>, vector<1x16x16xf32>
    %102 = vector.shape_cast %101 : vector<1x16x16xf32> to vector<16x16xf32>
    %cst_82 = arith.constant dense<0.000000e+00> : vector<16x384xf32>
    %103 = tpu.matmul %102, %100, %cst_82 {dimension_numbers = #tpu.dot_dimension_numbers<[1], [0], [0], [1], [0, 0, 1, 1], [], []>} : vector<16x16xf32>, vector<16x384xf32>, vector<16x384xf32> -> vector<16x384xf32>
    %c3_83 = arith.constant 3 : index
    %c0_84 = arith.constant 0 : index
    %c0_85 = arith.constant 0 : index
    %104 = vector.load %arg3[%c3_83, %c0_84, %c0_85] : memref<4x16x1xf32, #tpu.memory_space<vmem>>, vector<1x16x1xf32>
    %105 = vector.shape_cast %104 : vector<1x16x1xf32> to vector<16x1xf32>
    %106 = vector.broadcast %105 : vector<16x1xf32> to vector<16x384xf32>
    %107 = arith.addf %103, %106 : vector<16x384xf32>
    %cst_86 = arith.constant 0.000000e+00 : f32
    %108 = vector.broadcast %cst_86 : f32 to vector<16x384xf32>
    %109 = arith.maximumf %107, %108 : vector<16x384xf32>
    %c3_87 = arith.constant 3 : index
    %c0_88 = arith.constant 0 : index
    %c0_89 = arith.constant 0 : index
    %110 = vector.load %arg4[%c3_87, %c0_88, %c0_89] : memref<4x16x16xf32, #tpu.memory_space<vmem>>, vector<1x16x16xf32>
    %111 = vector.shape_cast %110 : vector<1x16x16xf32> to vector<16x16xf32>
    %cst_90 = arith.constant dense<0.000000e+00> : vector<16x384xf32>
    %112 = tpu.matmul %111, %109, %cst_90 {dimension_numbers = #tpu.dot_dimension_numbers<[1], [0], [0], [1], [0, 0, 1, 1], [], []>} : vector<16x16xf32>, vector<16x384xf32>, vector<16x384xf32> -> vector<16x384xf32>
    %c3_91 = arith.constant 3 : index
    %c0_92 = arith.constant 0 : index
    %c0_93 = arith.constant 0 : index
    %113 = vector.load %arg5[%c3_91, %c0_92, %c0_93] : memref<4x16x1xf32, #tpu.memory_space<vmem>>, vector<1x16x1xf32>
    %114 = vector.shape_cast %113 : vector<1x16x1xf32> to vector<16x1xf32>
    %115 = vector.broadcast %114 : vector<16x1xf32> to vector<16x384xf32>
    %116 = arith.addf %112, %115 : vector<16x384xf32>
    %cst_94 = arith.constant 0.00999999977 : f32
    %117 = vector.broadcast %cst_94 : f32 to vector<16x384xf32>
    %118 = arith.cmpf ogt, %116, %117 : vector<16x384xf32>
    %cst_95 = arith.constant 0.00999999977 : f32
    %119 = vector.broadcast %cst_95 : f32 to vector<16x384xf32>
    %120 = arith.subf %116, %119 : vector<16x384xf32>
    %cst_96 = arith.constant 0.000000e+00 : f32
    %cst_97 = arith.constant 0.00999999977 : f32
    %121 = arith.subf %cst_96, %cst_97 : f32
    %122 = vector.broadcast %121 : f32 to vector<16x384xf32>
    %123 = arith.cmpf olt, %116, %122 : vector<16x384xf32>
    %cst_98 = arith.constant 0.00999999977 : f32
    %124 = vector.broadcast %cst_98 : f32 to vector<16x384xf32>
    %125 = arith.addf %116, %124 : vector<16x384xf32>
    %cst_99 = arith.constant 0.000000e+00 : f32
    %126 = vector.broadcast %cst_99 : f32 to vector<16x384xf32>
    %127 = arith.select %123, %125, %126 : vector<16x384xi1>, vector<16x384xf32>
    %128 = arith.select %118, %120, %127 : vector<16x384xi1>, vector<16x384xf32>
    %c3_100 = arith.constant 3 : index
    %c0_101 = arith.constant 0 : index
    %c0_102 = arith.constant 0 : index
    %129 = vector.load %arg6[%c3_100, %c0_101, %c0_102] : memref<4x16x384xf32, #tpu.memory_space<vmem>>, vector<1x16x384xf32>
    %130 = vector.shape_cast %129 : vector<1x16x384xf32> to vector<16x384xf32>
    %131 = vector.shape_cast %128 : vector<16x384xf32> to vector<1x16x384xf32>
    tpu.vector_store %arg6[%c3_100, %c0_101, %c0_102], %131 {strides = array<i32>} : memref<4x16x384xf32, #tpu.memory_space<vmem>>, vector<1x16x384xf32>,
    return
  }
  func.func @transform_0(%arg0: i32) -> (i32, i32, i32) {
    %c0_i32 = arith.constant 0 : i32
    %c0_i32_0 = arith.constant 0 : i32
    %c0_i32_1 = arith.constant 0 : i32
    return %c0_i32, %c0_i32_0, %arg0 : i32, i32, i32
  }
  func.func @transform_1(%arg0: i32) -> (i32, i32, i32) {
    %c0_i32 = arith.constant 0 : i32
    %c0_i32_0 = arith.constant 0 : i32
    %c0_i32_1 = arith.constant 0 : i32
    %c0_i32_2 = arith.constant 0 : i32
    return %c0_i32, %c0_i32_0, %c0_i32_1 : i32, i32, i32
  }
  func.func @transform_2(%arg0: i32) -> (i32, i32, i32) {
    %c0_i32 = arith.constant 0 : i32
    %c0_i32_0 = arith.constant 0 : i32
    %c0_i32_1 = arith.constant 0 : i32
    %c0_i32_2 = arith.constant 0 : i32
    return %c0_i32, %c0_i32_0, %c0_i32_1 : i32, i32, i32
  }
  func.func @transform_3(%arg0: i32) -> (i32, i32, i32) {
    %c0_i32 = arith.constant 0 : i32
    %c0_i32_0 = arith.constant 0 : i32
    %c0_i32_1 = arith.constant 0 : i32
    %c0_i32_2 = arith.constant 0 : i32
    return %c0_i32, %c0_i32_0, %c0_i32_1 : i32, i32, i32
  }
  func.func @transform_4(%arg0: i32) -> (i32, i32, i32) {
    %c0_i32 = arith.constant 0 : i32
    %c0_i32_0 = arith.constant 0 : i32
    %c0_i32_1 = arith.constant 0 : i32
    %c0_i32_2 = arith.constant 0 : i32
    return %c0_i32, %c0_i32_0, %c0_i32_1 : i32, i32, i32
  }
  func.func @transform_5(%arg0: i32) -> (i32, i32, i32) {
    %c0_i32 = arith.constant 0 : i32
    %c0_i32_0 = arith.constant 0 : i32
    %c0_i32_1 = arith.constant 0 : i32
    return %c0_i32, %c0_i32_0, %arg0 : i32, i32, i32
  }
}

</mosaic_0001>

<bundles_post_ra>
// kernel: squeeze.19
= control target key start
LH: loop header
LB: loop body
LE: loop exit
PB: predicated region body
PF: predicated region fallthrough
CT: control target
= control target key end

     0   :  { %s4073_s10 = smov 123   ;;  %s4074_s13 = smov 121   ;;  %vm3_vm0 = vcmask 72704   ;;  %vm2503_vm1 = vcmask 1014784   ;;  %vm2670_vm2 = vcmask 1031168   ;;  %vm2507_vm3 = vcmask 31744   ;;  %s8818_s0 = inlined_call_operand.vmem [shape: f32[1,288,4,8], index: 0, kind: input, shape index: {}]   ;;  %s8819_s1 = inlined_call_operand.vmem [shape: f32[2,16,9,32], index: 1, kind: output, shape index: {}]  }
   0x1   :  { %v2868_v0 = vld [vmem:[%s8818_s0 + $0x10] sm:$0xff]   ;;  %v2886_v1 = vld [vmem:[%s8818_s0 + $0x40] sm:$0xff]   ;;  %v4123_v2 = vld [vmem:[%s8818_s0 + $0x8] sm:$0xff]   ;;  %s4075_s26 = smov 119   ;;  %s4076_s4 = smov 114   ;;  %vm2524_vm4 = vcmask 72736  }
   0x2   :  { %78 = vrot.lane.b32.xlu0 %v2868_v0, %s4073_s10  ;;  %120 = vrot.lane.b32.xlu1 %v2886_v1, %s4073_s10  ;;  %v2877_v3 = vld [vmem:[%s8818_s0 + $0x28] sm:$0xff]   ;;  %v2895_v4 = vld [vmem:[%s8818_s0 + $0x58] sm:$0xff]   ;;  %s4077_s5 = smov 112   ;;  %s4078_s6 = smov 110   ;;  %vm2674_vm5 = vcmask 15360   ;;  %vm2691_vm6 = vcmask 72720  }
   0x3   :  { %162 = vrot.lane.b32.xlu2 %v4123_v2, %s4074_s13  ;;  %v4135_v5 = vld [vmem:[%s8818_s0 + $0x20] sm:$0xff]   ;;  %v4141_v6 = vld [vmem:[%s8818_s0 + $0x38] sm:$0xff]   ;;  %v4146_v7 = vld [vmem:[%s8818_s0 + $0x50] sm:$0xff]   ;;  %s4079_s7 = smov 105   ;;  %s4080_s8 = smov 103  }
   0x4   :  { %v4151_v8 = vld [vmem:[%s8818_s0] sm:$0xff]   ;;  %v4159_v9 = vld [vmem:[%s8818_s0 + $0x18] sm:$0xff]   ;;  %v4164_v10 = vld [vmem:[%s8818_s0 + $0x30] sm:$0xff]   ;;  %s4081_s9 = smov 101   ;;  %s4082_s16 = smov 94  }
   0x5   :  { %v4169_v11 = vld [vmem:[%s8818_s0 + $0x48] sm:$0xff]   ;;  %s4083_s27 = smov 92   ;;  %s4084_s15 = smov 85   ;;  %v5445_v52 = vld [vmem:[%s8818_s0 + $0x30] sm:$0xff]   ;;  %v5557_v57 = vld [vmem:[%s8818_s0 + $0x20] sm:$0xff]  }
   0x6   :  { %s4086_s3 = smov 76   ;;  %s4087_s24 = smov 74   ;;  %v5450_v53 = vld [vmem:[%s8818_s0 + $0x8] sm:$0xff]   ;;  %v5562_v58 = vld [vmem:[%s8818_s0 + $0x50] sm:$0xff]   ;;  %v5673_v62 = vld [vmem:[%s8818_s0] sm:$0xff]  }
   0x7   :  { %s4089_s12 = smov 65   ;;  %s4092_s23 = smov 49  }
   0x8   :  { %s4093_s17 = smov 47   ;;  %s4094_s30 = smov 40  }
   0x9   :  { %s4095_s19 = smov 38   ;;  %s4098_s29 = smov 22  }
   0xa   :  { %99 = vrot.lane.b32.xlu0 %v2877_v3, %s4073_s10  ;;  %141 = vrot.lane.b32.xlu1 %v2895_v4, %s4073_s10  ;;  %s4091_s10 = smov 56   ;;  %s4100_s22 = smov 13  }
   0xb   :  { %183 = vrot.lane.b32.xlu2 %v4135_v5, %s4074_s13  ;;  %s4103_s18 = smov 11  }
  0x12   :  { %204 = vrot.lane.b32.xlu0 %v4141_v6, %s4074_s13  ;;  %225 = vrot.lane.b32.xlu1 %v4146_v7, %s4074_s13 }
  0x13   :  { %245 = vrot.lane.b32.xlu2 %v4151_v8, %s4075_s26 }
  0x1a   :  { %266 = vrot.lane.b32.xlu0 %v4159_v9, %s4075_s26  ;;  %287 = vrot.lane.b32.xlu1 %v4164_v10, %s4075_s26 }
  0x1b   :  { %308 = vrot.lane.b32.xlu2 %v4169_v11, %s4075_s26 }
  0x22   :  { %329 = vrot.lane.b32.xlu0 %v2868_v0, %s4076_s4  ;;  %350 = vrot.lane.b32.xlu1 %v2877_v3, %s4076_s4 }
  0x23   :  { %371 = vrot.lane.b32.xlu2 %v2886_v1, %s4076_s4 }
  0x2a   :  { %392 = vrot.lane.b32.xlu0 %v2895_v4, %s4076_s4  ;;  %413 = vrot.lane.b32.xlu1 %v4123_v2, %s4077_s5  ;;  %s4090_s4 = smov 58  }
  0x2b   :  { %434 = vrot.lane.b32.xlu2 %v4135_v5, %s4077_s5 }
  0x32   :  { %455 = vrot.lane.b32.xlu0 %v4141_v6, %s4077_s5  ;;  %476 = vrot.lane.b32.xlu1 %v4146_v7, %s4077_s5 }
  0x33   :  { %496 = vrot.lane.b32.xlu2 %v4151_v8, %s4078_s6 }
  0x3a   :  { %517 = vrot.lane.b32.xlu0 %v4159_v9, %s4078_s6  ;;  %538 = vrot.lane.b32.xlu1 %v4164_v10, %s4078_s6 }
  0x3b   :  { %559 = vrot.lane.b32.xlu2 %v4169_v11, %s4078_s6 }
  0x42   :  { %580 = vrot.lane.b32.xlu0 %v2868_v0, %s4079_s7  ;;  %601 = vrot.lane.b32.xlu1 %v2877_v3, %s4079_s7 }
  0x43   :  { %622 = vrot.lane.b32.xlu2 %v2886_v1, %s4079_s7 }
  0x4a   :  { %643 = vrot.lane.b32.xlu0 %v2895_v4, %s4079_s7  ;;  %664 = vrot.lane.b32.xlu1 %v4123_v2, %s4080_s8  ;;  %s4096_s7 = smov 31  }
  0x4b   :  { %685 = vrot.lane.b32.xlu2 %v4135_v5, %s4080_s8 }
  0x52   :  { %706 = vrot.lane.b32.xlu0 %v4141_v6, %s4080_s8  ;;  %727 = vrot.lane.b32.xlu1 %v4146_v7, %s4080_s8  ;;  %s4101_s8 = smov 4  }
  0x53   :  { %747 = vrot.lane.b32.xlu2 %v4151_v8, %s4081_s9 }
  0x5a   :  { %768 = vrot.lane.b32.xlu0 %v4159_v9, %s4081_s9  ;;  %789 = vrot.lane.b32.xlu1 %v4164_v10, %s4081_s9 }
  0x5b   :  { %810 = vrot.lane.b32.xlu2 %v4169_v11, %s4081_s9 }
  0x5d   :  { %v163_v12 = vpop.permute.xlu2 %162  }
  0x5e   :  { %2905 = vst.msk [vmem:[%s8819_s1 + $0xf] sm:$0x1] %vm3_vm0, %v163_v12  }
  0x5f   :  { %2906 = vst.msk [vmem:[%s8819_s1 + $0x2e] sm:$0x2] %vm3_vm0, %v163_v12  }
  0x60   :  { %2907 = vst.msk [vmem:[%s8819_s1 + $0x4d] sm:$0x4] %vm3_vm0, %v163_v12  }
  0x61   :  { %2908 = vst.msk [vmem:[%s8819_s1 + $0x6c] sm:$0x8] %vm3_vm0, %v163_v12  }
  0x62   :  { %831 = vrot.lane.b32.xlu0 %v4123_v2, %s4082_s16  ;;  %852 = vrot.lane.b32.xlu1 %v4135_v5, %s4082_s16  ;;  %2909 = vst.msk [vmem:[%s8819_s1 + $0x8b] sm:$0x10] %vm3_vm0, %v163_v12  }
  0x63   :  { %2910 = vst.msk [vmem:[%s8819_s1 + $0xaa] sm:$0x20] %vm3_vm0, %v163_v12   ;;  %873 = vrot.lane.b32.xlu2 %v4141_v6, %s4082_s16 }
  0x64   :  { %2911 = vst.msk [vmem:[%s8819_s1 + $0xc9] sm:$0x40] %vm3_vm0, %v163_v12  }
  0x65   :  { %2912 = vst.msk [vmem:[%s8819_s1 + $0xe8] sm:$0x80] %vm3_vm0, %v163_v12   ;;  %v184_v13 = vpop.permute.xlu2 %183  }
  0x66   :  { %2914 = vst.msk [vmem:[%s8819_s1 + $0x10f] sm:$0x1] %vm3_vm0, %v184_v13  }
  0x67   :  { %2915 = vst.msk [vmem:[%s8819_s1 + $0x12e] sm:$0x2] %vm3_vm0, %v184_v13  }
  0x68   :  { %2916 = vst.msk [vmem:[%s8819_s1 + $0x14d] sm:$0x4] %vm3_vm0, %v184_v13  }
  0x69   :  { %2917 = vst.msk [vmem:[%s8819_s1 + $0x16c] sm:$0x8] %vm3_vm0, %v184_v13  }
  0x6a   :  { %894 = vrot.lane.b32.xlu0 %v4146_v7, %s4082_s16  ;;  %914 = vrot.lane.b32.xlu1 %v4151_v8, %s4083_s27  ;;  %2918 = vst.msk [vmem:[%s8819_s1 + $0x18b] sm:$0x10] %vm3_vm0, %v184_v13  }
  0x6b   :  { %935 = vrot.lane.b32.xlu2 %v4159_v9, %s4083_s27  ;;  %2919 = vst.msk [vmem:[%s8819_s1 + $0x1aa] sm:$0x20] %vm3_vm0, %v184_v13  }
  0x6c   :  { %2920 = vst.msk [vmem:[%s8819_s1 + $0x1c9] sm:$0x40] %vm3_vm0, %v184_v13  }
  0x6d   :  { %2921 = vst.msk [vmem:[%s8819_s1 + $0x1e8] sm:$0x80] %vm3_vm0, %v184_v13   ;;  %v4302_v18 = vpop.permute.xlu2 %245  }
  0x6e   :  { %2940 = vst.msk [vmem:[%s8819_s1 + $0x1] sm:$0x1] %vm3_vm0, %v4302_v18  }
  0x6f   :  { %2941 = vst.msk [vmem:[%s8819_s1 + $0x20] sm:$0x2] %vm3_vm0, %v4302_v18  }
  0x70   :  { %2942 = vst.msk [vmem:[%s8819_s1 + $0x3f] sm:$0x4] %vm3_vm0, %v4302_v18  }
  0x71   :  { %2943 = vst.msk [vmem:[%s8819_s1 + $0x5e] sm:$0x8] %vm3_vm0, %v4302_v18  }
  0x72   :  { %956 = vrot.lane.b32.xlu0 %v4164_v10, %s4083_s27  ;;  %977 = vrot.lane.b32.xlu1 %v4169_v11, %s4083_s27  ;;  %2944 = vst.msk [vmem:[%s8819_s1 + $0x7d] sm:$0x10] %vm3_vm0, %v4302_v18  }
  0x73   :  { %998 = vrot.lane.b32.xlu2 %v4123_v2, %s4084_s15  ;;  %2945 = vst.msk [vmem:[%s8819_s1 + $0x9c] sm:$0x20] %vm3_vm0, %v4302_v18  }
  0x74   :  { %v79_v14 = vpop.permute.xlu0 %78   ;;  %v121_v15 = vpop.permute.xlu1 %120   ;;  %2946 = vst.msk [vmem:[%s8819_s1 + $0xbb] sm:$0x40] %vm3_vm0, %v4302_v18  }
  0x75   :  { %2869 = vst.msk [vmem:[%s8819_s1 + $0x1d] sm:$0x1] %vm3_vm0, %v79_v14   ;;  %v4408_v22 = vpop.permute.xlu2 %308  }
  0x76   :  { %2870 = vst.msk [vmem:[%s8819_s1 + $0x3c] sm:$0x2] %vm3_vm0, %v79_v14  }
  0x77   :  { %2871 = vst.msk [vmem:[%s8819_s1 + $0x5b] sm:$0x4] %vm3_vm0, %v79_v14  }
  0x78   :  { %2872 = vst.msk [vmem:[%s8819_s1 + $0x7a] sm:$0x8] %vm3_vm0, %v79_v14  }
  0x79   :  { %2873 = vst.msk [vmem:[%s8819_s1 + $0x99] sm:$0x10] %vm3_vm0, %v79_v14  }
  0x7a   :  { %2874 = vst.msk [vmem:[%s8819_s1 + $0xb8] sm:$0x20] %vm3_vm0, %v79_v14   ;;  %1019 = vrot.lane.b32.xlu0 %v4135_v5, %s4084_s15  ;;  %1040 = vrot.lane.b32.xlu1 %v4141_v6, %s4084_s15 }
  0x7b   :  { %2875 = vst.msk [vmem:[%s8819_s1 + $0xd7] sm:$0x40] %vm3_vm0, %v79_v14   ;;  %1061 = vrot.lane.b32.xlu2 %v4146_v7, %s4084_s15  ;;  %s4085_s15 = smov 83  }
  0x7c   :  { %2876 = vst.msk [vmem:[%s8819_s1 + $0xf6] sm:$0x80] %vm3_vm0, %v79_v14   ;;  %v100_v16 = vpop.permute.xlu0 %99   ;;  %v142_v17 = vpop.permute.xlu1 %141  }
  0x7d   :  { %2887 = vst.msk [vmem:[%s8819_s1 + $0x21d] sm:$0x1] %vm3_vm0, %v121_v15   ;;  %v372_v25 = vpop.permute.xlu2 %371  }
  0x7e   :  { %2888 = vst.msk [vmem:[%s8819_s1 + $0x23c] sm:$0x2] %vm3_vm0, %v121_v15  }
  0x7f   :  { %2889 = vst.msk [vmem:[%s8819_s1 + $0x25b] sm:$0x4] %vm3_vm0, %v121_v15  }
  0x80   :  { %2890 = vst.msk [vmem:[%s8819_s1 + $0x27a] sm:$0x8] %vm3_vm0, %v121_v15  }
  0x81   :  { %2891 = vst.msk [vmem:[%s8819_s1 + $0x299] sm:$0x10] %vm3_vm0, %v121_v15  }
  0x82   :  { %2892 = vst.msk [vmem:[%s8819_s1 + $0x2b8] sm:$0x20] %vm3_vm0, %v121_v15   ;;  %1081 = vrot.lane.b32.xlu0 %v4151_v8, %s4085_s15  ;;  %1102 = vrot.lane.b32.xlu1 %v4159_v9, %s4085_s15 }
  0x83   :  { %2893 = vst.msk [vmem:[%s8819_s1 + $0x2d7] sm:$0x40] %vm3_vm0, %v121_v15   ;;  %1123 = vrot.lane.b32.xlu2 %v4164_v10, %s4085_s15 }
  0x84   :  { %2894 = vst.msk [vmem:[%s8819_s1 + $0x2f6] sm:$0x80] %vm3_vm0, %v121_v15   ;;  %v205_v19 = vpop.permute.xlu0 %204   ;;  %v4334_v20 = vpop.permute.xlu1 %225  }
  0x85   :  { %2878 = vst.msk [vmem:[%s8819_s1 + $0x11d] sm:$0x1] %vm3_vm0, %v100_v16   ;;  %v435_v28 = vpop.permute.xlu2 %434  }
  0x86   :  { %2879 = vst.msk [vmem:[%s8819_s1 + $0x13c] sm:$0x2] %vm3_vm0, %v100_v16  }
  0x87   :  { %2880 = vst.msk [vmem:[%s8819_s1 + $0x15b] sm:$0x4] %vm3_vm0, %v100_v16  }
  0x88   :  { %2881 = vst.msk [vmem:[%s8819_s1 + $0x17a] sm:$0x8] %vm3_vm0, %v100_v16  }
  0x89   :  { %2882 = vst.msk [vmem:[%s8819_s1 + $0x199] sm:$0x10] %vm3_vm0, %v100_v16  }
  0x8a   :  { %2883 = vst.msk [vmem:[%s8819_s1 + $0x1b8] sm:$0x20] %vm3_vm0, %v100_v16   ;;  %1144 = vrot.lane.b32.xlu0 %v4169_v11, %s4085_s15  ;;  %1165 = vrot.lane.b32.xlu1 %v4123_v2, %s4086_s3 }
  0x8b   :  { %2884 = vst.msk [vmem:[%s8819_s1 + $0x1d7] sm:$0x40] %vm3_vm0, %v100_v16   ;;  %1186 = vrot.lane.b32.xlu2 %v4135_v5, %s4086_s3 }
  0x8c   :  { %2885 = vst.msk [vmem:[%s8819_s1 + $0x1f6] sm:$0x80] %vm3_vm0, %v100_v16   ;;  %v4371_v21 = vpop.permute.xlu0 %266   ;;  %v4435_v23 = vpop.permute.xlu1 %287  }
  0x8d   :  { %2896 = vst.msk [vmem:[%s8819_s1 + $0x31d] sm:$0x1] %vm3_vm0, %v142_v17   ;;  %v497_v31 = vpop.permute.xlu2 %496  }
  0x8e   :  { %2897 = vst.msk [vmem:[%s8819_s1 + $0x33c] sm:$0x2] %vm3_vm0, %v142_v17  }
  0x8f   :  { %2898 = vst.msk [vmem:[%s8819_s1 + $0x35b] sm:$0x4] %vm3_vm0, %v142_v17  }
  0x90   :  { %2899 = vst.msk [vmem:[%s8819_s1 + $0x37a] sm:$0x8] %vm3_vm0, %v142_v17  }
  0x91   :  { %2900 = vst.msk [vmem:[%s8819_s1 + $0x399] sm:$0x10] %vm3_vm0, %v142_v17  }
  0x92   :  { %2901 = vst.msk [vmem:[%s8819_s1 + $0x3b8] sm:$0x20] %vm3_vm0, %v142_v17   ;;  %1207 = vrot.lane.b32.xlu0 %v4141_v6, %s4086_s3  ;;  %1228 = vrot.lane.b32.xlu1 %v4146_v7, %s4086_s3 }
  0x93   :  { %2902 = vst.msk [vmem:[%s8819_s1 + $0x3d7] sm:$0x40] %vm3_vm0, %v142_v17   ;;  %1248 = vrot.lane.b32.xlu2 %v4151_v8, %s4087_s24 }
  0x94   :  { %2903 = vst.msk [vmem:[%s8819_s1 + $0x3f6] sm:$0x80] %vm3_vm0, %v142_v17   ;;  %v330_v24 = vpop.permute.xlu0 %329   ;;  %v351_v26 = vpop.permute.xlu1 %350  }
  0x95   :  { %2923 = vst.msk [vmem:[%s8819_s1 + $0x20f] sm:$0x1] %vm3_vm0, %v205_v19   ;;  %v560_v34 = vpop.permute.xlu2 %559  }
  0x96   :  { %2924 = vst.msk [vmem:[%s8819_s1 + $0x22e] sm:$0x2] %vm3_vm0, %v205_v19  }
  0x97   :  { %2925 = vst.msk [vmem:[%s8819_s1 + $0x24d] sm:$0x4] %vm3_vm0, %v205_v19  }
  0x98   :  { %2926 = vst.msk [vmem:[%s8819_s1 + $0x26c] sm:$0x8] %vm3_vm0, %v205_v19  }
  0x99   :  { %2927 = vst.msk [vmem:[%s8819_s1 + $0x28b] sm:$0x10] %vm3_vm0, %v205_v19  }
  0x9a   :  { %2928 = vst.msk [vmem:[%s8819_s1 + $0x2aa] sm:$0x20] %vm3_vm0, %v205_v19   ;;  %1269 = vrot.lane.b32.xlu0 %v4159_v9, %s4087_s24  ;;  %1290 = vrot.lane.b32.xlu1 %v4164_v10, %s4087_s24 }
  0x9b   :  { %2929 = vst.msk [vmem:[%s8819_s1 + $0x2c9] sm:$0x40] %vm3_vm0, %v205_v19   ;;  %1311 = vrot.lane.b32.xlu2 %v4169_v11, %s4087_s24  ;;  %s4088_s24 = smov 67  }
  0x9c   :  { %2930 = vst.msk [vmem:[%s8819_s1 + $0x2e8] sm:$0x80] %vm3_vm0, %v205_v19   ;;  %v393_v27 = vpop.permute.xlu0 %392   ;;  %v414_v29 = vpop.permute.xlu1 %413  }
  0x9d   :  { %2947 = vst.msk [vmem:[%s8819_s1 + $0xda] sm:$0x80] %vm3_vm0, %v4302_v18   ;;  %v623_v37 = vpop.permute.xlu2 %622  }
  0x9e   :  { %2932 = vst.msk [vmem:[%s8819_s1 + $0x30f] sm:$0x1] %vm3_vm0, %v4334_v20  }
  0x9f   :  { %2933 = vst.msk [vmem:[%s8819_s1 + $0x32e] sm:$0x2] %vm3_vm0, %v4334_v20  }
  0xa0   :  { %2934 = vst.msk [vmem:[%s8819_s1 + $0x34d] sm:$0x4] %vm3_vm0, %v4334_v20  }
  0xa1   :  { %2935 = vst.msk [vmem:[%s8819_s1 + $0x36c] sm:$0x8] %vm3_vm0, %v4334_v20  }
  0xa2   :  { %1332 = vrot.lane.b32.xlu0 %v4123_v2, %s4088_s24  ;;  %1353 = vrot.lane.b32.xlu1 %v4135_v5, %s4088_s24  ;;  %2936 = vst.msk [vmem:[%s8819_s1 + $0x38b] sm:$0x10] %vm3_vm0, %v4334_v20  }
  0xa3   :  { %1374 = vrot.lane.b32.xlu2 %v4141_v6, %s4088_s24  ;;  %2937 = vst.msk [vmem:[%s8819_s1 + $0x3aa] sm:$0x20] %vm3_vm0, %v4334_v20  }
  0xa4   :  { %2938 = vst.msk [vmem:[%s8819_s1 + $0x3c9] sm:$0x40] %vm3_vm0, %v4334_v20   ;;  %v456_v30 = vpop.permute.xlu0 %455   ;;  %v477_v32 = vpop.permute.xlu1 %476  }
  0xa5   :  { %2939 = vst.msk [vmem:[%s8819_s1 + $0x3e8] sm:$0x80] %vm3_vm0, %v4334_v20   ;;  %v686_v40 = vpop.permute.xlu2 %685  }
  0xa6   :  { %2949 = vst.msk [vmem:[%s8819_s1 + $0x101] sm:$0x1] %vm3_vm0, %v4371_v21  }
  0xa7   :  { %2950 = vst.msk [vmem:[%s8819_s1 + $0x120] sm:$0x2] %vm3_vm0, %v4371_v21  }
  0xa8   :  { %2951 = vst.msk [vmem:[%s8819_s1 + $0x13f] sm:$0x4] %vm3_vm0, %v4371_v21  }
  0xa9   :  { %2952 = vst.msk [vmem:[%s8819_s1 + $0x15e] sm:$0x8] %vm3_vm0, %v4371_v21  }
  0xaa   :  { %1395 = vrot.lane.b32.xlu0 %v4146_v7, %s4088_s24  ;;  %1415 = vrot.lane.b32.xlu1 %v4151_v8, %s4089_s12  ;;  %2953 = vst.msk [vmem:[%s8819_s1 + $0x17d] sm:$0x10] %vm3_vm0, %v4371_v21  }
  0xab   :  { %1436 = vrot.lane.b32.xlu2 %v4159_v9, %s4089_s12  ;;  %2954 = vst.msk [vmem:[%s8819_s1 + $0x19c] sm:$0x20] %vm3_vm0, %v4371_v21  }
  0xac   :  { %2955 = vst.msk [vmem:[%s8819_s1 + $0x1bb] sm:$0x40] %vm3_vm0, %v4371_v21   ;;  %v518_v33 = vpop.permute.xlu0 %517   ;;  %v539_v35 = vpop.permute.xlu1 %538  }
  0xad   :  { %2956 = vst.msk [vmem:[%s8819_s1 + $0x1da] sm:$0x80] %vm3_vm0, %v4371_v21   ;;  %v748_v43 = vpop.permute.xlu2 %747  }
  0xae   :  { %2967 = vst.msk [vmem:[%s8819_s1 + $0x301] sm:$0x1] %vm3_vm0, %v4408_v22  }
  0xaf   :  { %2968 = vst.msk [vmem:[%s8819_s1 + $0x320] sm:$0x2] %vm3_vm0, %v4408_v22  }
  0xb0   :  { %2969 = vst.msk [vmem:[%s8819_s1 + $0x33f] sm:$0x4] %vm3_vm0, %v4408_v22  }
  0xb1   :  { %2970 = vst.msk [vmem:[%s8819_s1 + $0x35e] sm:$0x8] %vm3_vm0, %v4408_v22  }
  0xb2   :  { %1457 = vrot.lane.b32.xlu0 %v4164_v10, %s4089_s12  ;;  %1478 = vrot.lane.b32.xlu1 %v4169_v11, %s4089_s12  ;;  %2971 = vst.msk [vmem:[%s8819_s1 + $0x37d] sm:$0x10] %vm3_vm0, %v4408_v22   ;;  %v5994_v10 = vld [vmem:[%s8818_s0 + $0x18] sm:$0xff]  }
  0xb3   :  { %1499 = vrot.lane.b32.xlu2 %v4123_v2, %s4090_s4  ;;  %2972 = vst.msk [vmem:[%s8819_s1 + $0x39c] sm:$0x20] %vm3_vm0, %v4408_v22  }
  0xb4   :  { %2973 = vst.msk [vmem:[%s8819_s1 + $0x3bb] sm:$0x40] %vm3_vm0, %v4408_v22   ;;  %v581_v36 = vpop.permute.xlu0 %580   ;;  %v602_v38 = vpop.permute.xlu1 %601  }
  0xb5   :  { %2974 = vst.msk [vmem:[%s8819_s1 + $0x3da] sm:$0x80] %vm3_vm0, %v4408_v22   ;;  %v811_v46 = vpop.permute.xlu2 %810  }
  0xb6   :  { %2958 = vst.msk [vmem:[%s8819_s1 + $0x201] sm:$0x1] %vm3_vm0, %v4435_v23  }
  0xb7   :  { %2959 = vst.msk [vmem:[%s8819_s1 + $0x220] sm:$0x2] %vm3_vm0, %v4435_v23  }
  0xb8   :  { %2960 = vst.msk [vmem:[%s8819_s1 + $0x23f] sm:$0x4] %vm3_vm0, %v4435_v23  }
  0xb9   :  { %2961 = vst.msk [vmem:[%s8819_s1 + $0x25e] sm:$0x8] %vm3_vm0, %v4435_v23  }
  0xba   :  { %1520 = vrot.lane.b32.xlu0 %v4135_v5, %s4090_s4  ;;  %1541 = vrot.lane.b32.xlu1 %v4141_v6, %s4090_s4  ;;  %2962 = vst.msk [vmem:[%s8819_s1 + $0x27d] sm:$0x10] %vm3_vm0, %v4435_v23  }
  0xbb   :  { %1562 = vrot.lane.b32.xlu2 %v4146_v7, %s4090_s4  ;;  %2963 = vst.msk [vmem:[%s8819_s1 + $0x29c] sm:$0x20] %vm3_vm0, %v4435_v23  }
  0xbc   :  { %2964 = vst.msk [vmem:[%s8819_s1 + $0x2bb] sm:$0x40] %vm3_vm0, %v4435_v23   ;;  %v644_v39 = vpop.permute.xlu0 %643   ;;  %v665_v41 = vpop.permute.xlu1 %664  }
  0xbd   :  { %2965 = vst.msk [vmem:[%s8819_s1 + $0x2da] sm:$0x80] %vm3_vm0, %v4435_v23   ;;  %v874_v49 = vpop.permute.xlu2 %873   ;;  %v3900_v23 = vld [vmem:[%s8818_s0 + $0x10] sm:$0xff]  }
  0xbe   :  { %2976 = vst.msk [vmem:[%s8819_s1 + $0x1e] sm:$0x1] %vm3_vm0, %v330_v24  }
  0xbf   :  { %2977 = vst.msk [vmem:[%s8819_s1 + $0x3d] sm:$0x2] %vm3_vm0, %v330_v24  }
  0xc0   :  { %2978 = vst.msk [vmem:[%s8819_s1 + $0x5c] sm:$0x4] %vm3_vm0, %v330_v24  }
  0xc1   :  { %2979 = vst.msk [vmem:[%s8819_s1 + $0x7b] sm:$0x8] %vm3_vm0, %v330_v24  }
  0xc2   :  { %1582 = vrot.lane.b32.xlu0 %v4151_v8, %s4091_s10  ;;  %1603 = vrot.lane.b32.xlu1 %v4159_v9, %s4091_s10  ;;  %2980 = vst.msk [vmem:[%s8819_s1 + $0x9a] sm:$0x10] %vm3_vm0, %v330_v24  }
  0xc3   :  { %2981 = vst.msk [vmem:[%s8819_s1 + $0xb9] sm:$0x20] %vm3_vm0, %v330_v24   ;;  %1624 = vrot.lane.b32.xlu2 %v5445_v52, %s4091_s10 }
  0xc4   :  { %2982 = vst.msk [vmem:[%s8819_s1 + $0xd8] sm:$0x40] %vm3_vm0, %v330_v24   ;;  %v707_v42 = vpop.permute.xlu0 %706   ;;  %v728_v44 = vpop.permute.xlu1 %727  }
  0xc5   :  { %2983 = vst.msk [vmem:[%s8819_s1 + $0xf7] sm:$0x80] %vm3_vm0, %v330_v24   ;;  %v936_v54 = vpop.permute.xlu2 %935  }
  0xc6   :  { %2994 = vst.msk [vmem:[%s8819_s1 + $0x21e] sm:$0x1] %vm3_vm0, %v372_v25  }
  0xc7   :  { %2995 = vst.msk [vmem:[%s8819_s1 + $0x23d] sm:$0x2] %vm3_vm0, %v372_v25  }
  0xc8   :  { %2996 = vst.msk [vmem:[%s8819_s1 + $0x25c] sm:$0x4] %vm3_vm0, %v372_v25  }
  0xc9   :  { %2997 = vst.msk [vmem:[%s8819_s1 + $0x27b] sm:$0x8] %vm3_vm0, %v372_v25  }
  0xca   :  { %1645 = vrot.lane.b32.xlu0 %v4169_v11, %s4091_s10  ;;  %2998 = vst.msk [vmem:[%s8819_s1 + $0x29a] sm:$0x10] %vm3_vm0, %v372_v25   ;;  %1666 = vrot.lane.b32.xlu1 %v4123_v2, %s4092_s23  ;;  %s4097_s10 = smov 29   ;;  %v5780_v2 = vld [vmem:[%s8818_s0 + $0x48] sm:$0xff]  }
  0xcb   :  { %2999 = vst.msk [vmem:[%s8819_s1 + $0x2b9] sm:$0x20] %vm3_vm0, %v372_v25   ;;  %1687 = vrot.lane.b32.xlu2 %v5557_v57, %s4092_s23 }
  0xcc   :  { %3000 = vst.msk [vmem:[%s8819_s1 + $0x2d8] sm:$0x40] %vm3_vm0, %v372_v25   ;;  %v769_v45 = vpop.permute.xlu0 %768   ;;  %v790_v47 = vpop.permute.xlu1 %789  }
  0xcd   :  { %3001 = vst.msk [vmem:[%s8819_s1 + $0x2f7] sm:$0x80] %vm3_vm0, %v372_v25   ;;  %v999_v59 = vpop.permute.xlu2 %998   ;;  %v2504_v25 = vsel %vm2503_vm1, %v3900_v23, %v5450_v53 }
  0xce   :  { %2985 = vst.msk [vmem:[%s8819_s1 + $0x11e] sm:$0x1] %vm3_vm0, %v351_v26  }
  0xcf   :  { %2986 = vst.msk [vmem:[%s8819_s1 + $0x13d] sm:$0x2] %vm3_vm0, %v351_v26  }
  0xd0   :  { %2987 = vst.msk [vmem:[%s8819_s1 + $0x15c] sm:$0x4] %vm3_vm0, %v351_v26  }
  0xd1   :  { %2988 = vst.msk [vmem:[%s8819_s1 + $0x17b] sm:$0x8] %vm3_vm0, %v351_v26  }
  0xd2   :  { %2989 = vst.msk [vmem:[%s8819_s1 + $0x19a] sm:$0x10] %vm3_vm0, %v351_v26   ;;  %1708 = vrot.lane.b32.xlu0 %v4141_v6, %s4092_s23  ;;  %1729 = vrot.lane.b32.xlu1 %v4146_v7, %s4092_s23  ;;  %v5887_v6 = vld [vmem:[%s8818_s0 + $0x38] sm:$0xff]   ;;  %s4102_s23 = smov 2  }
  0xd3   :  { %2990 = vst.msk [vmem:[%s8819_s1 + $0x1b9] sm:$0x20] %vm3_vm0, %v351_v26   ;;  %1749 = vrot.lane.b32.xlu2 %v5673_v62, %s4093_s17 }
  0xd4   :  { %2991 = vst.msk [vmem:[%s8819_s1 + $0x1d8] sm:$0x40] %vm3_vm0, %v351_v26   ;;  %v832_v48 = vpop.permute.xlu0 %831   ;;  %v853_v50 = vpop.permute.xlu1 %852  }
  0xd5   :  { %2992 = vst.msk [vmem:[%s8819_s1 + $0x1f7] sm:$0x80] %vm3_vm0, %v351_v26   ;;  %v1062_v63 = vpop.permute.xlu2 %1061  }
  0xd6   :  { %3003 = vst.msk [vmem:[%s8819_s1 + $0x31e] sm:$0x1] %vm3_vm0, %v393_v27  }
  0xd7   :  { %3004 = vst.msk [vmem:[%s8819_s1 + $0x33d] sm:$0x2] %vm3_vm0, %v393_v27  }
  0xd8   :  { %3005 = vst.msk [vmem:[%s8819_s1 + $0x35c] sm:$0x4] %vm3_vm0, %v393_v27  }
  0xd9   :  { %3006 = vst.msk [vmem:[%s8819_s1 + $0x37b] sm:$0x8] %vm3_vm0, %v393_v27  }
  0xda   :  { %3007 = vst.msk [vmem:[%s8819_s1 + $0x39a] sm:$0x10] %vm3_vm0, %v393_v27   ;;  %1770 = vrot.lane.b32.xlu0 %v4159_v9, %s4093_s17  ;;  %1791 = vrot.lane.b32.xlu1 %v5445_v52, %s4093_s17 }
  0xdb   :  { %3008 = vst.msk [vmem:[%s8819_s1 + $0x3b9] sm:$0x20] %vm3_vm0, %v393_v27   ;;  %1812 = vrot.lane.b32.xlu2 %v5780_v2, %s4093_s17  ;;  %s4099_s17 = smov 20  }
  0xdc   :  { %3009 = vst.msk [vmem:[%s8819_s1 + $0x3d8] sm:$0x40] %vm3_vm0, %v393_v27   ;;  %v895_v51 = vpop.permute.xlu0 %894   ;;  %v915_v55 = vpop.permute.xlu1 %914  }
  0xdd   :  { %3010 = vst.msk [vmem:[%s8819_s1 + $0x3f7] sm:$0x80] %vm3_vm0, %v393_v27   ;;  %v1124_v3 = vpop.permute.xlu2 %1123  }
  0xde   :  { %3021 = vst.msk [vmem:[%s8819_s1 + $0x110] sm:$0x1] %vm3_vm0, %v435_v28  }
  0xdf   :  { %3022 = vst.msk [vmem:[%s8819_s1 + $0x12f] sm:$0x2] %vm3_vm0, %v435_v28  }
  0xe0   :  { %3023 = vst.msk [vmem:[%s8819_s1 + $0x14e] sm:$0x4] %vm3_vm0, %v435_v28  }
  0xe1   :  { %3024 = vst.msk [vmem:[%s8819_s1 + $0x16d] sm:$0x8] %vm3_vm0, %v435_v28  }
  0xe2   :  { %3025 = vst.msk [vmem:[%s8819_s1 + $0x18c] sm:$0x10] %vm3_vm0, %v435_v28   ;;  %1833 = vrot.lane.b32.xlu0 %v5450_v53, %s4094_s30  ;;  %1854 = vrot.lane.b32.xlu1 %v5557_v57, %s4094_s30 }
  0xe3   :  { %3026 = vst.msk [vmem:[%s8819_s1 + $0x1ab] sm:$0x20] %vm3_vm0, %v435_v28   ;;  %1875 = vrot.lane.b32.xlu2 %v5887_v6, %s4094_s30 }
  0xe4   :  { %3027 = vst.msk [vmem:[%s8819_s1 + $0x1ca] sm:$0x40] %vm3_vm0, %v435_v28   ;;  %v957_v56 = vpop.permute.xlu0 %956   ;;  %v978_v60 = vpop.permute.xlu1 %977  }
  0xe5   :  { %3028 = vst.msk [vmem:[%s8819_s1 + $0x1e9] sm:$0x80] %vm3_vm0, %v435_v28   ;;  %v1187_v7 = vpop.permute.xlu2 %1186   ;;  %v3918_v28 = vld [vmem:[%s8818_s0 + $0x28] sm:$0xff]  }
  0xe6   :  { %3012 = vst.msk [vmem:[%s8819_s1 + $0x10] sm:$0x1] %vm3_vm0, %v414_v29  }
  0xe7   :  { %3013 = vst.msk [vmem:[%s8819_s1 + $0x2f] sm:$0x2] %vm3_vm0, %v414_v29  }
  0xe8   :  { %3014 = vst.msk [vmem:[%s8819_s1 + $0x4e] sm:$0x4] %vm3_vm0, %v414_v29  }
  0xe9   :  { %3015 = vst.msk [vmem:[%s8819_s1 + $0x6d] sm:$0x8] %vm3_vm0, %v414_v29  }
  0xea   :  { %3016 = vst.msk [vmem:[%s8819_s1 + $0x8c] sm:$0x10] %vm3_vm0, %v414_v29   ;;  %1896 = vrot.lane.b32.xlu0 %v5562_v58, %s4094_s30  ;;  %1916 = vrot.lane.b32.xlu1 %v5673_v62, %s4095_s19 }
  0xeb   :  { %3017 = vst.msk [vmem:[%s8819_s1 + $0xab] sm:$0x20] %vm3_vm0, %v414_v29   ;;  %1937 = vrot.lane.b32.xlu2 %v5994_v10, %s4095_s19 }
  0xec   :  { %3018 = vst.msk [vmem:[%s8819_s1 + $0xca] sm:$0x40] %vm3_vm0, %v414_v29   ;;  %v1020_v61 = vpop.permute.xlu0 %1019   ;;  %v1041_v0 = vpop.permute.xlu1 %1040  }
  0xed   :  { %3019 = vst.msk [vmem:[%s8819_s1 + $0xe9] sm:$0x80] %vm3_vm0, %v414_v29   ;;  %v1249_v11 = vpop.permute.xlu2 %1248   ;;  %v3954_v29 = vld [vmem:[%s8818_s0 + $0x58] sm:$0xff]  }
  0xee   :  { %3030 = vst.msk [vmem:[%s8819_s1 + $0x210] sm:$0x1] %vm3_vm0, %v456_v30  }
  0xef   :  { %3031 = vst.msk [vmem:[%s8819_s1 + $0x22f] sm:$0x2] %vm3_vm0, %v456_v30  }
  0xf0   :  { %3032 = vst.msk [vmem:[%s8819_s1 + $0x24e] sm:$0x4] %vm3_vm0, %v456_v30  }
  0xf1   :  { %3033 = vst.msk [vmem:[%s8819_s1 + $0x26d] sm:$0x8] %vm3_vm0, %v456_v30  }
  0xf2   :  { %3034 = vst.msk [vmem:[%s8819_s1 + $0x28c] sm:$0x10] %vm3_vm0, %v456_v30   ;;  %1958 = vrot.lane.b32.xlu0 %v5445_v52, %s4095_s19  ;;  %1979 = vrot.lane.b32.xlu1 %v5780_v2, %s4095_s19 }
  0xf3   :  { %3035 = vst.msk [vmem:[%s8819_s1 + $0x2ab] sm:$0x20] %vm3_vm0, %v456_v30   ;;  %2000 = vrot.lane.b32.xlu2 %v5450_v53, %s4096_s7 }
  0xf4   :  { %3036 = vst.msk [vmem:[%s8819_s1 + $0x2ca] sm:$0x40] %vm3_vm0, %v456_v30   ;;  %v1082_v1 = vpop.permute.xlu0 %1081   ;;  %v1103_v4 = vpop.permute.xlu1 %1102  }
  0xf5   :  { %3037 = vst.msk [vmem:[%s8819_s1 + $0x2e9] sm:$0x80] %vm3_vm0, %v456_v30   ;;  %v1312_v14 = vpop.permute.xlu2 %1311  }
  0xf6   :  { %3047 = vst.msk [vmem:[%s8819_s1 + $0x2] sm:$0x1] %vm3_vm0, %v497_v31  }
  0xf7   :  { %3048 = vst.msk [vmem:[%s8819_s1 + $0x21] sm:$0x2] %vm3_vm0, %v497_v31  }
  0xf8   :  { %3049 = vst.msk [vmem:[%s8819_s1 + $0x40] sm:$0x4] %vm3_vm0, %v497_v31  }
  0xf9   :  { %3050 = vst.msk [vmem:[%s8819_s1 + $0x5f] sm:$0x8] %vm3_vm0, %v497_v31  }
  0xfa   :  { %3051 = vst.msk [vmem:[%s8819_s1 + $0x7e] sm:$0x10] %vm3_vm0, %v497_v31   ;;  %2021 = vrot.lane.b32.xlu0 %v5557_v57, %s4096_s7  ;;  %2042 = vrot.lane.b32.xlu1 %v5887_v6, %s4096_s7 }
  0xfb   :  { %3052 = vst.msk [vmem:[%s8819_s1 + $0x9d] sm:$0x20] %vm3_vm0, %v497_v31   ;;  %2063 = vrot.lane.b32.xlu2 %v5562_v58, %s4096_s7 }
  0xfc   :  { %3053 = vst.msk [vmem:[%s8819_s1 + $0xbc] sm:$0x40] %vm3_vm0, %v497_v31   ;;  %v1145_v5 = vpop.permute.xlu0 %1144   ;;  %v1166_v8 = vpop.permute.xlu1 %1165  }
  0xfd   :  { %3054 = vst.msk [vmem:[%s8819_s1 + $0xdb] sm:$0x80] %vm3_vm0, %v497_v31   ;;  %v1375_v17 = vpop.permute.xlu2 %1374   ;;  %v2546_v31 = vsel %vm2503_vm1, %v3918_v28, %v5557_v57 }
  0xfe   :  { %3039 = vst.msk [vmem:[%s8819_s1 + $0x310] sm:$0x1] %vm3_vm0, %v477_v32  }
  0xff   :  { %3040 = vst.msk [vmem:[%s8819_s1 + $0x32f] sm:$0x2] %vm3_vm0, %v477_v32  }
 0x100   :  { %3041 = vst.msk [vmem:[%s8819_s1 + $0x34e] sm:$0x4] %vm3_vm0, %v477_v32  }
 0x101   :  { %3042 = vst.msk [vmem:[%s8819_s1 + $0x36d] sm:$0x8] %vm3_vm0, %v477_v32  }
 0x102   :  { %3043 = vst.msk [vmem:[%s8819_s1 + $0x38c] sm:$0x10] %vm3_vm0, %v477_v32   ;;  %2083 = vrot.lane.b32.xlu0 %v5673_v62, %s4097_s10  ;;  %2104 = vrot.lane.b32.xlu1 %v5994_v10, %s4097_s10 }
 0x103   :  { %3044 = vst.msk [vmem:[%s8819_s1 + $0x3ab] sm:$0x20] %vm3_vm0, %v477_v32   ;;  %2125 = vrot.lane.b32.xlu2 %v5445_v52, %s4097_s10 }
 0x104   :  { %3045 = vst.msk [vmem:[%s8819_s1 + $0x3ca] sm:$0x40] %vm3_vm0, %v477_v32   ;;  %v1208_v9 = vpop.permute.xlu0 %1207   ;;  %v1229_v12 = vpop.permute.xlu1 %1228  }
 0x105   :  { %3046 = vst.msk [vmem:[%s8819_s1 + $0x3e9] sm:$0x80] %vm3_vm0, %v477_v32   ;;  %v1437_v20 = vpop.permute.xlu2 %1436   ;;  %v2630_v32 = vsel %vm2503_vm1, %v3954_v29, %v5562_v58  ;;  %v2_v29 = vld [vmem:[%s8818_s0] sm:$0xff]  }
 0x106   :  { %3056 = vst.msk [vmem:[%s8819_s1 + $0x102] sm:$0x1] %vm3_vm0, %v518_v33  }
 0x107   :  { %3057 = vst.msk [vmem:[%s8819_s1 + $0x121] sm:$0x2] %vm3_vm0, %v518_v33  }
 0x108   :  { %3058 = vst.msk [vmem:[%s8819_s1 + $0x140] sm:$0x4] %vm3_vm0, %v518_v33  }
 0x109   :  { %3059 = vst.msk [vmem:[%s8819_s1 + $0x15f] sm:$0x8] %vm3_vm0, %v518_v33  }
 0x10a   :  { %3060 = vst.msk [vmem:[%s8819_s1 + $0x17e] sm:$0x10] %vm3_vm0, %v518_v33   ;;  %2146 = vrot.lane.b32.xlu0 %v5780_v2, %s4097_s10  ;;  %2167 = vrot.lane.b32.xlu1 %v5450_v53, %s4098_s29 }
 0x10b   :  { %3061 = vst.msk [vmem:[%s8819_s1 + $0x19d] sm:$0x20] %vm3_vm0, %v518_v33   ;;  %2188 = vrot.lane.b32.xlu2 %v5557_v57, %s4098_s29 }
 0x10c   :  { %3062 = vst.msk [vmem:[%s8819_s1 + $0x1bc] sm:$0x40] %vm3_vm0, %v518_v33   ;;  %v1270_v13 = vpop.permute.xlu0 %1269   ;;  %v1291_v15 = vpop.permute.xlu1 %1290  }
 0x10d   :  { %3063 = vst.msk [vmem:[%s8819_s1 + $0x1db] sm:$0x80] %vm3_vm0, %v518_v33   ;;  %v1500_v24 = vpop.permute.xlu2 %1499  }
 0x10e   :  { %3074 = vst.msk [vmem:[%s8819_s1 + $0x302] sm:$0x1] %vm3_vm0, %v560_v34  }
 0x10f   :  { %3075 = vst.msk [vmem:[%s8819_s1 + $0x321] sm:$0x2] %vm3_vm0, %v560_v34  }
 0x110   :  { %3076 = vst.msk [vmem:[%s8819_s1 + $0x340] sm:$0x4] %vm3_vm0, %v560_v34  }
 0x111   :  { %3077 = vst.msk [vmem:[%s8819_s1 + $0x35f] sm:$0x8] %vm3_vm0, %v560_v34  }
 0x112   :  { %3078 = vst.msk [vmem:[%s8819_s1 + $0x37e] sm:$0x10] %vm3_vm0, %v560_v34   ;;  %2209 = vrot.lane.b32.xlu0 %v5887_v6, %s4098_s29  ;;  %2230 = vrot.lane.b32.xlu1 %v5562_v58, %s4098_s29 }
 0x113   :  { %3079 = vst.msk [vmem:[%s8819_s1 + $0x39d] sm:$0x20] %vm3_vm0, %v560_v34   ;;  %2250 = vrot.lane.b32.xlu2 %v5673_v62, %s4099_s17 }
 0x114   :  { %3080 = vst.msk [vmem:[%s8819_s1 + $0x3bc] sm:$0x40] %vm3_vm0, %v560_v34   ;;  %v1333_v16 = vpop.permute.xlu0 %1332   ;;  %v1354_v18 = vpop.permute.xlu1 %1353  }
 0x115   :  { %3081 = vst.msk [vmem:[%s8819_s1 + $0x3db] sm:$0x80] %vm3_vm0, %v560_v34   ;;  %v1563_v30 = vpop.permute.xlu2 %1562  }
 0x116   :  { %3065 = vst.msk [vmem:[%s8819_s1 + $0x202] sm:$0x1] %vm3_vm0, %v539_v35  }
 0x117   :  { %3066 = vst.msk [vmem:[%s8819_s1 + $0x221] sm:$0x2] %vm3_vm0, %v539_v35  }
 0x118   :  { %3067 = vst.msk [vmem:[%s8819_s1 + $0x240] sm:$0x4] %vm3_vm0, %v539_v35  }
 0x119   :  { %3068 = vst.msk [vmem:[%s8819_s1 + $0x25f] sm:$0x8] %vm3_vm0, %v539_v35  }
 0x11a   :  { %3069 = vst.msk [vmem:[%s8819_s1 + $0x27e] sm:$0x10] %vm3_vm0, %v539_v35   ;;  %2271 = vrot.lane.b32.xlu0 %v5994_v10, %s4099_s17  ;;  %2292 = vrot.lane.b32.xlu1 %v5445_v52, %s4099_s17 }
 0x11b   :  { %3070 = vst.msk [vmem:[%s8819_s1 + $0x29d] sm:$0x20] %vm3_vm0, %v539_v35   ;;  %2313 = vrot.lane.b32.xlu2 %v5780_v2, %s4099_s17 }
 0x11c   :  { %3071 = vst.msk [vmem:[%s8819_s1 + $0x2bc] sm:$0x40] %vm3_vm0, %v539_v35   ;;  %v1396_v19 = vpop.permute.xlu0 %1395   ;;  %v1416_v21 = vpop.permute.xlu1 %1415  }
 0x11d   :  { %3072 = vst.msk [vmem:[%s8819_s1 + $0x2db] sm:$0x80] %vm3_vm0, %v539_v35   ;;  %v1625_v35 = vpop.permute.xlu2 %1624  }
 0x11e   :  { %3083 = vst.msk [vmem:[%s8819_s1 + $0x1f] sm:$0x1] %vm3_vm0, %v581_v36  }
 0x11f   :  { %3084 = vst.msk [vmem:[%s8819_s1 + $0x3e] sm:$0x2] %vm3_vm0, %v581_v36  }
 0x120   :  { %3085 = vst.msk [vmem:[%s8819_s1 + $0x5d] sm:$0x4] %vm3_vm0, %v581_v36  }
 0x121   :  { %3086 = vst.msk [vmem:[%s8819_s1 + $0x7c] sm:$0x8] %vm3_vm0, %v581_v36  }
 0x122   :  { %3087 = vst.msk [vmem:[%s8819_s1 + $0x9b] sm:$0x10] %vm3_vm0, %v581_v36   ;;  %2334 = vrot.lane.b32.xlu0 %v5450_v53, %s4100_s22  ;;  %2355 = vrot.lane.b32.xlu1 %v5557_v57, %s4100_s22 }
 0x123   :  { %3088 = vst.msk [vmem:[%s8819_s1 + $0xba] sm:$0x20] %vm3_vm0, %v581_v36   ;;  %2376 = vrot.lane.b32.xlu2 %v5887_v6, %s4100_s22 }
 0x124   :  { %3089 = vst.msk [vmem:[%s8819_s1 + $0xd9] sm:$0x40] %vm3_vm0, %v581_v36   ;;  %v1458_v22 = vpop.permute.xlu0 %1457   ;;  %v1479_v26 = vpop.permute.xlu1 %1478  }
 0x125   :  { %3090 = vst.msk [vmem:[%s8819_s1 + $0xf8] sm:$0x80] %vm3_vm0, %v581_v36   ;;  %v2671_v36 = vsel %vm2670_vm2, %v5450_v53, %v5673_v62 }
 0x126   :  { %3101 = vst.msk [vmem:[%s8819_s1 + $0x21f] sm:$0x1] %vm3_vm0, %v623_v37  }
 0x127   :  { %3102 = vst.msk [vmem:[%s8819_s1 + $0x23e] sm:$0x2] %vm3_vm0, %v623_v37  }
 0x128   :  { %3103 = vst.msk [vmem:[%s8819_s1 + $0x25d] sm:$0x4] %vm3_vm0, %v623_v37  }
 0x129   :  { %3104 = vst.msk [vmem:[%s8819_s1 + $0x27c] sm:$0x8] %vm3_vm0, %v623_v37  }
 0x12a   :  { %3105 = vst.msk [vmem:[%s8819_s1 + $0x29b] sm:$0x10] %vm3_vm0, %v623_v37   ;;  %2505 = vrot.lane.b32.xlu0 %v2504_v25, %s4101_s8  ;;  %2547 = vrot.lane.b32.xlu1 %v2546_v31, %s4101_s8  ;;  %v2859_v31 = vld [vmem:[%s8818_s0 + $0x48] sm:$0xff]  }
 0x12b   :  { %3106 = vst.msk [vmem:[%s8819_s1 + $0x2ba] sm:$0x20] %vm3_vm0, %v623_v37  }
 0x12c   :  { %3107 = vst.msk [vmem:[%s8819_s1 + $0x2d9] sm:$0x40] %vm3_vm0, %v623_v37   ;;  %v1521_v27 = vpop.permute.xlu0 %1520   ;;  %v1542_v33 = vpop.permute.xlu1 %1541  }
 0x12d   :  { %3108 = vst.msk [vmem:[%s8819_s1 + $0x2f8] sm:$0x80] %vm3_vm0, %v623_v37   ;;  %v2755_v37 = vsel %vm2670_vm2, %v5887_v6, %v5445_v52 }
 0x12e   :  { %3092 = vst.msk [vmem:[%s8819_s1 + $0x11f] sm:$0x1] %vm3_vm0, %v602_v38  }
 0x12f   :  { %3093 = vst.msk [vmem:[%s8819_s1 + $0x13e] sm:$0x2] %vm3_vm0, %v602_v38  }
 0x130   :  { %3094 = vst.msk [vmem:[%s8819_s1 + $0x15d] sm:$0x4] %vm3_vm0, %v602_v38  }
 0x131   :  { %3095 = vst.msk [vmem:[%s8819_s1 + $0x17c] sm:$0x8] %vm3_vm0, %v602_v38  }
 0x132   :  { %3096 = vst.msk [vmem:[%s8819_s1 + $0x19b] sm:$0x10] %vm3_vm0, %v602_v38   ;;  %2631 = vrot.lane.b32.xlu0 %v2630_v32, %s4101_s8  ;;  %2672 = vrot.lane.b32.xlu1 %v2671_v36, %s4102_s23 }
 0x133   :  { %3097 = vst.msk [vmem:[%s8819_s1 + $0x1ba] sm:$0x20] %vm3_vm0, %v602_v38  }
 0x134   :  { %3098 = vst.msk [vmem:[%s8819_s1 + $0x1d9] sm:$0x40] %vm3_vm0, %v602_v38   ;;  %v1583_v34 = vpop.permute.xlu0 %1582  }
 0x135   :  { %3099 = vst.msk [vmem:[%s8819_s1 + $0x1f8] sm:$0x80] %vm3_vm0, %v602_v38   ;;  %v1604_v38 = vpop.permute.xlu1 %1603  }
 0x136   :  { %3110 = vst.msk [vmem:[%s8819_s1 + $0x31f] sm:$0x1] %vm3_vm0, %v644_v39  }
 0x137   :  { %3111 = vst.msk [vmem:[%s8819_s1 + $0x33e] sm:$0x2] %vm3_vm0, %v644_v39  }
 0x138   :  { %3112 = vst.msk [vmem:[%s8819_s1 + $0x35d] sm:$0x4] %vm3_vm0, %v644_v39  }
 0x139   :  { %3113 = vst.msk [vmem:[%s8819_s1 + $0x37c] sm:$0x8] %vm3_vm0, %v644_v39  }
 0x13a   :  { %3114 = vst.msk [vmem:[%s8819_s1 + $0x39b] sm:$0x10] %vm3_vm0, %v644_v39   ;;  %2756 = vrot.lane.b32.xlu0 %v2755_v37, %s4102_s23 }
 0x13b   :  { %3115 = vst.msk [vmem:[%s8819_s1 + $0x3ba] sm:$0x20] %vm3_vm0, %v644_v39  }
 0x13c   :  { %3116 = vst.msk [vmem:[%s8819_s1 + $0x3d9] sm:$0x40] %vm3_vm0, %v644_v39  }
 0x13d   :  { %3117 = vst.msk [vmem:[%s8819_s1 + $0x3f8] sm:$0x80] %vm3_vm0, %v644_v39   ;;  %v1646_v39 = vpop.permute.xlu0 %1645  }
 0x13e   :  { %3128 = vst.msk [vmem:[%s8819_s1 + $0x111] sm:$0x1] %vm3_vm0, %v686_v40  }
 0x13f   :  { %3129 = vst.msk [vmem:[%s8819_s1 + $0x130] sm:$0x2] %vm3_vm0, %v686_v40  }
 0x140   :  { %3130 = vst.msk [vmem:[%s8819_s1 + $0x14f] sm:$0x4] %vm3_vm0, %v686_v40  }
 0x141   :  { %3131 = vst.msk [vmem:[%s8819_s1 + $0x16e] sm:$0x8] %vm3_vm0, %v686_v40  }
 0x142   :  { %3132 = vst.msk [vmem:[%s8819_s1 + $0x18d] sm:$0x10] %vm3_vm0, %v686_v40   ;;  %2417 = vrot.lane.b32.xlu0 %v5673_v62, %s4103_s18 }
 0x143   :  { %3133 = vst.msk [vmem:[%s8819_s1 + $0x1ac] sm:$0x20] %vm3_vm0, %v686_v40  }
 0x144   :  { %3134 = vst.msk [vmem:[%s8819_s1 + $0x1cb] sm:$0x40] %vm3_vm0, %v686_v40  }
 0x145   :  { %3135 = vst.msk [vmem:[%s8819_s1 + $0x1ea] sm:$0x80] %vm3_vm0, %v686_v40   ;;  %v2797_v40 = vsel %vm2670_vm2, %v5562_v58, %v5780_v2 }
 0x146   :  { %3119 = vst.msk [vmem:[%s8819_s1 + $0x11] sm:$0x1] %vm3_vm0, %v665_v41   ;;  %2798 = vrot.lane.b32.xlu1 %v2797_v40, %s4102_s23 }
 0x147   :  { %3120 = vst.msk [vmem:[%s8819_s1 + $0x30] sm:$0x2] %vm3_vm0, %v665_v41  }
 0x148   :  { %3121 = vst.msk [vmem:[%s8819_s1 + $0x4f] sm:$0x4] %vm3_vm0, %v665_v41  }
 0x149   :  { %3122 = vst.msk [vmem:[%s8819_s1 + $0x6e] sm:$0x8] %vm3_vm0, %v665_v41  }
 0x14a   :  { %3123 = vst.msk [vmem:[%s8819_s1 + $0x8d] sm:$0x10] %vm3_vm0, %v665_v41   ;;  %2480 = vrot.lane.b32.xlu0 %v5780_v2, %s4103_s18 }
 0x14b   :  { %3124 = vst.msk [vmem:[%s8819_s1 + $0xac] sm:$0x20] %vm3_vm0, %v665_v41  }
 0x14c   :  { %3125 = vst.msk [vmem:[%s8819_s1 + $0xcb] sm:$0x40] %vm3_vm0, %v665_v41  }
 0x14d   :  { %3126 = vst.msk [vmem:[%s8819_s1 + $0xea] sm:$0x80] %vm3_vm0, %v665_v41   ;;  %v1688_v41 = vpop.permute.xlu2 %1687  }
 0x14e   :  { %3137 = vst.msk [vmem:[%s8819_s1 + $0x211] sm:$0x1] %vm3_vm0, %v707_v42   ;;  %2438 = vrot.lane.b32.xlu1 %v5994_v10, %s4103_s18 }
 0x14f   :  { %3138 = vst.msk [vmem:[%s8819_s1 + $0x230] sm:$0x2] %vm3_vm0, %v707_v42  }
 0x150   :  { %3139 = vst.msk [vmem:[%s8819_s1 + $0x24f] sm:$0x4] %vm3_vm0, %v707_v42  }
 0x151   :  { %3140 = vst.msk [vmem:[%s8819_s1 + $0x26e] sm:$0x8] %vm3_vm0, %v707_v42  }
 0x152   :  { %3141 = vst.msk [vmem:[%s8819_s1 + $0x28d] sm:$0x10] %vm3_vm0, %v707_v42  }
 0x153   :  { %3142 = vst.msk [vmem:[%s8819_s1 + $0x2ac] sm:$0x20] %vm3_vm0, %v707_v42  }
 0x154   :  { %3143 = vst.msk [vmem:[%s8819_s1 + $0x2cb] sm:$0x40] %vm3_vm0, %v707_v42  }
 0x155   :  { %3144 = vst.msk [vmem:[%s8819_s1 + $0x2ea] sm:$0x80] %vm3_vm0, %v707_v42   ;;  %v1667_v42 = vpop.permute.xlu1 %1666  }
 0x156   :  { %3154 = vst.msk [vmem:[%s8819_s1 + $0x3] sm:$0x1] %vm3_vm0, %v748_v43  }
 0x157   :  { %3155 = vst.msk [vmem:[%s8819_s1 + $0x22] sm:$0x2] %vm3_vm0, %v748_v43  }
 0x158   :  { %3156 = vst.msk [vmem:[%s8819_s1 + $0x41] sm:$0x4] %vm3_vm0, %v748_v43  }
 0x159   :  { %3157 = vst.msk [vmem:[%s8819_s1 + $0x60] sm:$0x8] %vm3_vm0, %v748_v43  }
 0x15a   :  { %3158 = vst.msk [vmem:[%s8819_s1 + $0x7f] sm:$0x10] %vm3_vm0, %v748_v43  }
 0x15b   :  { %3159 = vst.msk [vmem:[%s8819_s1 + $0x9e] sm:$0x20] %vm3_vm0, %v748_v43  }
 0x15c   :  { %3160 = vst.msk [vmem:[%s8819_s1 + $0xbd] sm:$0x40] %vm3_vm0, %v748_v43  }
 0x15d   :  { %3161 = vst.msk [vmem:[%s8819_s1 + $0xdc] sm:$0x80] %vm3_vm0, %v748_v43   ;;  %v1709_v43 = vpop.permute.xlu0 %1708  }
 0x15e   :  { %3146 = vst.msk [vmem:[%s8819_s1 + $0x311] sm:$0x1] %vm3_vm0, %v728_v44  }
 0x15f   :  { %3147 = vst.msk [vmem:[%s8819_s1 + $0x330] sm:$0x2] %vm3_vm0, %v728_v44  }
 0x160   :  { %3148 = vst.msk [vmem:[%s8819_s1 + $0x34f] sm:$0x4] %vm3_vm0, %v728_v44  }
 0x161   :  { %3149 = vst.msk [vmem:[%s8819_s1 + $0x36e] sm:$0x8] %vm3_vm0, %v728_v44  }
 0x162   :  { %3150 = vst.msk [vmem:[%s8819_s1 + $0x38d] sm:$0x10] %vm3_vm0, %v728_v44  }
 0x163   :  { %3151 = vst.msk [vmem:[%s8819_s1 + $0x3ac] sm:$0x20] %vm3_vm0, %v728_v44  }
 0x164   :  { %3152 = vst.msk [vmem:[%s8819_s1 + $0x3cb] sm:$0x40] %vm3_vm0, %v728_v44  }
 0x165   :  { %3153 = vst.msk [vmem:[%s8819_s1 + $0x3ea] sm:$0x80] %vm3_vm0, %v728_v44   ;;  %v3936_v44 = vld [vmem:[%s8818_s0 + $0x40] sm:$0xff]  }
 0x166   :  { %3163 = vst.msk [vmem:[%s8819_s1 + $0x103] sm:$0x1] %vm3_vm0, %v769_v45  }
 0x167   :  { %3164 = vst.msk [vmem:[%s8819_s1 + $0x122] sm:$0x2] %vm3_vm0, %v769_v45  }
 0x168   :  { %3165 = vst.msk [vmem:[%s8819_s1 + $0x141] sm:$0x4] %vm3_vm0, %v769_v45  }
 0x169   :  { %3166 = vst.msk [vmem:[%s8819_s1 + $0x160] sm:$0x8] %vm3_vm0, %v769_v45  }
 0x16a   :  { %3167 = vst.msk [vmem:[%s8819_s1 + $0x17f] sm:$0x10] %vm3_vm0, %v769_v45  }
 0x16b   :  { %3168 = vst.msk [vmem:[%s8819_s1 + $0x19e] sm:$0x20] %vm3_vm0, %v769_v45  }
 0x16c   :  { %3169 = vst.msk [vmem:[%s8819_s1 + $0x1bd] sm:$0x40] %vm3_vm0, %v769_v45  }
 0x16d   :  { %3170 = vst.msk [vmem:[%s8819_s1 + $0x1dc] sm:$0x80] %vm3_vm0, %v769_v45   ;;  %v1750_v45 = vpop.permute.xlu2 %1749  }
 0x16e   :  { %3181 = vst.msk [vmem:[%s8819_s1 + $0x303] sm:$0x1] %vm3_vm0, %v811_v46  }
 0x16f   :  { %3182 = vst.msk [vmem:[%s8819_s1 + $0x322] sm:$0x2] %vm3_vm0, %v811_v46  }
 0x170   :  { %3183 = vst.msk [vmem:[%s8819_s1 + $0x341] sm:$0x4] %vm3_vm0, %v811_v46  }
 0x171   :  { %3184 = vst.msk [vmem:[%s8819_s1 + $0x360] sm:$0x8] %vm3_vm0, %v811_v46  }
 0x172   :  { %3185 = vst.msk [vmem:[%s8819_s1 + $0x37f] sm:$0x10] %vm3_vm0, %v811_v46  }
 0x173   :  { %3186 = vst.msk [vmem:[%s8819_s1 + $0x39e] sm:$0x20] %vm3_vm0, %v811_v46  }
 0x174   :  { %3187 = vst.msk [vmem:[%s8819_s1 + $0x3bd] sm:$0x40] %vm3_vm0, %v811_v46  }
 0x175   :  { %3188 = vst.msk [vmem:[%s8819_s1 + $0x3dc] sm:$0x80] %vm3_vm0, %v811_v46   ;;  %v2588_v46 = vsel %vm2503_vm1, %v3936_v44, %v5887_v6 }
 0x176   :  { %3172 = vst.msk [vmem:[%s8819_s1 + $0x203] sm:$0x1] %vm3_vm0, %v790_v47   ;;  %2589 = vrot.lane.b32.xlu2 %v2588_v46, %s4101_s8 }
 0x177   :  { %3173 = vst.msk [vmem:[%s8819_s1 + $0x222] sm:$0x2] %vm3_vm0, %v790_v47  }
 0x178   :  { %3174 = vst.msk [vmem:[%s8819_s1 + $0x241] sm:$0x4] %vm3_vm0, %v790_v47  }
 0x179   :  { %3175 = vst.msk [vmem:[%s8819_s1 + $0x260] sm:$0x8] %vm3_vm0, %v790_v47  }
 0x17a   :  { %3176 = vst.msk [vmem:[%s8819_s1 + $0x27f] sm:$0x10] %vm3_vm0, %v790_v47  }
 0x17b   :  { %3177 = vst.msk [vmem:[%s8819_s1 + $0x29e] sm:$0x20] %vm3_vm0, %v790_v47  }
 0x17c   :  { %3178 = vst.msk [vmem:[%s8819_s1 + $0x2bd] sm:$0x40] %vm3_vm0, %v790_v47  }
 0x17d   :  { %3179 = vst.msk [vmem:[%s8819_s1 + $0x2dc] sm:$0x80] %vm3_vm0, %v790_v47   ;;  %v1730_v47 = vpop.permute.xlu1 %1729  }
 0x17e   :  { %3190 = vst.msk [vmem:[%s8819_s1 + $0x12] sm:$0x1] %vm3_vm0, %v832_v48  }
 0x17f   :  { %3191 = vst.msk [vmem:[%s8819_s1 + $0x31] sm:$0x2] %vm3_vm0, %v832_v48  }
 0x180   :  { %3192 = vst.msk [vmem:[%s8819_s1 + $0x50] sm:$0x4] %vm3_vm0, %v832_v48  }
 0x181   :  { %3193 = vst.msk [vmem:[%s8819_s1 + $0x6f] sm:$0x8] %vm3_vm0, %v832_v48  }
 0x182   :  { %3194 = vst.msk [vmem:[%s8819_s1 + $0x8e] sm:$0x10] %vm3_vm0, %v832_v48  }
 0x183   :  { %3195 = vst.msk [vmem:[%s8819_s1 + $0xad] sm:$0x20] %vm3_vm0, %v832_v48  }
 0x184   :  { %3196 = vst.msk [vmem:[%s8819_s1 + $0xcc] sm:$0x40] %vm3_vm0, %v832_v48  }
 0x185   :  { %3197 = vst.msk [vmem:[%s8819_s1 + $0xeb] sm:$0x80] %vm3_vm0, %v832_v48   ;;  %v1771_v48 = vpop.permute.xlu0 %1770  }
 0x186   :  { %3208 = vst.msk [vmem:[%s8819_s1 + $0x212] sm:$0x1] %vm3_vm0, %v874_v49  }
 0x187   :  { %3209 = vst.msk [vmem:[%s8819_s1 + $0x231] sm:$0x2] %vm3_vm0, %v874_v49  }
 0x188   :  { %3210 = vst.msk [vmem:[%s8819_s1 + $0x250] sm:$0x4] %vm3_vm0, %v874_v49  }
 0x189   :  { %3211 = vst.msk [vmem:[%s8819_s1 + $0x26f] sm:$0x8] %vm3_vm0, %v874_v49  }
 0x18a   :  { %3212 = vst.msk [vmem:[%s8819_s1 + $0x28e] sm:$0x10] %vm3_vm0, %v874_v49  }
 0x18b   :  { %3213 = vst.msk [vmem:[%s8819_s1 + $0x2ad] sm:$0x20] %vm3_vm0, %v874_v49  }
 0x18c   :  { %3214 = vst.msk [vmem:[%s8819_s1 + $0x2cc] sm:$0x40] %vm3_vm0, %v874_v49  }
 0x18d   :  { %3215 = vst.msk [vmem:[%s8819_s1 + $0x2eb] sm:$0x80] %vm3_vm0, %v874_v49   ;;  %v2713_v49 = vsel %vm2670_vm2, %v5557_v57, %v5994_v10  ;;  %v1834_v52 = vpop.permute.xlu0 %1833  }
 0x18e   :  { %3199 = vst.msk [vmem:[%s8819_s1 + $0x112] sm:$0x1] %vm3_vm0, %v853_v50   ;;  %2714 = vrot.lane.b32.xlu2 %v2713_v49, %s4102_s23 }
 0x18f   :  { %3200 = vst.msk [vmem:[%s8819_s1 + $0x131] sm:$0x2] %vm3_vm0, %v853_v50  }
 0x190   :  { %3201 = vst.msk [vmem:[%s8819_s1 + $0x150] sm:$0x4] %vm3_vm0, %v853_v50  }
 0x191   :  { %3202 = vst.msk [vmem:[%s8819_s1 + $0x16f] sm:$0x8] %vm3_vm0, %v853_v50  }
 0x192   :  { %3203 = vst.msk [vmem:[%s8819_s1 + $0x18e] sm:$0x10] %vm3_vm0, %v853_v50  }
 0x193   :  { %3204 = vst.msk [vmem:[%s8819_s1 + $0x1ad] sm:$0x20] %vm3_vm0, %v853_v50  }
 0x194   :  { %3205 = vst.msk [vmem:[%s8819_s1 + $0x1cc] sm:$0x40] %vm3_vm0, %v853_v50  }
 0x195   :  { %3206 = vst.msk [vmem:[%s8819_s1 + $0x1eb] sm:$0x80] %vm3_vm0, %v853_v50   ;;  %v1813_v50 = vpop.permute.xlu2 %1812  }
 0x196   :  { %3217 = vst.msk [vmem:[%s8819_s1 + $0x312] sm:$0x1] %vm3_vm0, %v895_v51   ;;  %2397 = vrot.lane.b32.xlu2 %v5562_v58, %s4100_s22 }
 0x197   :  { %3218 = vst.msk [vmem:[%s8819_s1 + $0x331] sm:$0x2] %vm3_vm0, %v895_v51  }
 0x198   :  { %3219 = vst.msk [vmem:[%s8819_s1 + $0x350] sm:$0x4] %vm3_vm0, %v895_v51  }
 0x199   :  { %3220 = vst.msk [vmem:[%s8819_s1 + $0x36f] sm:$0x8] %vm3_vm0, %v895_v51  }
 0x19a   :  { %3221 = vst.msk [vmem:[%s8819_s1 + $0x38e] sm:$0x10] %vm3_vm0, %v895_v51  }
 0x19b   :  { %3222 = vst.msk [vmem:[%s8819_s1 + $0x3ad] sm:$0x20] %vm3_vm0, %v895_v51  }
 0x19c   :  { %3223 = vst.msk [vmem:[%s8819_s1 + $0x3cc] sm:$0x40] %vm3_vm0, %v895_v51  }
 0x19d   :  { %3224 = vst.msk [vmem:[%s8819_s1 + $0x3eb] sm:$0x80] %vm3_vm0, %v895_v51   ;;  %v1792_v51 = vpop.permute.xlu1 %1791   ;;  %v1876_v53 = vpop.permute.xlu2 %1875  }
 0x19e   :  { %3234 = vst.msk [vmem:[%s8819_s1 + $0x104] sm:$0x1] %vm3_vm0, %v936_v54  }
 0x19f   :  { %3235 = vst.msk [vmem:[%s8819_s1 + $0x123] sm:$0x2] %vm3_vm0, %v936_v54  }
 0x1a0   :  { %3236 = vst.msk [vmem:[%s8819_s1 + $0x142] sm:$0x4] %vm3_vm0, %v936_v54  }
 0x1a1   :  { %3237 = vst.msk [vmem:[%s8819_s1 + $0x161] sm:$0x8] %vm3_vm0, %v936_v54  }
 0x1a2   :  { %3238 = vst.msk [vmem:[%s8819_s1 + $0x180] sm:$0x10] %vm3_vm0, %v936_v54  }
 0x1a3   :  { %3239 = vst.msk [vmem:[%s8819_s1 + $0x19f] sm:$0x20] %vm3_vm0, %v936_v54  }
 0x1a4   :  { %3240 = vst.msk [vmem:[%s8819_s1 + $0x1be] sm:$0x40] %vm3_vm0, %v936_v54  }
 0x1a5   :  { %3241 = vst.msk [vmem:[%s8819_s1 + $0x1dd] sm:$0x80] %vm3_vm0, %v936_v54   ;;  %v1855_v54 = vpop.permute.xlu1 %1854   ;;  %v1938_v57 = vpop.permute.xlu2 %1937  }
 0x1a6   :  { %3225 = vst.msk [vmem:[%s8819_s1 + $0x4] sm:$0x1] %vm3_vm0, %v915_v55  }
 0x1a7   :  { %3226 = vst.msk [vmem:[%s8819_s1 + $0x23] sm:$0x2] %vm3_vm0, %v915_v55  }
 0x1a8   :  { %3227 = vst.msk [vmem:[%s8819_s1 + $0x42] sm:$0x4] %vm3_vm0, %v915_v55  }
 0x1a9   :  { %3228 = vst.msk [vmem:[%s8819_s1 + $0x61] sm:$0x8] %vm3_vm0, %v915_v55  }
 0x1aa   :  { %3229 = vst.msk [vmem:[%s8819_s1 + $0x80] sm:$0x10] %vm3_vm0, %v915_v55  }
 0x1ab   :  { %3230 = vst.msk [vmem:[%s8819_s1 + $0x9f] sm:$0x20] %vm3_vm0, %v915_v55  }
 0x1ac   :  { %3231 = vst.msk [vmem:[%s8819_s1 + $0xbe] sm:$0x40] %vm3_vm0, %v915_v55  }
 0x1ad   :  { %3232 = vst.msk [vmem:[%s8819_s1 + $0xdd] sm:$0x80] %vm3_vm0, %v915_v55   ;;  %v1897_v55 = vpop.permute.xlu0 %1896   ;;  %v1917_v58 = vpop.permute.xlu1 %1916  }
 0x1ae   :  { %3243 = vst.msk [vmem:[%s8819_s1 + $0x204] sm:$0x1] %vm3_vm0, %v957_v56  }
 0x1af   :  { %3244 = vst.msk [vmem:[%s8819_s1 + $0x223] sm:$0x2] %vm3_vm0, %v957_v56  }
 0x1b0   :  { %3245 = vst.msk [vmem:[%s8819_s1 + $0x242] sm:$0x4] %vm3_vm0, %v957_v56  }
 0x1b1   :  { %3246 = vst.msk [vmem:[%s8819_s1 + $0x261] sm:$0x8] %vm3_vm0, %v957_v56  }
 0x1b2   :  { %3247 = vst.msk [vmem:[%s8819_s1 + $0x280] sm:$0x10] %vm3_vm0, %v957_v56  }
 0x1b3   :  { %3248 = vst.msk [vmem:[%s8819_s1 + $0x29f] sm:$0x20] %vm3_vm0, %v957_v56  }
 0x1b4   :  { %3249 = vst.msk [vmem:[%s8819_s1 + $0x2be] sm:$0x40] %vm3_vm0, %v957_v56  }
 0x1b5   :  { %3250 = vst.msk [vmem:[%s8819_s1 + $0x2dd] sm:$0x80] %vm3_vm0, %v957_v56   ;;  %v7133_v56 = vld [vmem:[%s8818_s0 + $0x30] sm:$0xff]  }
 0x1b6   :  { %3261 = vst.msk [vmem:[%s8819_s1 + $0x13] sm:$0x1] %vm3_vm0, %v999_v59   ;;  %2459 = vrot.lane.b32.xlu2 %v7133_v56, %s4103_s18 }
 0x1b7   :  { %3262 = vst.msk [vmem:[%s8819_s1 + $0x32] sm:$0x2] %vm3_vm0, %v999_v59  }
 0x1b8   :  { %3263 = vst.msk [vmem:[%s8819_s1 + $0x51] sm:$0x4] %vm3_vm0, %v999_v59  }
 0x1b9   :  { %3264 = vst.msk [vmem:[%s8819_s1 + $0x70] sm:$0x8] %vm3_vm0, %v999_v59  }
 0x1ba   :  { %3265 = vst.msk [vmem:[%s8819_s1 + $0x8f] sm:$0x10] %vm3_vm0, %v999_v59  }
 0x1bb   :  { %3266 = vst.msk [vmem:[%s8819_s1 + $0xae] sm:$0x20] %vm3_vm0, %v999_v59  }
 0x1bc   :  { %3267 = vst.msk [vmem:[%s8819_s1 + $0xcd] sm:$0x40] %vm3_vm0, %v999_v59  }
 0x1bd   :  { %3268 = vst.msk [vmem:[%s8819_s1 + $0xec] sm:$0x80] %vm3_vm0, %v999_v59   ;;  %v1959_v59 = vpop.permute.xlu0 %1958  }
 0x1be   :  { %3252 = vst.msk [vmem:[%s8819_s1 + $0x304] sm:$0x1] %vm3_vm0, %v978_v60  }
 0x1bf   :  { %3253 = vst.msk [vmem:[%s8819_s1 + $0x323] sm:$0x2] %vm3_vm0, %v978_v60  }
 0x1c0   :  { %3254 = vst.msk [vmem:[%s8819_s1 + $0x342] sm:$0x4] %vm3_vm0, %v978_v60  }
 0x1c1   :  { %3255 = vst.msk [vmem:[%s8819_s1 + $0x361] sm:$0x8] %vm3_vm0, %v978_v60  }
 0x1c2   :  { %3256 = vst.msk [vmem:[%s8819_s1 + $0x380] sm:$0x10] %vm3_vm0, %v978_v60  }
 0x1c3   :  { %3257 = vst.msk [vmem:[%s8819_s1 + $0x39f] sm:$0x20] %vm3_vm0, %v978_v60  }
 0x1c4   :  { %3258 = vst.msk [vmem:[%s8819_s1 + $0x3be] sm:$0x40] %vm3_vm0, %v978_v60  }
 0x1c5   :  { %3259 = vst.msk [vmem:[%s8819_s1 + $0x3dd] sm:$0x80] %vm3_vm0, %v978_v60   ;;  %v2001_v60 = vpop.permute.xlu2 %2000   ;;  %v2022_v62 = vpop.permute.xlu0 %2021  }
 0x1c6   :  { %3270 = vst.msk [vmem:[%s8819_s1 + $0x113] sm:$0x1] %vm3_vm0, %v1020_v61  }
 0x1c7   :  { %3271 = vst.msk [vmem:[%s8819_s1 + $0x132] sm:$0x2] %vm3_vm0, %v1020_v61  }
 0x1c8   :  { %3272 = vst.msk [vmem:[%s8819_s1 + $0x151] sm:$0x4] %vm3_vm0, %v1020_v61  }
 0x1c9   :  { %3273 = vst.msk [vmem:[%s8819_s1 + $0x170] sm:$0x8] %vm3_vm0, %v1020_v61  }
 0x1ca   :  { %3274 = vst.msk [vmem:[%s8819_s1 + $0x18f] sm:$0x10] %vm3_vm0, %v1020_v61  }
 0x1cb   :  { %3275 = vst.msk [vmem:[%s8819_s1 + $0x1ae] sm:$0x20] %vm3_vm0, %v1020_v61  }
 0x1cc   :  { %3276 = vst.msk [vmem:[%s8819_s1 + $0x1cd] sm:$0x40] %vm3_vm0, %v1020_v61  }
 0x1cd   :  { %3277 = vst.msk [vmem:[%s8819_s1 + $0x1ec] sm:$0x80] %vm3_vm0, %v1020_v61   ;;  %v1980_v61 = vpop.permute.xlu1 %1979  }
 0x1ce   :  { %3288 = vst.msk [vmem:[%s8819_s1 + $0x313] sm:$0x1] %vm3_vm0, %v1062_v63  }
 0x1cf   :  { %3289 = vst.msk [vmem:[%s8819_s1 + $0x332] sm:$0x2] %vm3_vm0, %v1062_v63  }
 0x1d0   :  { %3290 = vst.msk [vmem:[%s8819_s1 + $0x351] sm:$0x4] %vm3_vm0, %v1062_v63  }
 0x1d1   :  { %3291 = vst.msk [vmem:[%s8819_s1 + $0x370] sm:$0x8] %vm3_vm0, %v1062_v63  }
 0x1d2   :  { %3292 = vst.msk [vmem:[%s8819_s1 + $0x38f] sm:$0x10] %vm3_vm0, %v1062_v63  }
 0x1d3   :  { %3293 = vst.msk [vmem:[%s8819_s1 + $0x3ae] sm:$0x20] %vm3_vm0, %v1062_v63  }
 0x1d4   :  { %3294 = vst.msk [vmem:[%s8819_s1 + $0x3cd] sm:$0x40] %vm3_vm0, %v1062_v63  }
 0x1d5   :  { %3295 = vst.msk [vmem:[%s8819_s1 + $0x3ec] sm:$0x80] %vm3_vm0, %v1062_v63   ;;  %v2064_v63 = vpop.permute.xlu2 %2063  }
 0x1d6   :  { %3279 = vst.msk [vmem:[%s8819_s1 + $0x213] sm:$0x1] %vm3_vm0, %v1041_v0  }
 0x1d7   :  { %3280 = vst.msk [vmem:[%s8819_s1 + $0x232] sm:$0x2] %vm3_vm0, %v1041_v0  }
 0x1d8   :  { %3281 = vst.msk [vmem:[%s8819_s1 + $0x251] sm:$0x4] %vm3_vm0, %v1041_v0  }
 0x1d9   :  { %3282 = vst.msk [vmem:[%s8819_s1 + $0x270] sm:$0x8] %vm3_vm0, %v1041_v0  }
 0x1da   :  { %3283 = vst.msk [vmem:[%s8819_s1 + $0x28f] sm:$0x10] %vm3_vm0, %v1041_v0  }
 0x1db   :  { %3284 = vst.msk [vmem:[%s8819_s1 + $0x2ae] sm:$0x20] %vm3_vm0, %v1041_v0  }
 0x1dc   :  { %3285 = vst.msk [vmem:[%s8819_s1 + $0x2cd] sm:$0x40] %vm3_vm0, %v1041_v0  }
 0x1dd   :  { %3286 = vst.msk [vmem:[%s8819_s1 + $0x2ec] sm:$0x80] %vm3_vm0, %v1041_v0   ;;  %v2043_v0 = vpop.permute.xlu1 %2042   ;;  %v2126_v2 = vpop.permute.xlu2 %2125  }
 0x1de   :  { %3296 = vst.msk [vmem:[%s8819_s1 + $0x5] sm:$0x1] %vm3_vm0, %v1082_v1  }
 0x1df   :  { %3297 = vst.msk [vmem:[%s8819_s1 + $0x24] sm:$0x2] %vm3_vm0, %v1082_v1  }
 0x1e0   :  { %3298 = vst.msk [vmem:[%s8819_s1 + $0x43] sm:$0x4] %vm3_vm0, %v1082_v1  }
 0x1e1   :  { %3299 = vst.msk [vmem:[%s8819_s1 + $0x62] sm:$0x8] %vm3_vm0, %v1082_v1  }
 0x1e2   :  { %3300 = vst.msk [vmem:[%s8819_s1 + $0x81] sm:$0x10] %vm3_vm0, %v1082_v1  }
 0x1e3   :  { %3301 = vst.msk [vmem:[%s8819_s1 + $0xa0] sm:$0x20] %vm3_vm0, %v1082_v1  }
 0x1e4   :  { %3302 = vst.msk [vmem:[%s8819_s1 + $0xbf] sm:$0x40] %vm3_vm0, %v1082_v1  }
 0x1e5   :  { %3303 = vst.msk [vmem:[%s8819_s1 + $0xde] sm:$0x80] %vm3_vm0, %v1082_v1   ;;  %v2084_v1 = vpop.permute.xlu0 %2083  }
 0x1e6   :  { %3314 = vst.msk [vmem:[%s8819_s1 + $0x205] sm:$0x1] %vm3_vm0, %v1124_v3  }
 0x1e7   :  { %3315 = vst.msk [vmem:[%s8819_s1 + $0x224] sm:$0x2] %vm3_vm0, %v1124_v3  }
 0x1e8   :  { %3316 = vst.msk [vmem:[%s8819_s1 + $0x243] sm:$0x4] %vm3_vm0, %v1124_v3  }
 0x1e9   :  { %3317 = vst.msk [vmem:[%s8819_s1 + $0x262] sm:$0x8] %vm3_vm0, %v1124_v3  }
 0x1ea   :  { %3318 = vst.msk [vmem:[%s8819_s1 + $0x281] sm:$0x10] %vm3_vm0, %v1124_v3  }
 0x1eb   :  { %3319 = vst.msk [vmem:[%s8819_s1 + $0x2a0] sm:$0x20] %vm3_vm0, %v1124_v3  }
 0x1ec   :  { %3320 = vst.msk [vmem:[%s8819_s1 + $0x2bf] sm:$0x40] %vm3_vm0, %v1124_v3  }
 0x1ed   :  { %3321 = vst.msk [vmem:[%s8819_s1 + $0x2de] sm:$0x80] %vm3_vm0, %v1124_v3   ;;  %v2105_v3 = vpop.permute.xlu1 %2104  }
 0x1ee   :  { %3305 = vst.msk [vmem:[%s8819_s1 + $0x105] sm:$0x1] %vm3_vm0, %v1103_v4  }
 0x1ef   :  { %3306 = vst.msk [vmem:[%s8819_s1 + $0x124] sm:$0x2] %vm3_vm0, %v1103_v4  }
 0x1f0   :  { %3307 = vst.msk [vmem:[%s8819_s1 + $0x143] sm:$0x4] %vm3_vm0, %v1103_v4  }
 0x1f1   :  { %3308 = vst.msk [vmem:[%s8819_s1 + $0x162] sm:$0x8] %vm3_vm0, %v1103_v4  }
 0x1f2   :  { %3309 = vst.msk [vmem:[%s8819_s1 + $0x181] sm:$0x10] %vm3_vm0, %v1103_v4  }
 0x1f3   :  { %3310 = vst.msk [vmem:[%s8819_s1 + $0x1a0] sm:$0x20] %vm3_vm0, %v1103_v4  }
 0x1f4   :  { %3311 = vst.msk [vmem:[%s8819_s1 + $0x1bf] sm:$0x40] %vm3_vm0, %v1103_v4  }
 0x1f5   :  { %3312 = vst.msk [vmem:[%s8819_s1 + $0x1de] sm:$0x80] %vm3_vm0, %v1103_v4   ;;  %v2147_v4 = vpop.permute.xlu0 %2146   ;;  %v2168_v6 = vpop.permute.xlu1 %2167  }
 0x1f6   :  { %3323 = vst.msk [vmem:[%s8819_s1 + $0x305] sm:$0x1] %vm3_vm0, %v1145_v5  }
 0x1f7   :  { %3324 = vst.msk [vmem:[%s8819_s1 + $0x324] sm:$0x2] %vm3_vm0, %v1145_v5  }
 0x1f8   :  { %3325 = vst.msk [vmem:[%s8819_s1 + $0x343] sm:$0x4] %vm3_vm0, %v1145_v5  }
 0x1f9   :  { %3326 = vst.msk [vmem:[%s8819_s1 + $0x362] sm:$0x8] %vm3_vm0, %v1145_v5  }
 0x1fa   :  { %3327 = vst.msk [vmem:[%s8819_s1 + $0x381] sm:$0x10] %vm3_vm0, %v1145_v5  }
 0x1fb   :  { %3328 = vst.msk [vmem:[%s8819_s1 + $0x3a0] sm:$0x20] %vm3_vm0, %v1145_v5  }
 0x1fc   :  { %3329 = vst.msk [vmem:[%s8819_s1 + $0x3bf] sm:$0x40] %vm3_vm0, %v1145_v5  }
 0x1fd   :  { %3330 = vst.msk [vmem:[%s8819_s1 + $0x3de] sm:$0x80] %vm3_vm0, %v1145_v5   ;;  %v2189_v5 = vpop.permute.xlu2 %2188  }
 0x1fe   :  { %3341 = vst.msk [vmem:[%s8819_s1 + $0x114] sm:$0x1] %vm3_vm0, %v1187_v7  }
 0x1ff   :  { %3342 = vst.msk [vmem:[%s8819_s1 + $0x133] sm:$0x2] %vm3_vm0, %v1187_v7  }
 0x200   :  { %3343 = vst.msk [vmem:[%s8819_s1 + $0x152] sm:$0x4] %vm3_vm0, %v1187_v7  }
 0x201   :  { %3344 = vst.msk [vmem:[%s8819_s1 + $0x171] sm:$0x8] %vm3_vm0, %v1187_v7  }
 0x202   :  { %3345 = vst.msk [vmem:[%s8819_s1 + $0x190] sm:$0x10] %vm3_vm0, %v1187_v7  }
 0x203   :  { %3346 = vst.msk [vmem:[%s8819_s1 + $0x1af] sm:$0x20] %vm3_vm0, %v1187_v7  }
 0x204   :  { %3347 = vst.msk [vmem:[%s8819_s1 + $0x1ce] sm:$0x40] %vm3_vm0, %v1187_v7  }
 0x205   :  { %3348 = vst.msk [vmem:[%s8819_s1 + $0x1ed] sm:$0x80] %vm3_vm0, %v1187_v7   ;;  %v2210_v7 = vpop.permute.xlu0 %2209  }
 0x206   :  { %3332 = vst.msk [vmem:[%s8819_s1 + $0x14] sm:$0x1] %vm3_vm0, %v1166_v8  }
 0x207   :  { %3333 = vst.msk [vmem:[%s8819_s1 + $0x33] sm:$0x2] %vm3_vm0, %v1166_v8  }
 0x208   :  { %3334 = vst.msk [vmem:[%s8819_s1 + $0x52] sm:$0x4] %vm3_vm0, %v1166_v8  }
 0x209   :  { %3335 = vst.msk [vmem:[%s8819_s1 + $0x71] sm:$0x8] %vm3_vm0, %v1166_v8  }
 0x20a   :  { %3336 = vst.msk [vmem:[%s8819_s1 + $0x90] sm:$0x10] %vm3_vm0, %v1166_v8  }
 0x20b   :  { %3337 = vst.msk [vmem:[%s8819_s1 + $0xaf] sm:$0x20] %vm3_vm0, %v1166_v8  }
 0x20c   :  { %3338 = vst.msk [vmem:[%s8819_s1 + $0xce] sm:$0x40] %vm3_vm0, %v1166_v8  }
 0x20d   :  { %3339 = vst.msk [vmem:[%s8819_s1 + $0xed] sm:$0x80] %vm3_vm0, %v1166_v8   ;;  %v2251_v8 = vpop.permute.xlu2 %2250   ;;  %v2272_v10 = vpop.permute.xlu0 %2271  }
 0x20e   :  { %3350 = vst.msk [vmem:[%s8819_s1 + $0x214] sm:$0x1] %vm3_vm0, %v1208_v9  }
 0x20f   :  { %3351 = vst.msk [vmem:[%s8819_s1 + $0x233] sm:$0x2] %vm3_vm0, %v1208_v9  }
 0x210   :  { %3352 = vst.msk [vmem:[%s8819_s1 + $0x252] sm:$0x4] %vm3_vm0, %v1208_v9  }
 0x211   :  { %3353 = vst.msk [vmem:[%s8819_s1 + $0x271] sm:$0x8] %vm3_vm0, %v1208_v9  }
 0x212   :  { %3354 = vst.msk [vmem:[%s8819_s1 + $0x290] sm:$0x10] %vm3_vm0, %v1208_v9  }
 0x213   :  { %3355 = vst.msk [vmem:[%s8819_s1 + $0x2af] sm:$0x20] %vm3_vm0, %v1208_v9  }
 0x214   :  { %3356 = vst.msk [vmem:[%s8819_s1 + $0x2ce] sm:$0x40] %vm3_vm0, %v1208_v9  }
 0x215   :  { %3357 = vst.msk [vmem:[%s8819_s1 + $0x2ed] sm:$0x80] %vm3_vm0, %v1208_v9   ;;  %v2231_v9 = vpop.permute.xlu1 %2230  }
 0x216   :  { %3367 = vst.msk [vmem:[%s8819_s1 + $0x6] sm:$0x1] %vm3_vm0, %v1249_v11  }
 0x217   :  { %3368 = vst.msk [vmem:[%s8819_s1 + $0x25] sm:$0x2] %vm3_vm0, %v1249_v11  }
 0x218   :  { %3369 = vst.msk [vmem:[%s8819_s1 + $0x44] sm:$0x4] %vm3_vm0, %v1249_v11  }
 0x219   :  { %3370 = vst.msk [vmem:[%s8819_s1 + $0x63] sm:$0x8] %vm3_vm0, %v1249_v11  }
 0x21a   :  { %3371 = vst.msk [vmem:[%s8819_s1 + $0x82] sm:$0x10] %vm3_vm0, %v1249_v11  }
 0x21b   :  { %3372 = vst.msk [vmem:[%s8819_s1 + $0xa1] sm:$0x20] %vm3_vm0, %v1249_v11  }
 0x21c   :  { %3373 = vst.msk [vmem:[%s8819_s1 + $0xc0] sm:$0x40] %vm3_vm0, %v1249_v11  }
 0x21d   :  { %3374 = vst.msk [vmem:[%s8819_s1 + $0xdf] sm:$0x80] %vm3_vm0, %v1249_v11   ;;  %v2314_v11 = vpop.permute.xlu2 %2313  }
 0x21e   :  { %3359 = vst.msk [vmem:[%s8819_s1 + $0x314] sm:$0x1] %vm3_vm0, %v1229_v12  }
 0x21f   :  { %3360 = vst.msk [vmem:[%s8819_s1 + $0x333] sm:$0x2] %vm3_vm0, %v1229_v12  }
 0x220   :  { %3361 = vst.msk [vmem:[%s8819_s1 + $0x352] sm:$0x4] %vm3_vm0, %v1229_v12  }
 0x221   :  { %3362 = vst.msk [vmem:[%s8819_s1 + $0x371] sm:$0x8] %vm3_vm0, %v1229_v12  }
 0x222   :  { %3363 = vst.msk [vmem:[%s8819_s1 + $0x390] sm:$0x10] %vm3_vm0, %v1229_v12  }
 0x223   :  { %3364 = vst.msk [vmem:[%s8819_s1 + $0x3af] sm:$0x20] %vm3_vm0, %v1229_v12  }
 0x224   :  { %3365 = vst.msk [vmem:[%s8819_s1 + $0x3ce] sm:$0x40] %vm3_vm0, %v1229_v12  }
 0x225   :  { %3366 = vst.msk [vmem:[%s8819_s1 + $0x3ed] sm:$0x80] %vm3_vm0, %v1229_v12   ;;  %v2293_v12 = vpop.permute.xlu1 %2292  }
 0x226   :  { %3376 = vst.msk [vmem:[%s8819_s1 + $0x106] sm:$0x1] %vm3_vm0, %v1270_v13  }
 0x227   :  { %3377 = vst.msk [vmem:[%s8819_s1 + $0x125] sm:$0x2] %vm3_vm0, %v1270_v13  }
 0x228   :  { %3378 = vst.msk [vmem:[%s8819_s1 + $0x144] sm:$0x4] %vm3_vm0, %v1270_v13  }
 0x229   :  { %3379 = vst.msk [vmem:[%s8819_s1 + $0x163] sm:$0x8] %vm3_vm0, %v1270_v13  }
 0x22a   :  { %3380 = vst.msk [vmem:[%s8819_s1 + $0x182] sm:$0x10] %vm3_vm0, %v1270_v13  }
 0x22b   :  { %3381 = vst.msk [vmem:[%s8819_s1 + $0x1a1] sm:$0x20] %vm3_vm0, %v1270_v13  }
 0x22c   :  { %3382 = vst.msk [vmem:[%s8819_s1 + $0x1c0] sm:$0x40] %vm3_vm0, %v1270_v13  }
 0x22d   :  { %3383 = vst.msk [vmem:[%s8819_s1 + $0x1df] sm:$0x80] %vm3_vm0, %v1270_v13   ;;  %v2335_v13 = vpop.permute.xlu0 %2334  }
 0x22e   :  { %3394 = vst.msk [vmem:[%s8819_s1 + $0x306] sm:$0x1] %vm3_vm0, %v1312_v14  }
 0x22f   :  { %3395 = vst.msk [vmem:[%s8819_s1 + $0x325] sm:$0x2] %vm3_vm0, %v1312_v14  }
 0x230   :  { %3396 = vst.msk [vmem:[%s8819_s1 + $0x344] sm:$0x4] %vm3_vm0, %v1312_v14  }
 0x231   :  { %3397 = vst.msk [vmem:[%s8819_s1 + $0x363] sm:$0x8] %vm3_vm0, %v1312_v14  }
 0x232   :  { %3398 = vst.msk [vmem:[%s8819_s1 + $0x382] sm:$0x10] %vm3_vm0, %v1312_v14  }
 0x233   :  { %3399 = vst.msk [vmem:[%s8819_s1 + $0x3a1] sm:$0x20] %vm3_vm0, %v1312_v14  }
 0x234   :  { %3400 = vst.msk [vmem:[%s8819_s1 + $0x3c0] sm:$0x40] %vm3_vm0, %v1312_v14  }
 0x235   :  { %3401 = vst.msk [vmem:[%s8819_s1 + $0x3df] sm:$0x80] %vm3_vm0, %v1312_v14   ;;  %v2377_v14 = vpop.permute.xlu2 %2376  }
 0x236   :  { %3385 = vst.msk [vmem:[%s8819_s1 + $0x206] sm:$0x1] %vm3_vm0, %v1291_v15  }
 0x237   :  { %3386 = vst.msk [vmem:[%s8819_s1 + $0x225] sm:$0x2] %vm3_vm0, %v1291_v15  }
 0x238   :  { %3387 = vst.msk [vmem:[%s8819_s1 + $0x244] sm:$0x4] %vm3_vm0, %v1291_v15  }
 0x239   :  { %3388 = vst.msk [vmem:[%s8819_s1 + $0x263] sm:$0x8] %vm3_vm0, %v1291_v15  }
 0x23a   :  { %3389 = vst.msk [vmem:[%s8819_s1 + $0x282] sm:$0x10] %vm3_vm0, %v1291_v15  }
 0x23b   :  { %3390 = vst.msk [vmem:[%s8819_s1 + $0x2a1] sm:$0x20] %vm3_vm0, %v1291_v15  }
 0x23c   :  { %3391 = vst.msk [vmem:[%s8819_s1 + $0x2c0] sm:$0x40] %vm3_vm0, %v1291_v15  }
 0x23d   :  { %3392 = vst.msk [vmem:[%s8819_s1 + $0x2df] sm:$0x80] %vm3_vm0, %v1291_v15   ;;  %v2356_v15 = vpop.permute.xlu1 %2355  }
 0x23e   :  { %3403 = vst.msk [vmem:[%s8819_s1 + $0x15] sm:$0x1] %vm3_vm0, %v1333_v16  }
 0x23f   :  { %3404 = vst.msk [vmem:[%s8819_s1 + $0x34] sm:$0x2] %vm3_vm0, %v1333_v16  }
 0x240   :  { %3405 = vst.msk [vmem:[%s8819_s1 + $0x53] sm:$0x4] %vm3_vm0, %v1333_v16  }
 0x241   :  { %3406 = vst.msk [vmem:[%s8819_s1 + $0x72] sm:$0x8] %vm3_vm0, %v1333_v16  }
 0x242   :  { %3407 = vst.msk [vmem:[%s8819_s1 + $0x91] sm:$0x10] %vm3_vm0, %v1333_v16  }
 0x243   :  { %3408 = vst.msk [vmem:[%s8819_s1 + $0xb0] sm:$0x20] %vm3_vm0, %v1333_v16  }
 0x244   :  { %3409 = vst.msk [vmem:[%s8819_s1 + $0xcf] sm:$0x40] %vm3_vm0, %v1333_v16  }
 0x245   :  { %3410 = vst.msk [vmem:[%s8819_s1 + $0xee] sm:$0x80] %vm3_vm0, %v1333_v16   ;;  %v2506_v16 = vpop.permute.xlu0 %2505  }
 0x246   :  { %3421 = vst.msk [vmem:[%s8819_s1 + $0x215] sm:$0x1] %vm3_vm0, %v1375_v17  }
 0x247   :  { %3422 = vst.msk [vmem:[%s8819_s1 + $0x234] sm:$0x2] %vm3_vm0, %v1375_v17  }
 0x248   :  { %3423 = vst.msk [vmem:[%s8819_s1 + $0x253] sm:$0x4] %vm3_vm0, %v1375_v17  }
 0x249   :  { %3424 = vst.msk [vmem:[%s8819_s1 + $0x272] sm:$0x8] %vm3_vm0, %v1375_v17  }
 0x24a   :  { %3425 = vst.msk [vmem:[%s8819_s1 + $0x291] sm:$0x10] %vm3_vm0, %v1375_v17  }
 0x24b   :  { %3426 = vst.msk [vmem:[%s8819_s1 + $0x2b0] sm:$0x20] %vm3_vm0, %v1375_v17  }
 0x24c   :  { %3427 = vst.msk [vmem:[%s8819_s1 + $0x2cf] sm:$0x40] %vm3_vm0, %v1375_v17  }
 0x24d   :  { %3428 = vst.msk [vmem:[%s8819_s1 + $0x2ee] sm:$0x80] %vm3_vm0, %v1375_v17   ;;  %v2590_v17 = vpop.permute.xlu2 %2589  }
 0x24e   :  { %3412 = vst.msk [vmem:[%s8819_s1 + $0x115] sm:$0x1] %vm3_vm0, %v1354_v18  }
 0x24f   :  { %3413 = vst.msk [vmem:[%s8819_s1 + $0x134] sm:$0x2] %vm3_vm0, %v1354_v18  }
 0x250   :  { %3414 = vst.msk [vmem:[%s8819_s1 + $0x153] sm:$0x4] %vm3_vm0, %v1354_v18  }
 0x251   :  { %3415 = vst.msk [vmem:[%s8819_s1 + $0x172] sm:$0x8] %vm3_vm0, %v1354_v18  }
 0x252   :  { %3416 = vst.msk [vmem:[%s8819_s1 + $0x191] sm:$0x10] %vm3_vm0, %v1354_v18  }
 0x253   :  { %3417 = vst.msk [vmem:[%s8819_s1 + $0x1b0] sm:$0x20] %vm3_vm0, %v1354_v18  }
 0x254   :  { %3418 = vst.msk [vmem:[%s8819_s1 + $0x1cf] sm:$0x40] %vm3_vm0, %v1354_v18  }
 0x255   :  { %3419 = vst.msk [vmem:[%s8819_s1 + $0x1ee] sm:$0x80] %vm3_vm0, %v1354_v18   ;;  %v2548_v18 = vpop.permute.xlu1 %2547  }
 0x256   :  { %3430 = vst.msk [vmem:[%s8819_s1 + $0x315] sm:$0x1] %vm3_vm0, %v1396_v19  }
 0x257   :  { %3431 = vst.msk [vmem:[%s8819_s1 + $0x334] sm:$0x2] %vm3_vm0, %v1396_v19  }
 0x258   :  { %3432 = vst.msk [vmem:[%s8819_s1 + $0x353] sm:$0x4] %vm3_vm0, %v1396_v19  }
 0x259   :  { %3433 = vst.msk [vmem:[%s8819_s1 + $0x372] sm:$0x8] %vm3_vm0, %v1396_v19  }
 0x25a   :  { %3434 = vst.msk [vmem:[%s8819_s1 + $0x391] sm:$0x10] %vm3_vm0, %v1396_v19  }
 0x25b   :  { %3435 = vst.msk [vmem:[%s8819_s1 + $0x3b0] sm:$0x20] %vm3_vm0, %v1396_v19  }
 0x25c   :  { %3436 = vst.msk [vmem:[%s8819_s1 + $0x3cf] sm:$0x40] %vm3_vm0, %v1396_v19  }
 0x25d   :  { %3437 = vst.msk [vmem:[%s8819_s1 + $0x3ee] sm:$0x80] %vm3_vm0, %v1396_v19   ;;  %v2632_v19 = vpop.permute.xlu0 %2631  }
 0x25e   :  { %3447 = vst.msk [vmem:[%s8819_s1 + $0x107] sm:$0x1] %vm3_vm0, %v1437_v20  }
 0x25f   :  { %3448 = vst.msk [vmem:[%s8819_s1 + $0x126] sm:$0x2] %vm3_vm0, %v1437_v20  }
 0x260   :  { %3449 = vst.msk [vmem:[%s8819_s1 + $0x145] sm:$0x4] %vm3_vm0, %v1437_v20  }
 0x261   :  { %3450 = vst.msk [vmem:[%s8819_s1 + $0x164] sm:$0x8] %vm3_vm0, %v1437_v20  }
 0x262   :  { %3451 = vst.msk [vmem:[%s8819_s1 + $0x183] sm:$0x10] %vm3_vm0, %v1437_v20  }
 0x263   :  { %3452 = vst.msk [vmem:[%s8819_s1 + $0x1a2] sm:$0x20] %vm3_vm0, %v1437_v20  }
 0x264   :  { %3453 = vst.msk [vmem:[%s8819_s1 + $0x1c1] sm:$0x40] %vm3_vm0, %v1437_v20  }
 0x265   :  { %3454 = vst.msk [vmem:[%s8819_s1 + $0x1e0] sm:$0x80] %vm3_vm0, %v1437_v20   ;;  %v2715_v20 = vpop.permute.xlu2 %2714  }
 0x266   :  { %3438 = vst.msk [vmem:[%s8819_s1 + $0x7] sm:$0x1] %vm3_vm0, %v1416_v21  }
 0x267   :  { %3439 = vst.msk [vmem:[%s8819_s1 + $0x26] sm:$0x2] %vm3_vm0, %v1416_v21  }
 0x268   :  { %3440 = vst.msk [vmem:[%s8819_s1 + $0x45] sm:$0x4] %vm3_vm0, %v1416_v21  }
 0x269   :  { %3441 = vst.msk [vmem:[%s8819_s1 + $0x64] sm:$0x8] %vm3_vm0, %v1416_v21  }
 0x26a   :  { %3442 = vst.msk [vmem:[%s8819_s1 + $0x83] sm:$0x10] %vm3_vm0, %v1416_v21  }
 0x26b   :  { %3443 = vst.msk [vmem:[%s8819_s1 + $0xa2] sm:$0x20] %vm3_vm0, %v1416_v21  }
 0x26c   :  { %3444 = vst.msk [vmem:[%s8819_s1 + $0xc1] sm:$0x40] %vm3_vm0, %v1416_v21  }
 0x26d   :  { %3445 = vst.msk [vmem:[%s8819_s1 + $0xe0] sm:$0x80] %vm3_vm0, %v1416_v21   ;;  %v2673_v21 = vpop.permute.xlu1 %2672  }
 0x26e   :  { %3456 = vst.msk [vmem:[%s8819_s1 + $0x207] sm:$0x1] %vm3_vm0, %v1458_v22  }
 0x26f   :  { %3457 = vst.msk [vmem:[%s8819_s1 + $0x226] sm:$0x2] %vm3_vm0, %v1458_v22  }
 0x270   :  { %3458 = vst.msk [vmem:[%s8819_s1 + $0x245] sm:$0x4] %vm3_vm0, %v1458_v22  }
 0x271   :  { %3459 = vst.msk [vmem:[%s8819_s1 + $0x264] sm:$0x8] %vm3_vm0, %v1458_v22  }
 0x272   :  { %3460 = vst.msk [vmem:[%s8819_s1 + $0x283] sm:$0x10] %vm3_vm0, %v1458_v22  }
 0x273   :  { %3461 = vst.msk [vmem:[%s8819_s1 + $0x2a2] sm:$0x20] %vm3_vm0, %v1458_v22  }
 0x274   :  { %3462 = vst.msk [vmem:[%s8819_s1 + $0x2c1] sm:$0x40] %vm3_vm0, %v1458_v22  }
 0x275   :  { %3463 = vst.msk [vmem:[%s8819_s1 + $0x2e0] sm:$0x80] %vm3_vm0, %v1458_v22   ;;  %v2757_v22 = vpop.permute.xlu0 %2756   ;;  %v2799_v23 = vpop.permute.xlu1 %2798  }
 0x276   :  { %3474 = vst.msk [vmem:[%s8819_s1 + $0x16] sm:$0x1] %vm3_vm0, %v1500_v24  }
 0x277   :  { %3475 = vst.msk [vmem:[%s8819_s1 + $0x35] sm:$0x2] %vm3_vm0, %v1500_v24  }
 0x278   :  { %3476 = vst.msk [vmem:[%s8819_s1 + $0x54] sm:$0x4] %vm3_vm0, %v1500_v24  }
 0x279   :  { %3477 = vst.msk [vmem:[%s8819_s1 + $0x73] sm:$0x8] %vm3_vm0, %v1500_v24  }
 0x27a   :  { %3478 = vst.msk [vmem:[%s8819_s1 + $0x92] sm:$0x10] %vm3_vm0, %v1500_v24  }
 0x27b   :  { %3479 = vst.msk [vmem:[%s8819_s1 + $0xb1] sm:$0x20] %vm3_vm0, %v1500_v24  }
 0x27c   :  { %3480 = vst.msk [vmem:[%s8819_s1 + $0xd0] sm:$0x40] %vm3_vm0, %v1500_v24  }
 0x27d   :  { %3481 = vst.msk [vmem:[%s8819_s1 + $0xef] sm:$0x80] %vm3_vm0, %v1500_v24   ;;  %v2398_v24 = vpop.permute.xlu2 %2397   ;;  %v2418_v25 = vpop.permute.xlu0 %2417  }
 0x27e   :  { %3465 = vst.msk [vmem:[%s8819_s1 + $0x307] sm:$0x1] %vm3_vm0, %v1479_v26  }
 0x27f   :  { %3466 = vst.msk [vmem:[%s8819_s1 + $0x326] sm:$0x2] %vm3_vm0, %v1479_v26  }
 0x280   :  { %3467 = vst.msk [vmem:[%s8819_s1 + $0x345] sm:$0x4] %vm3_vm0, %v1479_v26  }
 0x281   :  { %3468 = vst.msk [vmem:[%s8819_s1 + $0x364] sm:$0x8] %vm3_vm0, %v1479_v26  }
 0x282   :  { %3469 = vst.msk [vmem:[%s8819_s1 + $0x383] sm:$0x10] %vm3_vm0, %v1479_v26  }
 0x283   :  { %3470 = vst.msk [vmem:[%s8819_s1 + $0x3a2] sm:$0x20] %vm3_vm0, %v1479_v26  }
 0x284   :  { %3471 = vst.msk [vmem:[%s8819_s1 + $0x3c1] sm:$0x40] %vm3_vm0, %v1479_v26  }
 0x285   :  { %3472 = vst.msk [vmem:[%s8819_s1 + $0x3e0] sm:$0x80] %vm3_vm0, %v1479_v26   ;;  %v2460_v26 = vpop.permute.xlu2 %2459   ;;  %v2481_v28 = vpop.permute.xlu0 %2480  }
 0x286   :  { %3483 = vst.msk [vmem:[%s8819_s1 + $0x116] sm:$0x1] %vm3_vm0, %v1521_v27  }
 0x287   :  { %3484 = vst.msk [vmem:[%s8819_s1 + $0x135] sm:$0x2] %vm3_vm0, %v1521_v27  }
 0x288   :  { %3485 = vst.msk [vmem:[%s8819_s1 + $0x154] sm:$0x4] %vm3_vm0, %v1521_v27  }
 0x289   :  { %3486 = vst.msk [vmem:[%s8819_s1 + $0x173] sm:$0x8] %vm3_vm0, %v1521_v27  }
 0x28a   :  { %3487 = vst.msk [vmem:[%s8819_s1 + $0x192] sm:$0x10] %vm3_vm0, %v1521_v27  }
 0x28b   :  { %3488 = vst.msk [vmem:[%s8819_s1 + $0x1b1] sm:$0x20] %vm3_vm0, %v1521_v27  }
 0x28c   :  { %3489 = vst.msk [vmem:[%s8819_s1 + $0x1d0] sm:$0x40] %vm3_vm0, %v1521_v27  }
 0x28d   :  { %3490 = vst.msk [vmem:[%s8819_s1 + $0x1ef] sm:$0x80] %vm3_vm0, %v1521_v27   ;;  %v2439_v27 = vpop.permute.xlu1 %2438  }
 0x28e   :  { %3501 = vst.msk [vmem:[%s8819_s1 + $0x316] sm:$0x1] %vm3_vm0, %v1563_v30  }
 0x28f   :  { %3502 = vst.msk [vmem:[%s8819_s1 + $0x335] sm:$0x2] %vm3_vm0, %v1563_v30  }
 0x290   :  { %3503 = vst.msk [vmem:[%s8819_s1 + $0x354] sm:$0x4] %vm3_vm0, %v1563_v30  }
 0x291   :  { %3504 = vst.msk [vmem:[%s8819_s1 + $0x373] sm:$0x8] %vm3_vm0, %v1563_v30  }
 0x292   :  { %3505 = vst.msk [vmem:[%s8819_s1 + $0x392] sm:$0x10] %vm3_vm0, %v1563_v30  }
 0x293   :  { %3506 = vst.msk [vmem:[%s8819_s1 + $0x3b1] sm:$0x20] %vm3_vm0, %v1563_v30  }
 0x294   :  { %3507 = vst.msk [vmem:[%s8819_s1 + $0x3d0] sm:$0x40] %vm3_vm0, %v1563_v30  }
 0x295   :  { %3508 = vst.msk [vmem:[%s8819_s1 + $0x3ef] sm:$0x80] %vm3_vm0, %v1563_v30   ;;  %v2841_v30 = vld [vmem:[%s8818_s0 + $0x18] sm:$0xff]  }
 0x296   :  { %3492 = vst.msk [vmem:[%s8819_s1 + $0x216] sm:$0x1] %vm3_vm0, %v1542_v33  }
 0x297   :  { %3493 = vst.msk [vmem:[%s8819_s1 + $0x235] sm:$0x2] %vm3_vm0, %v1542_v33  }
 0x298   :  { %3494 = vst.msk [vmem:[%s8819_s1 + $0x254] sm:$0x4] %vm3_vm0, %v1542_v33  }
 0x299   :  { %3495 = vst.msk [vmem:[%s8819_s1 + $0x273] sm:$0x8] %vm3_vm0, %v1542_v33  }
 0x29a   :  { %3496 = vst.msk [vmem:[%s8819_s1 + $0x292] sm:$0x10] %vm3_vm0, %v1542_v33  }
 0x29b   :  { %3497 = vst.msk [vmem:[%s8819_s1 + $0x2b1] sm:$0x20] %vm3_vm0, %v1542_v33  }
 0x29c   :  { %3498 = vst.msk [vmem:[%s8819_s1 + $0x2d0] sm:$0x40] %vm3_vm0, %v1542_v33  }
 0x29d   :  { %3499 = vst.msk [vmem:[%s8819_s1 + $0x2ef] sm:$0x80] %vm3_vm0, %v1542_v33  }
 0x29e   :  { %3509 = vst.msk [vmem:[%s8819_s1 + $0x8] sm:$0x1] %vm3_vm0, %v1583_v34  }
 0x29f   :  { %3510 = vst.msk [vmem:[%s8819_s1 + $0x27] sm:$0x2] %vm3_vm0, %v1583_v34  }
 0x2a0   :  { %3511 = vst.msk [vmem:[%s8819_s1 + $0x46] sm:$0x4] %vm3_vm0, %v1583_v34  }
 0x2a1   :  { %3512 = vst.msk [vmem:[%s8819_s1 + $0x65] sm:$0x8] %vm3_vm0, %v1583_v34  }
 0x2a2   :  { %3513 = vst.msk [vmem:[%s8819_s1 + $0x84] sm:$0x10] %vm3_vm0, %v1583_v34  }
 0x2a3   :  { %3514 = vst.msk [vmem:[%s8819_s1 + $0xa3] sm:$0x20] %vm3_vm0, %v1583_v34  }
 0x2a4   :  { %3515 = vst.msk [vmem:[%s8819_s1 + $0xc2] sm:$0x40] %vm3_vm0, %v1583_v34  }
 0x2a5   :  { %3516 = vst.msk [vmem:[%s8819_s1 + $0xe1] sm:$0x80] %vm3_vm0, %v1583_v34  }
 0x2a6   :  { %3527 = vst.msk [vmem:[%s8819_s1 + $0x208] sm:$0x1] %vm3_vm0, %v1625_v35  }
 0x2a7   :  { %3528 = vst.msk [vmem:[%s8819_s1 + $0x227] sm:$0x2] %vm3_vm0, %v1625_v35  }
 0x2a8   :  { %3529 = vst.msk [vmem:[%s8819_s1 + $0x246] sm:$0x4] %vm3_vm0, %v1625_v35  }
 0x2a9   :  { %3530 = vst.msk [vmem:[%s8819_s1 + $0x265] sm:$0x8] %vm3_vm0, %v1625_v35  }
 0x2aa   :  { %3531 = vst.msk [vmem:[%s8819_s1 + $0x284] sm:$0x10] %vm3_vm0, %v1625_v35  }
 0x2ab   :  { %3532 = vst.msk [vmem:[%s8819_s1 + $0x2a3] sm:$0x20] %vm3_vm0, %v1625_v35  }
 0x2ac   :  { %3533 = vst.msk [vmem:[%s8819_s1 + $0x2c2] sm:$0x40] %vm3_vm0, %v1625_v35  }
 0x2ad   :  { %3534 = vst.msk [vmem:[%s8819_s1 + $0x2e1] sm:$0x80] %vm3_vm0, %v1625_v35  }
 0x2ae   :  { %3518 = vst.msk [vmem:[%s8819_s1 + $0x108] sm:$0x1] %vm3_vm0, %v1604_v38  }
 0x2af   :  { %3519 = vst.msk [vmem:[%s8819_s1 + $0x127] sm:$0x2] %vm3_vm0, %v1604_v38  }
 0x2b0   :  { %3520 = vst.msk [vmem:[%s8819_s1 + $0x146] sm:$0x4] %vm3_vm0, %v1604_v38  }
 0x2b1   :  { %3521 = vst.msk [vmem:[%s8819_s1 + $0x165] sm:$0x8] %vm3_vm0, %v1604_v38  }
 0x2b2   :  { %3522 = vst.msk [vmem:[%s8819_s1 + $0x184] sm:$0x10] %vm3_vm0, %v1604_v38  }
 0x2b3   :  { %3523 = vst.msk [vmem:[%s8819_s1 + $0x1a3] sm:$0x20] %vm3_vm0, %v1604_v38  }
 0x2b4   :  { %3524 = vst.msk [vmem:[%s8819_s1 + $0x1c2] sm:$0x40] %vm3_vm0, %v1604_v38  }
 0x2b5   :  { %3525 = vst.msk [vmem:[%s8819_s1 + $0x1e1] sm:$0x80] %vm3_vm0, %v1604_v38  }
 0x2b6   :  { %3536 = vst.msk [vmem:[%s8819_s1 + $0x308] sm:$0x1] %vm3_vm0, %v1646_v39  }
 0x2b7   :  { %3537 = vst.msk [vmem:[%s8819_s1 + $0x327] sm:$0x2] %vm3_vm0, %v1646_v39  }
 0x2b8   :  { %3538 = vst.msk [vmem:[%s8819_s1 + $0x346] sm:$0x4] %vm3_vm0, %v1646_v39  }
 0x2b9   :  { %3539 = vst.msk [vmem:[%s8819_s1 + $0x365] sm:$0x8] %vm3_vm0, %v1646_v39  }
 0x2ba   :  { %3540 = vst.msk [vmem:[%s8819_s1 + $0x384] sm:$0x10] %vm3_vm0, %v1646_v39  }
 0x2bb   :  { %3541 = vst.msk [vmem:[%s8819_s1 + $0x3a3] sm:$0x20] %vm3_vm0, %v1646_v39  }
 0x2bc   :  { %3542 = vst.msk [vmem:[%s8819_s1 + $0x3c2] sm:$0x40] %vm3_vm0, %v1646_v39  }
 0x2bd   :  { %3543 = vst.msk [vmem:[%s8819_s1 + $0x3e1] sm:$0x80] %vm3_vm0, %v1646_v39  }
 0x2be   :  { %3554 = vst.msk [vmem:[%s8819_s1 + $0x117] sm:$0x1] %vm3_vm0, %v1688_v41  }
 0x2bf   :  { %3555 = vst.msk [vmem:[%s8819_s1 + $0x136] sm:$0x2] %vm3_vm0, %v1688_v41  }
 0x2c0   :  { %3556 = vst.msk [vmem:[%s8819_s1 + $0x155] sm:$0x4] %vm3_vm0, %v1688_v41  }
 0x2c1   :  { %3557 = vst.msk [vmem:[%s8819_s1 + $0x174] sm:$0x8] %vm3_vm0, %v1688_v41  }
 0x2c2   :  { %3558 = vst.msk [vmem:[%s8819_s1 + $0x193] sm:$0x10] %vm3_vm0, %v1688_v41  }
 0x2c3   :  { %3559 = vst.msk [vmem:[%s8819_s1 + $0x1b2] sm:$0x20] %vm3_vm0, %v1688_v41  }
 0x2c4   :  { %3560 = vst.msk [vmem:[%s8819_s1 + $0x1d1] sm:$0x40] %vm3_vm0, %v1688_v41  }
 0x2c5   :  { %3561 = vst.msk [vmem:[%s8819_s1 + $0x1f0] sm:$0x80] %vm3_vm0, %v1688_v41  }
 0x2c6   :  { %3545 = vst.msk [vmem:[%s8819_s1 + $0x17] sm:$0x1] %vm3_vm0, %v1667_v42  }
 0x2c7   :  { %3546 = vst.msk [vmem:[%s8819_s1 + $0x36] sm:$0x2] %vm3_vm0, %v1667_v42  }
 0x2c8   :  { %3547 = vst.msk [vmem:[%s8819_s1 + $0x55] sm:$0x4] %vm3_vm0, %v1667_v42  }
 0x2c9   :  { %3548 = vst.msk [vmem:[%s8819_s1 + $0x74] sm:$0x8] %vm3_vm0, %v1667_v42  }
 0x2ca   :  { %3549 = vst.msk [vmem:[%s8819_s1 + $0x93] sm:$0x10] %vm3_vm0, %v1667_v42  }
 0x2cb   :  { %3550 = vst.msk [vmem:[%s8819_s1 + $0xb2] sm:$0x20] %vm3_vm0, %v1667_v42  }
 0x2cc   :  { %3551 = vst.msk [vmem:[%s8819_s1 + $0xd1] sm:$0x40] %vm3_vm0, %v1667_v42  }
 0x2cd   :  { %3552 = vst.msk [vmem:[%s8819_s1 + $0xf0] sm:$0x80] %vm3_vm0, %v1667_v42  }
 0x2ce   :  { %3563 = vst.msk [vmem:[%s8819_s1 + $0x217] sm:$0x1] %vm3_vm0, %v1709_v43  }
 0x2cf   :  { %3564 = vst.msk [vmem:[%s8819_s1 + $0x236] sm:$0x2] %vm3_vm0, %v1709_v43  }
 0x2d0   :  { %3565 = vst.msk [vmem:[%s8819_s1 + $0x255] sm:$0x4] %vm3_vm0, %v1709_v43  }
 0x2d1   :  { %3566 = vst.msk [vmem:[%s8819_s1 + $0x274] sm:$0x8] %vm3_vm0, %v1709_v43  }
 0x2d2   :  { %3567 = vst.msk [vmem:[%s8819_s1 + $0x293] sm:$0x10] %vm3_vm0, %v1709_v43  }
 0x2d3   :  { %3568 = vst.msk [vmem:[%s8819_s1 + $0x2b2] sm:$0x20] %vm3_vm0, %v1709_v43  }
 0x2d4   :  { %3569 = vst.msk [vmem:[%s8819_s1 + $0x2d1] sm:$0x40] %vm3_vm0, %v1709_v43  }
 0x2d5   :  { %3570 = vst.msk [vmem:[%s8819_s1 + $0x2f0] sm:$0x80] %vm3_vm0, %v1709_v43  }
 0x2d6   :  { %3580 = vst.msk [vmem:[%s8819_s1 + $0x9] sm:$0x1] %vm3_vm0, %v1750_v45  }
 0x2d7   :  { %3581 = vst.msk [vmem:[%s8819_s1 + $0x28] sm:$0x2] %vm3_vm0, %v1750_v45  }
 0x2d8   :  { %3582 = vst.msk [vmem:[%s8819_s1 + $0x47] sm:$0x4] %vm3_vm0, %v1750_v45  }
 0x2d9   :  { %3583 = vst.msk [vmem:[%s8819_s1 + $0x66] sm:$0x8] %vm3_vm0, %v1750_v45  }
 0x2da   :  { %3584 = vst.msk [vmem:[%s8819_s1 + $0x85] sm:$0x10] %vm3_vm0, %v1750_v45  }
 0x2db   :  { %3585 = vst.msk [vmem:[%s8819_s1 + $0xa4] sm:$0x20] %vm3_vm0, %v1750_v45  }
 0x2dc   :  { %3586 = vst.msk [vmem:[%s8819_s1 + $0xc3] sm:$0x40] %vm3_vm0, %v1750_v45  }
 0x2dd   :  { %3587 = vst.msk [vmem:[%s8819_s1 + $0xe2] sm:$0x80] %vm3_vm0, %v1750_v45  }
 0x2de   :  { %3572 = vst.msk [vmem:[%s8819_s1 + $0x317] sm:$0x1] %vm3_vm0, %v1730_v47  }
 0x2df   :  { %3573 = vst.msk [vmem:[%s8819_s1 + $0x336] sm:$0x2] %vm3_vm0, %v1730_v47  }
 0x2e0   :  { %3574 = vst.msk [vmem:[%s8819_s1 + $0x355] sm:$0x4] %vm3_vm0, %v1730_v47  }
 0x2e1   :  { %3575 = vst.msk [vmem:[%s8819_s1 + $0x374] sm:$0x8] %vm3_vm0, %v1730_v47  }
 0x2e2   :  { %3576 = vst.msk [vmem:[%s8819_s1 + $0x393] sm:$0x10] %vm3_vm0, %v1730_v47  }
 0x2e3   :  { %3577 = vst.msk [vmem:[%s8819_s1 + $0x3b2] sm:$0x20] %vm3_vm0, %v1730_v47  }
 0x2e4   :  { %3578 = vst.msk [vmem:[%s8819_s1 + $0x3d1] sm:$0x40] %vm3_vm0, %v1730_v47  }
 0x2e5   :  { %3579 = vst.msk [vmem:[%s8819_s1 + $0x3f0] sm:$0x80] %vm3_vm0, %v1730_v47  }
 0x2e6   :  { %3589 = vst.msk [vmem:[%s8819_s1 + $0x109] sm:$0x1] %vm3_vm0, %v1771_v48  }
 0x2e7   :  { %3590 = vst.msk [vmem:[%s8819_s1 + $0x128] sm:$0x2] %vm3_vm0, %v1771_v48  }
 0x2e8   :  { %3591 = vst.msk [vmem:[%s8819_s1 + $0x147] sm:$0x4] %vm3_vm0, %v1771_v48  }
 0x2e9   :  { %3592 = vst.msk [vmem:[%s8819_s1 + $0x166] sm:$0x8] %vm3_vm0, %v1771_v48  }
 0x2ea   :  { %3593 = vst.msk [vmem:[%s8819_s1 + $0x185] sm:$0x10] %vm3_vm0, %v1771_v48  }
 0x2eb   :  { %3594 = vst.msk [vmem:[%s8819_s1 + $0x1a4] sm:$0x20] %vm3_vm0, %v1771_v48  }
 0x2ec   :  { %3595 = vst.msk [vmem:[%s8819_s1 + $0x1c3] sm:$0x40] %vm3_vm0, %v1771_v48  }
 0x2ed   :  { %3596 = vst.msk [vmem:[%s8819_s1 + $0x1e2] sm:$0x80] %vm3_vm0, %v1771_v48  }
 0x2ee   :  { %3607 = vst.msk [vmem:[%s8819_s1 + $0x309] sm:$0x1] %vm3_vm0, %v1813_v50  }
 0x2ef   :  { %3608 = vst.msk [vmem:[%s8819_s1 + $0x328] sm:$0x2] %vm3_vm0, %v1813_v50  }
 0x2f0   :  { %3609 = vst.msk [vmem:[%s8819_s1 + $0x347] sm:$0x4] %vm3_vm0, %v1813_v50  }
 0x2f1   :  { %3610 = vst.msk [vmem:[%s8819_s1 + $0x366] sm:$0x8] %vm3_vm0, %v1813_v50  }
 0x2f2   :  { %3611 = vst.msk [vmem:[%s8819_s1 + $0x385] sm:$0x10] %vm3_vm0, %v1813_v50  }
 0x2f3   :  { %3612 = vst.msk [vmem:[%s8819_s1 + $0x3a4] sm:$0x20] %vm3_vm0, %v1813_v50  }
 0x2f4   :  { %3613 = vst.msk [vmem:[%s8819_s1 + $0x3c3] sm:$0x40] %vm3_vm0, %v1813_v50  }
 0x2f5   :  { %3614 = vst.msk [vmem:[%s8819_s1 + $0x3e2] sm:$0x80] %vm3_vm0, %v1813_v50  }
 0x2f6   :  { %3598 = vst.msk [vmem:[%s8819_s1 + $0x209] sm:$0x1] %vm3_vm0, %v1792_v51  }
 0x2f7   :  { %3599 = vst.msk [vmem:[%s8819_s1 + $0x228] sm:$0x2] %vm3_vm0, %v1792_v51  }
 0x2f8   :  { %3600 = vst.msk [vmem:[%s8819_s1 + $0x247] sm:$0x4] %vm3_vm0, %v1792_v51  }
 0x2f9   :  { %3601 = vst.msk [vmem:[%s8819_s1 + $0x266] sm:$0x8] %vm3_vm0, %v1792_v51  }
 0x2fa   :  { %3602 = vst.msk [vmem:[%s8819_s1 + $0x285] sm:$0x10] %vm3_vm0, %v1792_v51  }
 0x2fb   :  { %3603 = vst.msk [vmem:[%s8819_s1 + $0x2a4] sm:$0x20] %vm3_vm0, %v1792_v51  }
 0x2fc   :  { %3604 = vst.msk [vmem:[%s8819_s1 + $0x2c3] sm:$0x40] %vm3_vm0, %v1792_v51  }
 0x2fd   :  { %3605 = vst.msk [vmem:[%s8819_s1 + $0x2e2] sm:$0x80] %vm3_vm0, %v1792_v51  }
 0x2fe   :  { %3616 = vst.msk [vmem:[%s8819_s1 + $0x18] sm:$0x1] %vm3_vm0, %v1834_v52  }
 0x2ff   :  { %3617 = vst.msk [vmem:[%s8819_s1 + $0x37] sm:$0x2] %vm3_vm0, %v1834_v52  }
 0x300   :  { %3618 = vst.msk [vmem:[%s8819_s1 + $0x56] sm:$0x4] %vm3_vm0, %v1834_v52  }
 0x301   :  { %3619 = vst.msk [vmem:[%s8819_s1 + $0x75] sm:$0x8] %vm3_vm0, %v1834_v52  }
 0x302   :  { %3620 = vst.msk [vmem:[%s8819_s1 + $0x94] sm:$0x10] %vm3_vm0, %v1834_v52  }
 0x303   :  { %3621 = vst.msk [vmem:[%s8819_s1 + $0xb3] sm:$0x20] %vm3_vm0, %v1834_v52  }
 0x304   :  { %3622 = vst.msk [vmem:[%s8819_s1 + $0xd2] sm:$0x40] %vm3_vm0, %v1834_v52  }
 0x305   :  { %3623 = vst.msk [vmem:[%s8819_s1 + $0xf1] sm:$0x80] %vm3_vm0, %v1834_v52  }
 0x306   :  { %3634 = vst.msk [vmem:[%s8819_s1 + $0x218] sm:$0x1] %vm3_vm0, %v1876_v53  }
 0x307   :  { %3635 = vst.msk [vmem:[%s8819_s1 + $0x237] sm:$0x2] %vm3_vm0, %v1876_v53  }
 0x308   :  { %3636 = vst.msk [vmem:[%s8819_s1 + $0x256] sm:$0x4] %vm3_vm0, %v1876_v53  }
 0x309   :  { %3637 = vst.msk [vmem:[%s8819_s1 + $0x275] sm:$0x8] %vm3_vm0, %v1876_v53  }
 0x30a   :  { %3638 = vst.msk [vmem:[%s8819_s1 + $0x294] sm:$0x10] %vm3_vm0, %v1876_v53  }
 0x30b   :  { %3639 = vst.msk [vmem:[%s8819_s1 + $0x2b3] sm:$0x20] %vm3_vm0, %v1876_v53  }
 0x30c   :  { %3640 = vst.msk [vmem:[%s8819_s1 + $0x2d2] sm:$0x40] %vm3_vm0, %v1876_v53  }
 0x30d   :  { %3641 = vst.msk [vmem:[%s8819_s1 + $0x2f1] sm:$0x80] %vm3_vm0, %v1876_v53  }
 0x30e   :  { %3625 = vst.msk [vmem:[%s8819_s1 + $0x118] sm:$0x1] %vm3_vm0, %v1855_v54  }
 0x30f   :  { %3626 = vst.msk [vmem:[%s8819_s1 + $0x137] sm:$0x2] %vm3_vm0, %v1855_v54  }
 0x310   :  { %3627 = vst.msk [vmem:[%s8819_s1 + $0x156] sm:$0x4] %vm3_vm0, %v1855_v54  }
 0x311   :  { %3628 = vst.msk [vmem:[%s8819_s1 + $0x175] sm:$0x8] %vm3_vm0, %v1855_v54  }
 0x312   :  { %3629 = vst.msk [vmem:[%s8819_s1 + $0x194] sm:$0x10] %vm3_vm0, %v1855_v54  }
 0x313   :  { %3630 = vst.msk [vmem:[%s8819_s1 + $0x1b3] sm:$0x20] %vm3_vm0, %v1855_v54  }
 0x314   :  { %3631 = vst.msk [vmem:[%s8819_s1 + $0x1d2] sm:$0x40] %vm3_vm0, %v1855_v54  }
 0x315   :  { %3632 = vst.msk [vmem:[%s8819_s1 + $0x1f1] sm:$0x80] %vm3_vm0, %v1855_v54  }
 0x316   :  { %3643 = vst.msk [vmem:[%s8819_s1 + $0x318] sm:$0x1] %vm3_vm0, %v1897_v55  }
 0x317   :  { %3644 = vst.msk [vmem:[%s8819_s1 + $0x337] sm:$0x2] %vm3_vm0, %v1897_v55  }
 0x318   :  { %3645 = vst.msk [vmem:[%s8819_s1 + $0x356] sm:$0x4] %vm3_vm0, %v1897_v55  }
 0x319   :  { %3646 = vst.msk [vmem:[%s8819_s1 + $0x375] sm:$0x8] %vm3_vm0, %v1897_v55  }
 0x31a   :  { %3647 = vst.msk [vmem:[%s8819_s1 + $0x394] sm:$0x10] %vm3_vm0, %v1897_v55  }
 0x31b   :  { %3648 = vst.msk [vmem:[%s8819_s1 + $0x3b3] sm:$0x20] %vm3_vm0, %v1897_v55  }
 0x31c   :  { %3649 = vst.msk [vmem:[%s8819_s1 + $0x3d2] sm:$0x40] %vm3_vm0, %v1897_v55  }
 0x31d   :  { %3650 = vst.msk [vmem:[%s8819_s1 + $0x3f1] sm:$0x80] %vm3_vm0, %v1897_v55  }
 0x31e   :  { %3660 = vst.msk [vmem:[%s8819_s1 + $0x10a] sm:$0x1] %vm3_vm0, %v1938_v57  }
 0x31f   :  { %3661 = vst.msk [vmem:[%s8819_s1 + $0x129] sm:$0x2] %vm3_vm0, %v1938_v57  }
 0x320   :  { %3662 = vst.msk [vmem:[%s8819_s1 + $0x148] sm:$0x4] %vm3_vm0, %v1938_v57  }
 0x321   :  { %3663 = vst.msk [vmem:[%s8819_s1 + $0x167] sm:$0x8] %vm3_vm0, %v1938_v57  }
 0x322   :  { %3664 = vst.msk [vmem:[%s8819_s1 + $0x186] sm:$0x10] %vm3_vm0, %v1938_v57  }
 0x323   :  { %3665 = vst.msk [vmem:[%s8819_s1 + $0x1a5] sm:$0x20] %vm3_vm0, %v1938_v57  }
 0x324   :  { %3666 = vst.msk [vmem:[%s8819_s1 + $0x1c4] sm:$0x40] %vm3_vm0, %v1938_v57  }
 0x325   :  { %3667 = vst.msk [vmem:[%s8819_s1 + $0x1e3] sm:$0x80] %vm3_vm0, %v1938_v57  }
 0x326   :  { %3651 = vst.msk [vmem:[%s8819_s1 + $0xa] sm:$0x1] %vm3_vm0, %v1917_v58  }
 0x327   :  { %3652 = vst.msk [vmem:[%s8819_s1 + $0x29] sm:$0x2] %vm3_vm0, %v1917_v58  }
 0x328   :  { %3653 = vst.msk [vmem:[%s8819_s1 + $0x48] sm:$0x4] %vm3_vm0, %v1917_v58  }
 0x329   :  { %3654 = vst.msk [vmem:[%s8819_s1 + $0x67] sm:$0x8] %vm3_vm0, %v1917_v58  }
 0x32a   :  { %3655 = vst.msk [vmem:[%s8819_s1 + $0x86] sm:$0x10] %vm3_vm0, %v1917_v58  }
 0x32b   :  { %3656 = vst.msk [vmem:[%s8819_s1 + $0xa5] sm:$0x20] %vm3_vm0, %v1917_v58  }
 0x32c   :  { %3657 = vst.msk [vmem:[%s8819_s1 + $0xc4] sm:$0x40] %vm3_vm0, %v1917_v58  }
 0x32d   :  { %3658 = vst.msk [vmem:[%s8819_s1 + $0xe3] sm:$0x80] %vm3_vm0, %v1917_v58  }
 0x32e   :  { %3669 = vst.msk [vmem:[%s8819_s1 + $0x20a] sm:$0x1] %vm3_vm0, %v1959_v59  }
 0x32f   :  { %3670 = vst.msk [vmem:[%s8819_s1 + $0x229] sm:$0x2] %vm3_vm0, %v1959_v59  }
 0x330   :  { %3671 = vst.msk [vmem:[%s8819_s1 + $0x248] sm:$0x4] %vm3_vm0, %v1959_v59  }
 0x331   :  { %3672 = vst.msk [vmem:[%s8819_s1 + $0x267] sm:$0x8] %vm3_vm0, %v1959_v59  }
 0x332   :  { %3673 = vst.msk [vmem:[%s8819_s1 + $0x286] sm:$0x10] %vm3_vm0, %v1959_v59  }
 0x333   :  { %3674 = vst.msk [vmem:[%s8819_s1 + $0x2a5] sm:$0x20] %vm3_vm0, %v1959_v59  }
 0x334   :  { %3675 = vst.msk [vmem:[%s8819_s1 + $0x2c4] sm:$0x40] %vm3_vm0, %v1959_v59  }
 0x335   :  { %3676 = vst.msk [vmem:[%s8819_s1 + $0x2e3] sm:$0x80] %vm3_vm0, %v1959_v59  }
 0x336   :  { %3687 = vst.msk [vmem:[%s8819_s1 + $0x19] sm:$0x1] %vm3_vm0, %v2001_v60  }
 0x337   :  { %3688 = vst.msk [vmem:[%s8819_s1 + $0x38] sm:$0x2] %vm3_vm0, %v2001_v60  }
 0x338   :  { %3689 = vst.msk [vmem:[%s8819_s1 + $0x57] sm:$0x4] %vm3_vm0, %v2001_v60  }
 0x339   :  { %3690 = vst.msk [vmem:[%s8819_s1 + $0x76] sm:$0x8] %vm3_vm0, %v2001_v60  }
 0x33a   :  { %3691 = vst.msk [vmem:[%s8819_s1 + $0x95] sm:$0x10] %vm3_vm0, %v2001_v60  }
 0x33b   :  { %3692 = vst.msk [vmem:[%s8819_s1 + $0xb4] sm:$0x20] %vm3_vm0, %v2001_v60  }
 0x33c   :  { %3693 = vst.msk [vmem:[%s8819_s1 + $0xd3] sm:$0x40] %vm3_vm0, %v2001_v60  }
 0x33d   :  { %3694 = vst.msk [vmem:[%s8819_s1 + $0xf2] sm:$0x80] %vm3_vm0, %v2001_v60  }
 0x33e   :  { %3678 = vst.msk [vmem:[%s8819_s1 + $0x30a] sm:$0x1] %vm3_vm0, %v1980_v61  }
 0x33f   :  { %3679 = vst.msk [vmem:[%s8819_s1 + $0x329] sm:$0x2] %vm3_vm0, %v1980_v61  }
 0x340   :  { %3680 = vst.msk [vmem:[%s8819_s1 + $0x348] sm:$0x4] %vm3_vm0, %v1980_v61  }
 0x341   :  { %3681 = vst.msk [vmem:[%s8819_s1 + $0x367] sm:$0x8] %vm3_vm0, %v1980_v61  }
 0x342   :  { %3682 = vst.msk [vmem:[%s8819_s1 + $0x386] sm:$0x10] %vm3_vm0, %v1980_v61  }
 0x343   :  { %3683 = vst.msk [vmem:[%s8819_s1 + $0x3a5] sm:$0x20] %vm3_vm0, %v1980_v61  }
 0x344   :  { %3684 = vst.msk [vmem:[%s8819_s1 + $0x3c4] sm:$0x40] %vm3_vm0, %v1980_v61  }
 0x345   :  { %3685 = vst.msk [vmem:[%s8819_s1 + $0x3e3] sm:$0x80] %vm3_vm0, %v1980_v61  }
 0x346   :  { %3696 = vst.msk [vmem:[%s8819_s1 + $0x119] sm:$0x1] %vm3_vm0, %v2022_v62  }
 0x347   :  { %3697 = vst.msk [vmem:[%s8819_s1 + $0x138] sm:$0x2] %vm3_vm0, %v2022_v62  }
 0x348   :  { %3698 = vst.msk [vmem:[%s8819_s1 + $0x157] sm:$0x4] %vm3_vm0, %v2022_v62  }
 0x349   :  { %3699 = vst.msk [vmem:[%s8819_s1 + $0x176] sm:$0x8] %vm3_vm0, %v2022_v62  }
 0x34a   :  { %3700 = vst.msk [vmem:[%s8819_s1 + $0x195] sm:$0x10] %vm3_vm0, %v2022_v62  }
 0x34b   :  { %3701 = vst.msk [vmem:[%s8819_s1 + $0x1b4] sm:$0x20] %vm3_vm0, %v2022_v62  }
 0x34c   :  { %3702 = vst.msk [vmem:[%s8819_s1 + $0x1d3] sm:$0x40] %vm3_vm0, %v2022_v62  }
 0x34d   :  { %3703 = vst.msk [vmem:[%s8819_s1 + $0x1f2] sm:$0x80] %vm3_vm0, %v2022_v62  }
 0x34e   :  { %3714 = vst.msk [vmem:[%s8819_s1 + $0x319] sm:$0x1] %vm3_vm0, %v2064_v63  }
 0x34f   :  { %3715 = vst.msk [vmem:[%s8819_s1 + $0x338] sm:$0x2] %vm3_vm0, %v2064_v63  }
 0x350   :  { %3716 = vst.msk [vmem:[%s8819_s1 + $0x357] sm:$0x4] %vm3_vm0, %v2064_v63  }
 0x351   :  { %3717 = vst.msk [vmem:[%s8819_s1 + $0x376] sm:$0x8] %vm3_vm0, %v2064_v63  }
 0x352   :  { %3718 = vst.msk [vmem:[%s8819_s1 + $0x395] sm:$0x10] %vm3_vm0, %v2064_v63  }
 0x353   :  { %3719 = vst.msk [vmem:[%s8819_s1 + $0x3b4] sm:$0x20] %vm3_vm0, %v2064_v63  }
 0x354   :  { %3720 = vst.msk [vmem:[%s8819_s1 + $0x3d3] sm:$0x40] %vm3_vm0, %v2064_v63  }
 0x355   :  { %3721 = vst.msk [vmem:[%s8819_s1 + $0x3f2] sm:$0x80] %vm3_vm0, %v2064_v63  }
 0x356   :  { %3705 = vst.msk [vmem:[%s8819_s1 + $0x219] sm:$0x1] %vm3_vm0, %v2043_v0  }
 0x357   :  { %3706 = vst.msk [vmem:[%s8819_s1 + $0x238] sm:$0x2] %vm3_vm0, %v2043_v0  }
 0x358   :  { %3707 = vst.msk [vmem:[%s8819_s1 + $0x257] sm:$0x4] %vm3_vm0, %v2043_v0  }
 0x359   :  { %3708 = vst.msk [vmem:[%s8819_s1 + $0x276] sm:$0x8] %vm3_vm0, %v2043_v0  }
 0x35a   :  { %3709 = vst.msk [vmem:[%s8819_s1 + $0x295] sm:$0x10] %vm3_vm0, %v2043_v0  }
 0x35b   :  { %3710 = vst.msk [vmem:[%s8819_s1 + $0x2b4] sm:$0x20] %vm3_vm0, %v2043_v0  }
 0x35c   :  { %3711 = vst.msk [vmem:[%s8819_s1 + $0x2d3] sm:$0x40] %vm3_vm0, %v2043_v0  }
 0x35d   :  { %3712 = vst.msk [vmem:[%s8819_s1 + $0x2f2] sm:$0x80] %vm3_vm0, %v2043_v0  }
 0x35e   :  { %3722 = vst.msk [vmem:[%s8819_s1 + $0xb] sm:$0x1] %vm3_vm0, %v2084_v1  }
 0x35f   :  { %3723 = vst.msk [vmem:[%s8819_s1 + $0x2a] sm:$0x2] %vm3_vm0, %v2084_v1  }
 0x360   :  { %3724 = vst.msk [vmem:[%s8819_s1 + $0x49] sm:$0x4] %vm3_vm0, %v2084_v1  }
 0x361   :  { %3725 = vst.msk [vmem:[%s8819_s1 + $0x68] sm:$0x8] %vm3_vm0, %v2084_v1  }
 0x362   :  { %3726 = vst.msk [vmem:[%s8819_s1 + $0x87] sm:$0x10] %vm3_vm0, %v2084_v1  }
 0x363   :  { %3727 = vst.msk [vmem:[%s8819_s1 + $0xa6] sm:$0x20] %vm3_vm0, %v2084_v1  }
 0x364   :  { %3728 = vst.msk [vmem:[%s8819_s1 + $0xc5] sm:$0x40] %vm3_vm0, %v2084_v1  }
 0x365   :  { %3729 = vst.msk [vmem:[%s8819_s1 + $0xe4] sm:$0x80] %vm3_vm0, %v2084_v1  }
 0x366   :  { %3740 = vst.msk [vmem:[%s8819_s1 + $0x20b] sm:$0x1] %vm3_vm0, %v2126_v2  }
 0x367   :  { %3741 = vst.msk [vmem:[%s8819_s1 + $0x22a] sm:$0x2] %vm3_vm0, %v2126_v2  }
 0x368   :  { %3742 = vst.msk [vmem:[%s8819_s1 + $0x249] sm:$0x4] %vm3_vm0, %v2126_v2  }
 0x369   :  { %3743 = vst.msk [vmem:[%s8819_s1 + $0x268] sm:$0x8] %vm3_vm0, %v2126_v2  }
 0x36a   :  { %3744 = vst.msk [vmem:[%s8819_s1 + $0x287] sm:$0x10] %vm3_vm0, %v2126_v2  }
 0x36b   :  { %3745 = vst.msk [vmem:[%s8819_s1 + $0x2a6] sm:$0x20] %vm3_vm0, %v2126_v2  }
 0x36c   :  { %3746 = vst.msk [vmem:[%s8819_s1 + $0x2c5] sm:$0x40] %vm3_vm0, %v2126_v2  }
 0x36d   :  { %3747 = vst.msk [vmem:[%s8819_s1 + $0x2e4] sm:$0x80] %vm3_vm0, %v2126_v2  }
 0x36e   :  { %3731 = vst.msk [vmem:[%s8819_s1 + $0x10b] sm:$0x1] %vm3_vm0, %v2105_v3  }
 0x36f   :  { %3732 = vst.msk [vmem:[%s8819_s1 + $0x12a] sm:$0x2] %vm3_vm0, %v2105_v3  }
 0x370   :  { %3733 = vst.msk [vmem:[%s8819_s1 + $0x149] sm:$0x4] %vm3_vm0, %v2105_v3  }
 0x371   :  { %3734 = vst.msk [vmem:[%s8819_s1 + $0x168] sm:$0x8] %vm3_vm0, %v2105_v3  }
 0x372   :  { %3735 = vst.msk [vmem:[%s8819_s1 + $0x187] sm:$0x10] %vm3_vm0, %v2105_v3  }
 0x373   :  { %3736 = vst.msk [vmem:[%s8819_s1 + $0x1a6] sm:$0x20] %vm3_vm0, %v2105_v3  }
 0x374   :  { %3737 = vst.msk [vmem:[%s8819_s1 + $0x1c5] sm:$0x40] %vm3_vm0, %v2105_v3  }
 0x375   :  { %3738 = vst.msk [vmem:[%s8819_s1 + $0x1e4] sm:$0x80] %vm3_vm0, %v2105_v3  }
 0x376   :  { %3749 = vst.msk [vmem:[%s8819_s1 + $0x30b] sm:$0x1] %vm3_vm0, %v2147_v4  }
 0x377   :  { %3750 = vst.msk [vmem:[%s8819_s1 + $0x32a] sm:$0x2] %vm3_vm0, %v2147_v4  }
 0x378   :  { %3751 = vst.msk [vmem:[%s8819_s1 + $0x349] sm:$0x4] %vm3_vm0, %v2147_v4  }
 0x379   :  { %3752 = vst.msk [vmem:[%s8819_s1 + $0x368] sm:$0x8] %vm3_vm0, %v2147_v4  }
 0x37a   :  { %3753 = vst.msk [vmem:[%s8819_s1 + $0x387] sm:$0x10] %vm3_vm0, %v2147_v4  }
 0x37b   :  { %3754 = vst.msk [vmem:[%s8819_s1 + $0x3a6] sm:$0x20] %vm3_vm0, %v2147_v4  }
 0x37c   :  { %3755 = vst.msk [vmem:[%s8819_s1 + $0x3c5] sm:$0x40] %vm3_vm0, %v2147_v4  }
 0x37d   :  { %3756 = vst.msk [vmem:[%s8819_s1 + $0x3e4] sm:$0x80] %vm3_vm0, %v2147_v4  }
 0x37e   :  { %3767 = vst.msk [vmem:[%s8819_s1 + $0x11a] sm:$0x1] %vm3_vm0, %v2189_v5  }
 0x37f   :  { %3768 = vst.msk [vmem:[%s8819_s1 + $0x139] sm:$0x2] %vm3_vm0, %v2189_v5  }
 0x380   :  { %3769 = vst.msk [vmem:[%s8819_s1 + $0x158] sm:$0x4] %vm3_vm0, %v2189_v5  }
 0x381   :  { %3770 = vst.msk [vmem:[%s8819_s1 + $0x177] sm:$0x8] %vm3_vm0, %v2189_v5  }
 0x382   :  { %3771 = vst.msk [vmem:[%s8819_s1 + $0x196] sm:$0x10] %vm3_vm0, %v2189_v5  }
 0x383   :  { %3772 = vst.msk [vmem:[%s8819_s1 + $0x1b5] sm:$0x20] %vm3_vm0, %v2189_v5  }
 0x384   :  { %3773 = vst.msk [vmem:[%s8819_s1 + $0x1d4] sm:$0x40] %vm3_vm0, %v2189_v5  }
 0x385   :  { %3774 = vst.msk [vmem:[%s8819_s1 + $0x1f3] sm:$0x80] %vm3_vm0, %v2189_v5  }
 0x386   :  { %3758 = vst.msk [vmem:[%s8819_s1 + $0x1a] sm:$0x1] %vm3_vm0, %v2168_v6  }
 0x387   :  { %3759 = vst.msk [vmem:[%s8819_s1 + $0x39] sm:$0x2] %vm3_vm0, %v2168_v6  }
 0x388   :  { %3760 = vst.msk [vmem:[%s8819_s1 + $0x58] sm:$0x4] %vm3_vm0, %v2168_v6  }
 0x389   :  { %3761 = vst.msk [vmem:[%s8819_s1 + $0x77] sm:$0x8] %vm3_vm0, %v2168_v6  }
 0x38a   :  { %3762 = vst.msk [vmem:[%s8819_s1 + $0x96] sm:$0x10] %vm3_vm0, %v2168_v6  }
 0x38b   :  { %3763 = vst.msk [vmem:[%s8819_s1 + $0xb5] sm:$0x20] %vm3_vm0, %v2168_v6  }
 0x38c   :  { %3764 = vst.msk [vmem:[%s8819_s1 + $0xd4] sm:$0x40] %vm3_vm0, %v2168_v6  }
 0x38d   :  { %3765 = vst.msk [vmem:[%s8819_s1 + $0xf3] sm:$0x80] %vm3_vm0, %v2168_v6  }
 0x38e   :  { %3776 = vst.msk [vmem:[%s8819_s1 + $0x21a] sm:$0x1] %vm3_vm0, %v2210_v7  }
 0x38f   :  { %3777 = vst.msk [vmem:[%s8819_s1 + $0x239] sm:$0x2] %vm3_vm0, %v2210_v7  }
 0x390   :  { %3778 = vst.msk [vmem:[%s8819_s1 + $0x258] sm:$0x4] %vm3_vm0, %v2210_v7  }
 0x391   :  { %3779 = vst.msk [vmem:[%s8819_s1 + $0x277] sm:$0x8] %vm3_vm0, %v2210_v7  }
 0x392   :  { %3780 = vst.msk [vmem:[%s8819_s1 + $0x296] sm:$0x10] %vm3_vm0, %v2210_v7  }
 0x393   :  { %3781 = vst.msk [vmem:[%s8819_s1 + $0x2b5] sm:$0x20] %vm3_vm0, %v2210_v7  }
 0x394   :  { %3782 = vst.msk [vmem:[%s8819_s1 + $0x2d4] sm:$0x40] %vm3_vm0, %v2210_v7  }
 0x395   :  { %3783 = vst.msk [vmem:[%s8819_s1 + $0x2f3] sm:$0x80] %vm3_vm0, %v2210_v7  }
 0x396   :  { %3793 = vst.msk [vmem:[%s8819_s1 + $0xc] sm:$0x1] %vm3_vm0, %v2251_v8  }
 0x397   :  { %3794 = vst.msk [vmem:[%s8819_s1 + $0x2b] sm:$0x2] %vm3_vm0, %v2251_v8  }
 0x398   :  { %3795 = vst.msk [vmem:[%s8819_s1 + $0x4a] sm:$0x4] %vm3_vm0, %v2251_v8  }
 0x399   :  { %3796 = vst.msk [vmem:[%s8819_s1 + $0x69] sm:$0x8] %vm3_vm0, %v2251_v8  }
 0x39a   :  { %3797 = vst.msk [vmem:[%s8819_s1 + $0x88] sm:$0x10] %vm3_vm0, %v2251_v8  }
 0x39b   :  { %3798 = vst.msk [vmem:[%s8819_s1 + $0xa7] sm:$0x20] %vm3_vm0, %v2251_v8  }
 0x39c   :  { %3799 = vst.msk [vmem:[%s8819_s1 + $0xc6] sm:$0x40] %vm3_vm0, %v2251_v8  }
 0x39d   :  { %3800 = vst.msk [vmem:[%s8819_s1 + $0xe5] sm:$0x80] %vm3_vm0, %v2251_v8  }
 0x39e   :  { %3785 = vst.msk [vmem:[%s8819_s1 + $0x31a] sm:$0x1] %vm3_vm0, %v2231_v9  }
 0x39f   :  { %3786 = vst.msk [vmem:[%s8819_s1 + $0x339] sm:$0x2] %vm3_vm0, %v2231_v9  }
 0x3a0   :  { %3787 = vst.msk [vmem:[%s8819_s1 + $0x358] sm:$0x4] %vm3_vm0, %v2231_v9  }
 0x3a1   :  { %3788 = vst.msk [vmem:[%s8819_s1 + $0x377] sm:$0x8] %vm3_vm0, %v2231_v9  }
 0x3a2   :  { %3789 = vst.msk [vmem:[%s8819_s1 + $0x396] sm:$0x10] %vm3_vm0, %v2231_v9  }
 0x3a3   :  { %3790 = vst.msk [vmem:[%s8819_s1 + $0x3b5] sm:$0x20] %vm3_vm0, %v2231_v9  }
 0x3a4   :  { %3791 = vst.msk [vmem:[%s8819_s1 + $0x3d4] sm:$0x40] %vm3_vm0, %v2231_v9  }
 0x3a5   :  { %3792 = vst.msk [vmem:[%s8819_s1 + $0x3f3] sm:$0x80] %vm3_vm0, %v2231_v9  }
 0x3a6   :  { %3802 = vst.msk [vmem:[%s8819_s1 + $0x10c] sm:$0x1] %vm3_vm0, %v2272_v10  }
 0x3a7   :  { %3803 = vst.msk [vmem:[%s8819_s1 + $0x12b] sm:$0x2] %vm3_vm0, %v2272_v10  }
 0x3a8   :  { %3804 = vst.msk [vmem:[%s8819_s1 + $0x14a] sm:$0x4] %vm3_vm0, %v2272_v10  }
 0x3a9   :  { %3805 = vst.msk [vmem:[%s8819_s1 + $0x169] sm:$0x8] %vm3_vm0, %v2272_v10  }
 0x3aa   :  { %3806 = vst.msk [vmem:[%s8819_s1 + $0x188] sm:$0x10] %vm3_vm0, %v2272_v10  }
 0x3ab   :  { %3807 = vst.msk [vmem:[%s8819_s1 + $0x1a7] sm:$0x20] %vm3_vm0, %v2272_v10  }
 0x3ac   :  { %3808 = vst.msk [vmem:[%s8819_s1 + $0x1c6] sm:$0x40] %vm3_vm0, %v2272_v10  }
 0x3ad   :  { %3809 = vst.msk [vmem:[%s8819_s1 + $0x1e5] sm:$0x80] %vm3_vm0, %v2272_v10  }
 0x3ae   :  { %3820 = vst.msk [vmem:[%s8819_s1 + $0x30c] sm:$0x1] %vm3_vm0, %v2314_v11  }
 0x3af   :  { %3821 = vst.msk [vmem:[%s8819_s1 + $0x32b] sm:$0x2] %vm3_vm0, %v2314_v11  }
 0x3b0   :  { %3822 = vst.msk [vmem:[%s8819_s1 + $0x34a] sm:$0x4] %vm3_vm0, %v2314_v11  }
 0x3b1   :  { %3823 = vst.msk [vmem:[%s8819_s1 + $0x369] sm:$0x8] %vm3_vm0, %v2314_v11  }
 0x3b2   :  { %3824 = vst.msk [vmem:[%s8819_s1 + $0x388] sm:$0x10] %vm3_vm0, %v2314_v11  }
 0x3b3   :  { %3825 = vst.msk [vmem:[%s8819_s1 + $0x3a7] sm:$0x20] %vm3_vm0, %v2314_v11  }
 0x3b4   :  { %3826 = vst.msk [vmem:[%s8819_s1 + $0x3c6] sm:$0x40] %vm3_vm0, %v2314_v11  }
 0x3b5   :  { %3827 = vst.msk [vmem:[%s8819_s1 + $0x3e5] sm:$0x80] %vm3_vm0, %v2314_v11  }
 0x3b6   :  { %3811 = vst.msk [vmem:[%s8819_s1 + $0x20c] sm:$0x1] %vm3_vm0, %v2293_v12  }
 0x3b7   :  { %3812 = vst.msk [vmem:[%s8819_s1 + $0x22b] sm:$0x2] %vm3_vm0, %v2293_v12  }
 0x3b8   :  { %3813 = vst.msk [vmem:[%s8819_s1 + $0x24a] sm:$0x4] %vm3_vm0, %v2293_v12  }
 0x3b9   :  { %3814 = vst.msk [vmem:[%s8819_s1 + $0x269] sm:$0x8] %vm3_vm0, %v2293_v12  }
 0x3ba   :  { %3815 = vst.msk [vmem:[%s8819_s1 + $0x288] sm:$0x10] %vm3_vm0, %v2293_v12  }
 0x3bb   :  { %3816 = vst.msk [vmem:[%s8819_s1 + $0x2a7] sm:$0x20] %vm3_vm0, %v2293_v12  }
 0x3bc   :  { %3817 = vst.msk [vmem:[%s8819_s1 + $0x2c6] sm:$0x40] %vm3_vm0, %v2293_v12  }
 0x3bd   :  { %3818 = vst.msk [vmem:[%s8819_s1 + $0x2e5] sm:$0x80] %vm3_vm0, %v2293_v12  }
 0x3be   :  { %3829 = vst.msk [vmem:[%s8819_s1 + $0x1b] sm:$0x1] %vm3_vm0, %v2335_v13  }
 0x3bf   :  { %3830 = vst.msk [vmem:[%s8819_s1 + $0x3a] sm:$0x2] %vm3_vm0, %v2335_v13  }
 0x3c0   :  { %3831 = vst.msk [vmem:[%s8819_s1 + $0x59] sm:$0x4] %vm3_vm0, %v2335_v13  }
 0x3c1   :  { %3832 = vst.msk [vmem:[%s8819_s1 + $0x78] sm:$0x8] %vm3_vm0, %v2335_v13  }
 0x3c2   :  { %3833 = vst.msk [vmem:[%s8819_s1 + $0x97] sm:$0x10] %vm3_vm0, %v2335_v13  }
 0x3c3   :  { %3834 = vst.msk [vmem:[%s8819_s1 + $0xb6] sm:$0x20] %vm3_vm0, %v2335_v13  }
 0x3c4   :  { %3835 = vst.msk [vmem:[%s8819_s1 + $0xd5] sm:$0x40] %vm3_vm0, %v2335_v13  }
 0x3c5   :  { %3836 = vst.msk [vmem:[%s8819_s1 + $0xf4] sm:$0x80] %vm3_vm0, %v2335_v13  }
 0x3c6   :  { %3847 = vst.msk [vmem:[%s8819_s1 + $0x21b] sm:$0x1] %vm3_vm0, %v2377_v14  }
 0x3c7   :  { %3848 = vst.msk [vmem:[%s8819_s1 + $0x23a] sm:$0x2] %vm3_vm0, %v2377_v14  }
 0x3c8   :  { %3849 = vst.msk [vmem:[%s8819_s1 + $0x259] sm:$0x4] %vm3_vm0, %v2377_v14  }
 0x3c9   :  { %3850 = vst.msk [vmem:[%s8819_s1 + $0x278] sm:$0x8] %vm3_vm0, %v2377_v14  }
 0x3ca   :  { %3851 = vst.msk [vmem:[%s8819_s1 + $0x297] sm:$0x10] %vm3_vm0, %v2377_v14  }
 0x3cb   :  { %3852 = vst.msk [vmem:[%s8819_s1 + $0x2b6] sm:$0x20] %vm3_vm0, %v2377_v14  }
 0x3cc   :  { %3853 = vst.msk [vmem:[%s8819_s1 + $0x2d5] sm:$0x40] %vm3_vm0, %v2377_v14  }
 0x3cd   :  { %3854 = vst.msk [vmem:[%s8819_s1 + $0x2f4] sm:$0x80] %vm3_vm0, %v2377_v14  }
 0x3ce   :  { %3838 = vst.msk [vmem:[%s8819_s1 + $0x11b] sm:$0x1] %vm3_vm0, %v2356_v15  }
 0x3cf   :  { %3839 = vst.msk [vmem:[%s8819_s1 + $0x13a] sm:$0x2] %vm3_vm0, %v2356_v15  }
 0x3d0   :  { %3840 = vst.msk [vmem:[%s8819_s1 + $0x159] sm:$0x4] %vm3_vm0, %v2356_v15  }
 0x3d1   :  { %3841 = vst.msk [vmem:[%s8819_s1 + $0x178] sm:$0x8] %vm3_vm0, %v2356_v15  }
 0x3d2   :  { %3842 = vst.msk [vmem:[%s8819_s1 + $0x197] sm:$0x10] %vm3_vm0, %v2356_v15  }
 0x3d3   :  { %3843 = vst.msk [vmem:[%s8819_s1 + $0x1b6] sm:$0x20] %vm3_vm0, %v2356_v15  }
 0x3d4   :  { %3844 = vst.msk [vmem:[%s8819_s1 + $0x1d5] sm:$0x40] %vm3_vm0, %v2356_v15  }
 0x3d5   :  { %3845 = vst.msk [vmem:[%s8819_s1 + $0x1f4] sm:$0x80] %vm3_vm0, %v2356_v15  }
 0x3d6   :  { %3901 = vst.msk [vmem:[%s8819_s1 + $0x1c] sm:$0x1] %vm2507_vm3, %v2506_v16  }
 0x3d7   :  { %3902 = vst.msk [vmem:[%s8819_s1 + $0x3b] sm:$0x2] %vm2507_vm3, %v2506_v16  }
 0x3d8   :  { %3903 = vst.msk [vmem:[%s8819_s1 + $0x5a] sm:$0x4] %vm2507_vm3, %v2506_v16  }
 0x3d9   :  { %3904 = vst.msk [vmem:[%s8819_s1 + $0x79] sm:$0x8] %vm2507_vm3, %v2506_v16  }
 0x3da   :  { %3905 = vst.msk [vmem:[%s8819_s1 + $0x98] sm:$0x10] %vm2507_vm3, %v2506_v16  }
 0x3db   :  { %3906 = vst.msk [vmem:[%s8819_s1 + $0xb7] sm:$0x20] %vm2507_vm3, %v2506_v16  }
 0x3dc   :  { %3907 = vst.msk [vmem:[%s8819_s1 + $0xd6] sm:$0x40] %vm2507_vm3, %v2506_v16  }
 0x3dd   :  { %3908 = vst.msk [vmem:[%s8819_s1 + $0xf5] sm:$0x80] %vm2507_vm3, %v2506_v16  }
 0x3de   :  { %3909 = vst.msk [vmem:[%s8819_s1 + $0x1c] sm:$0x1] %vm2524_vm4, %v2506_v16  }
 0x3df   :  { %3910 = vst.msk [vmem:[%s8819_s1 + $0x3b] sm:$0x2] %vm2524_vm4, %v2506_v16  }
 0x3e0   :  { %3911 = vst.msk [vmem:[%s8819_s1 + $0x5a] sm:$0x4] %vm2524_vm4, %v2506_v16  }
 0x3e1   :  { %3912 = vst.msk [vmem:[%s8819_s1 + $0x79] sm:$0x8] %vm2524_vm4, %v2506_v16  }
 0x3e2   :  { %3913 = vst.msk [vmem:[%s8819_s1 + $0x98] sm:$0x10] %vm2524_vm4, %v2506_v16  }
 0x3e3   :  { %3914 = vst.msk [vmem:[%s8819_s1 + $0xb7] sm:$0x20] %vm2524_vm4, %v2506_v16  }
 0x3e4   :  { %3915 = vst.msk [vmem:[%s8819_s1 + $0xd6] sm:$0x40] %vm2524_vm4, %v2506_v16  }
 0x3e5   :  { %3916 = vst.msk [vmem:[%s8819_s1 + $0xf5] sm:$0x80] %vm2524_vm4, %v2506_v16  }
 0x3e6   :  { %3937 = vst.msk [vmem:[%s8819_s1 + $0x21c] sm:$0x1] %vm2507_vm3, %v2590_v17  }
 0x3e7   :  { %3938 = vst.msk [vmem:[%s8819_s1 + $0x23b] sm:$0x2] %vm2507_vm3, %v2590_v17  }
 0x3e8   :  { %3939 = vst.msk [vmem:[%s8819_s1 + $0x25a] sm:$0x4] %vm2507_vm3, %v2590_v17  }
 0x3e9   :  { %3940 = vst.msk [vmem:[%s8819_s1 + $0x279] sm:$0x8] %vm2507_vm3, %v2590_v17  }
 0x3ea   :  { %3941 = vst.msk [vmem:[%s8819_s1 + $0x298] sm:$0x10] %vm2507_vm3, %v2590_v17  }
 0x3eb   :  { %3942 = vst.msk [vmem:[%s8819_s1 + $0x2b7] sm:$0x20] %vm2507_vm3, %v2590_v17  }
 0x3ec   :  { %3943 = vst.msk [vmem:[%s8819_s1 + $0x2d6] sm:$0x40] %vm2507_vm3, %v2590_v17  }
 0x3ed   :  { %3944 = vst.msk [vmem:[%s8819_s1 + $0x2f5] sm:$0x80] %vm2507_vm3, %v2590_v17  }
 0x3ee   :  { %3945 = vst.msk [vmem:[%s8819_s1 + $0x21c] sm:$0x1] %vm2524_vm4, %v2590_v17  }
 0x3ef   :  { %3946 = vst.msk [vmem:[%s8819_s1 + $0x23b] sm:$0x2] %vm2524_vm4, %v2590_v17  }
 0x3f0   :  { %3947 = vst.msk [vmem:[%s8819_s1 + $0x25a] sm:$0x4] %vm2524_vm4, %v2590_v17  }
 0x3f1   :  { %3948 = vst.msk [vmem:[%s8819_s1 + $0x279] sm:$0x8] %vm2524_vm4, %v2590_v17  }
 0x3f2   :  { %3949 = vst.msk [vmem:[%s8819_s1 + $0x298] sm:$0x10] %vm2524_vm4, %v2590_v17  }
 0x3f3   :  { %3950 = vst.msk [vmem:[%s8819_s1 + $0x2b7] sm:$0x20] %vm2524_vm4, %v2590_v17  }
 0x3f4   :  { %3951 = vst.msk [vmem:[%s8819_s1 + $0x2d6] sm:$0x40] %vm2524_vm4, %v2590_v17  }
 0x3f5   :  { %3952 = vst.msk [vmem:[%s8819_s1 + $0x2f5] sm:$0x80] %vm2524_vm4, %v2590_v17  }
 0x3f6   :  { %3919 = vst.msk [vmem:[%s8819_s1 + $0x11c] sm:$0x1] %vm2507_vm3, %v2548_v18  }
 0x3f7   :  { %3920 = vst.msk [vmem:[%s8819_s1 + $0x13b] sm:$0x2] %vm2507_vm3, %v2548_v18  }
 0x3f8   :  { %3921 = vst.msk [vmem:[%s8819_s1 + $0x15a] sm:$0x4] %vm2507_vm3, %v2548_v18  }
 0x3f9   :  { %3922 = vst.msk [vmem:[%s8819_s1 + $0x179] sm:$0x8] %vm2507_vm3, %v2548_v18  }
 0x3fa   :  { %3923 = vst.msk [vmem:[%s8819_s1 + $0x198] sm:$0x10] %vm2507_vm3, %v2548_v18  }
 0x3fb   :  { %3924 = vst.msk [vmem:[%s8819_s1 + $0x1b7] sm:$0x20] %vm2507_vm3, %v2548_v18  }
 0x3fc   :  { %3925 = vst.msk [vmem:[%s8819_s1 + $0x1d6] sm:$0x40] %vm2507_vm3, %v2548_v18  }
 0x3fd   :  { %3926 = vst.msk [vmem:[%s8819_s1 + $0x1f5] sm:$0x80] %vm2507_vm3, %v2548_v18  }
 0x3fe   :  { %3927 = vst.msk [vmem:[%s8819_s1 + $0x11c] sm:$0x1] %vm2524_vm4, %v2548_v18  }
 0x3ff   :  { %3928 = vst.msk [vmem:[%s8819_s1 + $0x13b] sm:$0x2] %vm2524_vm4, %v2548_v18  }
 0x400   :  { %3929 = vst.msk [vmem:[%s8819_s1 + $0x15a] sm:$0x4] %vm2524_vm4, %v2548_v18  }
 0x401   :  { %3930 = vst.msk [vmem:[%s8819_s1 + $0x179] sm:$0x8] %vm2524_vm4, %v2548_v18  }
 0x402   :  { %3931 = vst.msk [vmem:[%s8819_s1 + $0x198] sm:$0x10] %vm2524_vm4, %v2548_v18  }
 0x403   :  { %3932 = vst.msk [vmem:[%s8819_s1 + $0x1b7] sm:$0x20] %vm2524_vm4, %v2548_v18  }
 0x404   :  { %3933 = vst.msk [vmem:[%s8819_s1 + $0x1d6] sm:$0x40] %vm2524_vm4, %v2548_v18  }
 0x405   :  { %3934 = vst.msk [vmem:[%s8819_s1 + $0x1f5] sm:$0x80] %vm2524_vm4, %v2548_v18  }
 0x406   :  { %3955 = vst.msk [vmem:[%s8819_s1 + $0x31c] sm:$0x1] %vm2507_vm3, %v2632_v19  }
 0x407   :  { %3956 = vst.msk [vmem:[%s8819_s1 + $0x33b] sm:$0x2] %vm2507_vm3, %v2632_v19  }
 0x408   :  { %3957 = vst.msk [vmem:[%s8819_s1 + $0x35a] sm:$0x4] %vm2507_vm3, %v2632_v19  }
 0x409   :  { %3958 = vst.msk [vmem:[%s8819_s1 + $0x379] sm:$0x8] %vm2507_vm3, %v2632_v19  }
 0x40a   :  { %3959 = vst.msk [vmem:[%s8819_s1 + $0x398] sm:$0x10] %vm2507_vm3, %v2632_v19  }
 0x40b   :  { %3960 = vst.msk [vmem:[%s8819_s1 + $0x3b7] sm:$0x20] %vm2507_vm3, %v2632_v19  }
 0x40c   :  { %3961 = vst.msk [vmem:[%s8819_s1 + $0x3d6] sm:$0x40] %vm2507_vm3, %v2632_v19  }
 0x40d   :  { %3962 = vst.msk [vmem:[%s8819_s1 + $0x3f5] sm:$0x80] %vm2507_vm3, %v2632_v19  }
 0x40e   :  { %3963 = vst.msk [vmem:[%s8819_s1 + $0x31c] sm:$0x1] %vm2524_vm4, %v2632_v19  }
 0x40f   :  { %3964 = vst.msk [vmem:[%s8819_s1 + $0x33b] sm:$0x2] %vm2524_vm4, %v2632_v19  }
 0x410   :  { %3965 = vst.msk [vmem:[%s8819_s1 + $0x35a] sm:$0x4] %vm2524_vm4, %v2632_v19  }
 0x411   :  { %3966 = vst.msk [vmem:[%s8819_s1 + $0x379] sm:$0x8] %vm2524_vm4, %v2632_v19  }
 0x412   :  { %3967 = vst.msk [vmem:[%s8819_s1 + $0x398] sm:$0x10] %vm2524_vm4, %v2632_v19  }
 0x413   :  { %3968 = vst.msk [vmem:[%s8819_s1 + $0x3b7] sm:$0x20] %vm2524_vm4, %v2632_v19  }
 0x414   :  { %3969 = vst.msk [vmem:[%s8819_s1 + $0x3d6] sm:$0x40] %vm2524_vm4, %v2632_v19  }
 0x415   :  { %3970 = vst.msk [vmem:[%s8819_s1 + $0x3f5] sm:$0x80] %vm2524_vm4, %v2632_v19  }
 0x416   :  { %3990 = vst.msk [vmem:[%s8819_s1 + $0x10e] sm:$0x1] %vm2674_vm5, %v2715_v20  }
 0x417   :  { %3991 = vst.msk [vmem:[%s8819_s1 + $0x12d] sm:$0x2] %vm2674_vm5, %v2715_v20  }
 0x418   :  { %3992 = vst.msk [vmem:[%s8819_s1 + $0x14c] sm:$0x4] %vm2674_vm5, %v2715_v20  }
 0x419   :  { %3993 = vst.msk [vmem:[%s8819_s1 + $0x16b] sm:$0x8] %vm2674_vm5, %v2715_v20  }
 0x41a   :  { %3994 = vst.msk [vmem:[%s8819_s1 + $0x18a] sm:$0x10] %vm2674_vm5, %v2715_v20  }
 0x41b   :  { %3995 = vst.msk [vmem:[%s8819_s1 + $0x1a9] sm:$0x20] %vm2674_vm5, %v2715_v20  }
 0x41c   :  { %3996 = vst.msk [vmem:[%s8819_s1 + $0x1c8] sm:$0x40] %vm2674_vm5, %v2715_v20  }
 0x41d   :  { %3997 = vst.msk [vmem:[%s8819_s1 + $0x1e7] sm:$0x80] %vm2674_vm5, %v2715_v20  }
 0x41e   :  { %3998 = vst.msk [vmem:[%s8819_s1 + $0x10e] sm:$0x1] %vm2691_vm6, %v2715_v20  }
 0x41f   :  { %3999 = vst.msk [vmem:[%s8819_s1 + $0x12d] sm:$0x2] %vm2691_vm6, %v2715_v20  }
 0x420   :  { %4000 = vst.msk [vmem:[%s8819_s1 + $0x14c] sm:$0x4] %vm2691_vm6, %v2715_v20  }
 0x421   :  { %4001 = vst.msk [vmem:[%s8819_s1 + $0x16b] sm:$0x8] %vm2691_vm6, %v2715_v20  }
 0x422   :  { %4002 = vst.msk [vmem:[%s8819_s1 + $0x18a] sm:$0x10] %vm2691_vm6, %v2715_v20  }
 0x423   :  { %4003 = vst.msk [vmem:[%s8819_s1 + $0x1a9] sm:$0x20] %vm2691_vm6, %v2715_v20  }
 0x424   :  { %4004 = vst.msk [vmem:[%s8819_s1 + $0x1c8] sm:$0x40] %vm2691_vm6, %v2715_v20  }
 0x425   :  { %4005 = vst.msk [vmem:[%s8819_s1 + $0x1e7] sm:$0x80] %vm2691_vm6, %v2715_v20  }
 0x426   :  { %3972 = vst.msk [vmem:[%s8819_s1 + $0xe] sm:$0x1] %vm2674_vm5, %v2673_v21  }
 0x427   :  { %3973 = vst.msk [vmem:[%s8819_s1 + $0x2d] sm:$0x2] %vm2674_vm5, %v2673_v21  }
 0x428   :  { %3974 = vst.msk [vmem:[%s8819_s1 + $0x4c] sm:$0x4] %vm2674_vm5, %v2673_v21  }
 0x429   :  { %3975 = vst.msk [vmem:[%s8819_s1 + $0x6b] sm:$0x8] %vm2674_vm5, %v2673_v21  }
 0x42a   :  { %3976 = vst.msk [vmem:[%s8819_s1 + $0x8a] sm:$0x10] %vm2674_vm5, %v2673_v21  }
 0x42b   :  { %3977 = vst.msk [vmem:[%s8819_s1 + $0xa9] sm:$0x20] %vm2674_vm5, %v2673_v21  }
 0x42c   :  { %3978 = vst.msk [vmem:[%s8819_s1 + $0xc8] sm:$0x40] %vm2674_vm5, %v2673_v21  }
 0x42d   :  { %3979 = vst.msk [vmem:[%s8819_s1 + $0xe7] sm:$0x80] %vm2674_vm5, %v2673_v21  }
 0x42e   :  { %3980 = vst.msk [vmem:[%s8819_s1 + $0xe] sm:$0x1] %vm2691_vm6, %v2673_v21  }
 0x42f   :  { %3981 = vst.msk [vmem:[%s8819_s1 + $0x2d] sm:$0x2] %vm2691_vm6, %v2673_v21  }
 0x430   :  { %3982 = vst.msk [vmem:[%s8819_s1 + $0x4c] sm:$0x4] %vm2691_vm6, %v2673_v21  }
 0x431   :  { %3983 = vst.msk [vmem:[%s8819_s1 + $0x6b] sm:$0x8] %vm2691_vm6, %v2673_v21  }
 0x432   :  { %3984 = vst.msk [vmem:[%s8819_s1 + $0x8a] sm:$0x10] %vm2691_vm6, %v2673_v21  }
 0x433   :  { %3985 = vst.msk [vmem:[%s8819_s1 + $0xa9] sm:$0x20] %vm2691_vm6, %v2673_v21  }
 0x434   :  { %3986 = vst.msk [vmem:[%s8819_s1 + $0xc8] sm:$0x40] %vm2691_vm6, %v2673_v21  }
 0x435   :  { %3987 = vst.msk [vmem:[%s8819_s1 + $0xe7] sm:$0x80] %vm2691_vm6, %v2673_v21  }
 0x436   :  { %4008 = vst.msk [vmem:[%s8819_s1 + $0x20e] sm:$0x1] %vm2674_vm5, %v2757_v22  }
 0x437   :  { %4009 = vst.msk [vmem:[%s8819_s1 + $0x22d] sm:$0x2] %vm2674_vm5, %v2757_v22  }
 0x438   :  { %4010 = vst.msk [vmem:[%s8819_s1 + $0x24c] sm:$0x4] %vm2674_vm5, %v2757_v22  }
 0x439   :  { %4011 = vst.msk [vmem:[%s8819_s1 + $0x26b] sm:$0x8] %vm2674_vm5, %v2757_v22  }
 0x43a   :  { %4012 = vst.msk [vmem:[%s8819_s1 + $0x28a] sm:$0x10] %vm2674_vm5, %v2757_v22  }
 0x43b   :  { %4013 = vst.msk [vmem:[%s8819_s1 + $0x2a9] sm:$0x20] %vm2674_vm5, %v2757_v22  }
 0x43c   :  { %4014 = vst.msk [vmem:[%s8819_s1 + $0x2c8] sm:$0x40] %vm2674_vm5, %v2757_v22  }
 0x43d   :  { %4015 = vst.msk [vmem:[%s8819_s1 + $0x2e7] sm:$0x80] %vm2674_vm5, %v2757_v22  }
 0x43e   :  { %4016 = vst.msk [vmem:[%s8819_s1 + $0x20e] sm:$0x1] %vm2691_vm6, %v2757_v22  }
 0x43f   :  { %4017 = vst.msk [vmem:[%s8819_s1 + $0x22d] sm:$0x2] %vm2691_vm6, %v2757_v22  }
 0x440   :  { %4018 = vst.msk [vmem:[%s8819_s1 + $0x24c] sm:$0x4] %vm2691_vm6, %v2757_v22  }
 0x441   :  { %4019 = vst.msk [vmem:[%s8819_s1 + $0x26b] sm:$0x8] %vm2691_vm6, %v2757_v22  }
 0x442   :  { %4020 = vst.msk [vmem:[%s8819_s1 + $0x28a] sm:$0x10] %vm2691_vm6, %v2757_v22  }
 0x443   :  { %4021 = vst.msk [vmem:[%s8819_s1 + $0x2a9] sm:$0x20] %vm2691_vm6, %v2757_v22  }
 0x444   :  { %4022 = vst.msk [vmem:[%s8819_s1 + $0x2c8] sm:$0x40] %vm2691_vm6, %v2757_v22  }
 0x445   :  { %4023 = vst.msk [vmem:[%s8819_s1 + $0x2e7] sm:$0x80] %vm2691_vm6, %v2757_v22  }
 0x446   :  { %4026 = vst.msk [vmem:[%s8819_s1 + $0x30e] sm:$0x1] %vm2674_vm5, %v2799_v23  }
 0x447   :  { %4027 = vst.msk [vmem:[%s8819_s1 + $0x32d] sm:$0x2] %vm2674_vm5, %v2799_v23  }
 0x448   :  { %4028 = vst.msk [vmem:[%s8819_s1 + $0x34c] sm:$0x4] %vm2674_vm5, %v2799_v23  }
 0x449   :  { %4029 = vst.msk [vmem:[%s8819_s1 + $0x36b] sm:$0x8] %vm2674_vm5, %v2799_v23  }
 0x44a   :  { %4030 = vst.msk [vmem:[%s8819_s1 + $0x38a] sm:$0x10] %vm2674_vm5, %v2799_v23  }
 0x44b   :  { %4031 = vst.msk [vmem:[%s8819_s1 + $0x3a9] sm:$0x20] %vm2674_vm5, %v2799_v23  }
 0x44c   :  { %4032 = vst.msk [vmem:[%s8819_s1 + $0x3c8] sm:$0x40] %vm2674_vm5, %v2799_v23  }
 0x44d   :  { %4033 = vst.msk [vmem:[%s8819_s1 + $0x3e7] sm:$0x80] %vm2674_vm5, %v2799_v23  }
 0x44e   :  { %4034 = vst.msk [vmem:[%s8819_s1 + $0x30e] sm:$0x1] %vm2691_vm6, %v2799_v23  }
 0x44f   :  { %4035 = vst.msk [vmem:[%s8819_s1 + $0x32d] sm:$0x2] %vm2691_vm6, %v2799_v23  }
 0x450   :  { %4036 = vst.msk [vmem:[%s8819_s1 + $0x34c] sm:$0x4] %vm2691_vm6, %v2799_v23  }
 0x451   :  { %4037 = vst.msk [vmem:[%s8819_s1 + $0x36b] sm:$0x8] %vm2691_vm6, %v2799_v23  }
 0x452   :  { %4038 = vst.msk [vmem:[%s8819_s1 + $0x38a] sm:$0x10] %vm2691_vm6, %v2799_v23  }
 0x453   :  { %4039 = vst.msk [vmem:[%s8819_s1 + $0x3a9] sm:$0x20] %vm2691_vm6, %v2799_v23  }
 0x454   :  { %4040 = vst.msk [vmem:[%s8819_s1 + $0x3c8] sm:$0x40] %vm2691_vm6, %v2799_v23  }
 0x455   :  { %4041 = vst.msk [vmem:[%s8819_s1 + $0x3e7] sm:$0x80] %vm2691_vm6, %v2799_v23  }
 0x456   :  { %3856 = vst.msk [vmem:[%s8819_s1 + $0x31b] sm:$0x1] %vm3_vm0, %v2398_v24  }
 0x457   :  { %3857 = vst.msk [vmem:[%s8819_s1 + $0x33a] sm:$0x2] %vm3_vm0, %v2398_v24  }
 0x458   :  { %3858 = vst.msk [vmem:[%s8819_s1 + $0x359] sm:$0x4] %vm3_vm0, %v2398_v24  }
 0x459   :  { %3859 = vst.msk [vmem:[%s8819_s1 + $0x378] sm:$0x8] %vm3_vm0, %v2398_v24  }
 0x45a   :  { %3860 = vst.msk [vmem:[%s8819_s1 + $0x397] sm:$0x10] %vm3_vm0, %v2398_v24  }
 0x45b   :  { %3861 = vst.msk [vmem:[%s8819_s1 + $0x3b6] sm:$0x20] %vm3_vm0, %v2398_v24  }
 0x45c   :  { %3862 = vst.msk [vmem:[%s8819_s1 + $0x3d5] sm:$0x40] %vm3_vm0, %v2398_v24  }
 0x45d   :  { %3863 = vst.msk [vmem:[%s8819_s1 + $0x3f4] sm:$0x80] %vm3_vm0, %v2398_v24  }
 0x45e   :  { %3864 = vst.msk [vmem:[%s8819_s1 + $0xd] sm:$0x1] %vm3_vm0, %v2418_v25  }
 0x45f   :  { %3865 = vst.msk [vmem:[%s8819_s1 + $0x2c] sm:$0x2] %vm3_vm0, %v2418_v25  }
 0x460   :  { %3866 = vst.msk [vmem:[%s8819_s1 + $0x4b] sm:$0x4] %vm3_vm0, %v2418_v25  }
 0x461   :  { %3867 = vst.msk [vmem:[%s8819_s1 + $0x6a] sm:$0x8] %vm3_vm0, %v2418_v25  }
 0x462   :  { %3868 = vst.msk [vmem:[%s8819_s1 + $0x89] sm:$0x10] %vm3_vm0, %v2418_v25  }
 0x463   :  { %3869 = vst.msk [vmem:[%s8819_s1 + $0xa8] sm:$0x20] %vm3_vm0, %v2418_v25  }
 0x464   :  { %3870 = vst.msk [vmem:[%s8819_s1 + $0xc7] sm:$0x40] %vm3_vm0, %v2418_v25  }
 0x465   :  { %3871 = vst.msk [vmem:[%s8819_s1 + $0xe6] sm:$0x80] %vm3_vm0, %v2418_v25  }
 0x466   :  { %3882 = vst.msk [vmem:[%s8819_s1 + $0x20d] sm:$0x1] %vm3_vm0, %v2460_v26  }
 0x467   :  { %3883 = vst.msk [vmem:[%s8819_s1 + $0x22c] sm:$0x2] %vm3_vm0, %v2460_v26  }
 0x468   :  { %3884 = vst.msk [vmem:[%s8819_s1 + $0x24b] sm:$0x4] %vm3_vm0, %v2460_v26  }
 0x469   :  { %3885 = vst.msk [vmem:[%s8819_s1 + $0x26a] sm:$0x8] %vm3_vm0, %v2460_v26  }
 0x46a   :  { %3886 = vst.msk [vmem:[%s8819_s1 + $0x289] sm:$0x10] %vm3_vm0, %v2460_v26  }
 0x46b   :  { %3887 = vst.msk [vmem:[%s8819_s1 + $0x2a8] sm:$0x20] %vm3_vm0, %v2460_v26  }
 0x46c   :  { %3888 = vst.msk [vmem:[%s8819_s1 + $0x2c7] sm:$0x40] %vm3_vm0, %v2460_v26  }
 0x46d   :  { %3889 = vst.msk [vmem:[%s8819_s1 + $0x2e6] sm:$0x80] %vm3_vm0, %v2460_v26  }
 0x46e   :  { %3873 = vst.msk [vmem:[%s8819_s1 + $0x10d] sm:$0x1] %vm3_vm0, %v2439_v27  }
 0x46f   :  { %3874 = vst.msk [vmem:[%s8819_s1 + $0x12c] sm:$0x2] %vm3_vm0, %v2439_v27  }
 0x470   :  { %3875 = vst.msk [vmem:[%s8819_s1 + $0x14b] sm:$0x4] %vm3_vm0, %v2439_v27  }
 0x471   :  { %3876 = vst.msk [vmem:[%s8819_s1 + $0x16a] sm:$0x8] %vm3_vm0, %v2439_v27  }
 0x472   :  { %3877 = vst.msk [vmem:[%s8819_s1 + $0x189] sm:$0x10] %vm3_vm0, %v2439_v27  }
 0x473   :  { %3878 = vst.msk [vmem:[%s8819_s1 + $0x1a8] sm:$0x20] %vm3_vm0, %v2439_v27  }
 0x474   :  { %3879 = vst.msk [vmem:[%s8819_s1 + $0x1c7] sm:$0x40] %vm3_vm0, %v2439_v27  }
 0x475   :  { %3880 = vst.msk [vmem:[%s8819_s1 + $0x1e6] sm:$0x80] %vm3_vm0, %v2439_v27  }
 0x476   :  { %3891 = vst.msk [vmem:[%s8819_s1 + $0x30d] sm:$0x1] %vm3_vm0, %v2481_v28  }
 0x477   :  { %3892 = vst.msk [vmem:[%s8819_s1 + $0x32c] sm:$0x2] %vm3_vm0, %v2481_v28  }
 0x478   :  { %3893 = vst.msk [vmem:[%s8819_s1 + $0x34b] sm:$0x4] %vm3_vm0, %v2481_v28  }
 0x479   :  { %3894 = vst.msk [vmem:[%s8819_s1 + $0x36a] sm:$0x8] %vm3_vm0, %v2481_v28  }
 0x47a   :  { %3895 = vst.msk [vmem:[%s8819_s1 + $0x389] sm:$0x10] %vm3_vm0, %v2481_v28  }
 0x47b   :  { %3896 = vst.msk [vmem:[%s8819_s1 + $0x3a8] sm:$0x20] %vm3_vm0, %v2481_v28  }
 0x47c   :  { %3897 = vst.msk [vmem:[%s8819_s1 + $0x3c7] sm:$0x40] %vm3_vm0, %v2481_v28  }
 0x47d   :  { %3898 = vst.msk [vmem:[%s8819_s1 + $0x3e6] sm:$0x80] %vm3_vm0, %v2481_v28  }
 0x47e   :  { %4 = vst.msk [vmem:[%s8819_s1] sm:$0x1] %vm3_vm0, %v2_v29  }
 0x47f   :  { %2834 = vst.msk [vmem:[%s8819_s1 + $0x1f] sm:$0x2] %vm3_vm0, %v2_v29  }
 0x480   :  { %2835 = vst.msk [vmem:[%s8819_s1 + $0x3e] sm:$0x4] %vm3_vm0, %v2_v29  }
 0x481   :  { %2836 = vst.msk [vmem:[%s8819_s1 + $0x5d] sm:$0x8] %vm3_vm0, %v2_v29  }
 0x482   :  { %2837 = vst.msk [vmem:[%s8819_s1 + $0x7c] sm:$0x10] %vm3_vm0, %v2_v29  }
 0x483   :  { %2838 = vst.msk [vmem:[%s8819_s1 + $0x9b] sm:$0x20] %vm3_vm0, %v2_v29  }
 0x484   :  { %2839 = vst.msk [vmem:[%s8819_s1 + $0xba] sm:$0x40] %vm3_vm0, %v2_v29  }
 0x485   :  { %2840 = vst.msk [vmem:[%s8819_s1 + $0xd9] sm:$0x80] %vm3_vm0, %v2_v29  }
 0x486   :  { %2842 = vst.msk [vmem:[%s8819_s1 + $0x100] sm:$0x1] %vm3_vm0, %v2841_v30  }
 0x487   :  { %2843 = vst.msk [vmem:[%s8819_s1 + $0x11f] sm:$0x2] %vm3_vm0, %v2841_v30  }
 0x488   :  { %2844 = vst.msk [vmem:[%s8819_s1 + $0x13e] sm:$0x4] %vm3_vm0, %v2841_v30  }
 0x489   :  { %2845 = vst.msk [vmem:[%s8819_s1 + $0x15d] sm:$0x8] %vm3_vm0, %v2841_v30  }
 0x48a   :  { %2846 = vst.msk [vmem:[%s8819_s1 + $0x17c] sm:$0x10] %vm3_vm0, %v2841_v30  }
 0x48b   :  { %2847 = vst.msk [vmem:[%s8819_s1 + $0x19b] sm:$0x20] %vm3_vm0, %v2841_v30  }
 0x48c   :  { %2848 = vst.msk [vmem:[%s8819_s1 + $0x1ba] sm:$0x40] %vm3_vm0, %v2841_v30  }
 0x48d   :  { %2849 = vst.msk [vmem:[%s8819_s1 + $0x1d9] sm:$0x80] %vm3_vm0, %v2841_v30  }
 0x48e   :  { %2851 = vst.msk [vmem:[%s8819_s1 + $0x200] sm:$0x1] %vm3_vm0, %v7133_v56  }
 0x48f   :  { %2852 = vst.msk [vmem:[%s8819_s1 + $0x21f] sm:$0x2] %vm3_vm0, %v7133_v56  }
 0x490   :  { %2853 = vst.msk [vmem:[%s8819_s1 + $0x23e] sm:$0x4] %vm3_vm0, %v7133_v56  }
 0x491   :  { %2854 = vst.msk [vmem:[%s8819_s1 + $0x25d] sm:$0x8] %vm3_vm0, %v7133_v56  }
 0x492   :  { %2855 = vst.msk [vmem:[%s8819_s1 + $0x27c] sm:$0x10] %vm3_vm0, %v7133_v56  }
 0x493   :  { %2856 = vst.msk [vmem:[%s8819_s1 + $0x29b] sm:$0x20] %vm3_vm0, %v7133_v56  }
 0x494   :  { %2857 = vst.msk [vmem:[%s8819_s1 + $0x2ba] sm:$0x40] %vm3_vm0, %v7133_v56  }
 0x495   :  { %2858 = vst.msk [vmem:[%s8819_s1 + $0x2d9] sm:$0x80] %vm3_vm0, %v7133_v56  }
 0x496   :  { %2860 = vst.msk [vmem:[%s8819_s1 + $0x300] sm:$0x1] %vm3_vm0, %v2859_v31  }
 0x497   :  { %2861 = vst.msk [vmem:[%s8819_s1 + $0x31f] sm:$0x2] %vm3_vm0, %v2859_v31  }
 0x498   :  { %2862 = vst.msk [vmem:[%s8819_s1 + $0x33e] sm:$0x4] %vm3_vm0, %v2859_v31  }
 0x499   :  { %2863 = vst.msk [vmem:[%s8819_s1 + $0x35d] sm:$0x8] %vm3_vm0, %v2859_v31  }
 0x49a   :  { %2864 = vst.msk [vmem:[%s8819_s1 + $0x37c] sm:$0x10] %vm3_vm0, %v2859_v31  }
 0x49b   :  { %2865 = vst.msk [vmem:[%s8819_s1 + $0x39b] sm:$0x20] %vm3_vm0, %v2859_v31  }
 0x49c   :  { %2866 = vst.msk [vmem:[%s8819_s1 + $0x3ba] sm:$0x40] %vm3_vm0, %v2859_v31  }
 0x49d   :  { %2867 = vst.msk [vmem:[%s8819_s1 + $0x3d9] sm:$0x80] %vm3_vm0, %v2859_v31  }

// kernel: afno2d_forward.1
= control target key start
LH: loop header
LB: loop body
LE: loop exit
PB: predicated region body
PF: predicated region fallthrough
CT: control target
= control target key end

     0   :  { %v1107_v0 = vmov 0   ;;  %vm40_vm0 = vcmask 130048   ;;  %s1516_s2 = inlined_call_operand.vmem [shape: f32[4,16,1], index: 2, kind: input, shape index: {}]   ;;  %s1517_s0 = inlined_call_operand.vmem [shape: f32[4,16,384], index: 0, kind: input, shape index: {}]   ;;  %s1518_s1 = inlined_call_operand.vmem [shape: f32[4,16,16], index: 1, kind: input, shape index: {}]   ;;  %s1519_s4 = inlined_call_operand.vmem [shape: f32[4,16,1], index: 4, kind: input, shape index: {}]   ;;  %s1520_s3 = inlined_call_operand.vmem [shape: f32[4,16,16], index: 3, kind: input, shape index: {}]   ;;  %s1521_s5 = inlined_call_operand.vmem [shape: f32[4,16,384], index: 5, kind: output, shape index: {}]  }
   0x1   :  { %1104 = vset.pattern.permute.xlu0 %v1107_v0  ;;  %v29_v1 = vld [vmem:[%s1516_s2 + $0x8] sm:$0xff]  ;;  %v23_v2 = vld [vmem:[%s1517_s0 + $0x18] sm:$0xff]  ;;  %v24_v3 = vld [vmem:[%s1517_s0 + $0x20] sm:$0xff]  ;;  %1105 = vset.pattern.permute.xlu1 %v1107_v0 }
   0x2   :  { %37 = vperm.xlu0 %1104, %v29_v1   ;;  %61 = vmatpush.msra.mxu0 %v23_v2  ;;  %v25_v4 = vld [vmem:[%s1517_s0 + $0x28] sm:$0xff]  ;;  %v20_v5 = vld [vmem:[%s1517_s0] sm:$0xff]  ;;  %v22_v7 = vld [vmem:[%s1517_s0 + $0x10] sm:$0xff] }
   0x3   :  { %v21_v6 = vld [vmem:[%s1517_s0 + $0x8] sm:$0xff]  ;;  %84 = vmatpush.msra.mxu1 %v24_v3  ;;  %107 = vmatpush.msra.mxu2 %v25_v4  ;;  %v26_v8 = vld [vmem:[%s1518_s1] sm:$0xff]  ;;  %v998_v9 = vld [vmem:[%s1516_s2 + $0x18] sm:$0xff] }
   0x4   :  { %62 = vmatpush.msra.mxu0 %v20_v5  ;;  %273 = vperm.xlu1 %1105, %v998_v9   ;;  %v992_v10 = vld [vmem:[%s1517_s0 + $0x48] sm:$0xff]  ;;  %v28_v11 = vld [vmem:[%s1516_s2] sm:$0xff]  ;;  %v989_v12 = vld [vmem:[%s1517_s0 + $0x30] sm:$0xff] }
   0x5   :  { %85 = vmatpush.msra.mxu1 %v21_v6  ;;  %108 = vmatpush.msra.mxu2 %v22_v7  ;;  %v997_v13 = vld [vmem:[%s1516_s2 + $0x10] sm:$0xff]  ;;  %v27_v14 = vld [vmem:[%s1518_s1 + $0x8] sm:$0xff]  ;;  %v1074_v15 = vld [vmem:[%s1516_s2 + $0x38] sm:$0xff] }
   0x6   :  { %971 = vmatmul.msk.f32.vlgmr.msra.gmra.mxu0 %vm40_vm0, %v26_v8  ;;  %973 = vmatmul.msk.f32.vlgmr.msra.gmra.mxu1 %vm40_vm0, %v26_v8  ;;  %v1073_v16 = vld [vmem:[%s1516_s2 + $0x30] sm:$0xff]  ;;  %v125_v18 = vld [vmem:[%s1519_s4 + $0x8] sm:$0xff]  ;;  %v1208_v20 = vld [vmem:[%s1518_s1 + $0x18] sm:$0xff] }
   0x7   :  { %975 = vmatmul.msk.f32.vlgmr.msra.gmra.mxu2 %vm40_vm0, %v26_v8  ;;  %1106 = vset.pattern.permute.xlu2 %v1107_v0  ;;  %v1195_v17 = vld [vmem:[%s1518_s1 + $0x10] sm:$0xff]  ;;  %v1045_v21 = vld [vmem:[%s1519_s4 + $0x20] sm:$0xff]  ;;  %v1046_v22 = vld [vmem:[%s1519_s4 + $0x28] sm:$0xff] }
   0x8   :  { %296 = vmatpush.msrb.mxu2 %v992_v10  ;;  %v1007_v19 = vld [vmem:[%s1519_s4 + $0x10] sm:$0xff]  ;;  %v1084_v23 = vld [vmem:[%s1519_s4 + $0x38] sm:$0xff]  ;;  %v1036_v27 = vld [vmem:[%s1516_s2 + $0x28] sm:$0xff] }
   0x9   :  { %511 = vperm.xlu2 %1106, %v1036_v27   ;;  %v1035_v32 = vld [vmem:[%s1516_s2 + $0x20] sm:$0xff]  ;;  %v993_v42 = vld [vmem:[%s1517_s0 + $0x50] sm:$0xff]  ;;  %v994_v43 = vld [vmem:[%s1517_s0 + $0x58] sm:$0xff] }
   0xa   :  { %32 = vperm.xlu0 %1104, %v28_v11   ;;  %297 = vmatpush.msrb.mxu2 %v989_v12  ;;  %v122_v41 = vld [vmem:[%s1520_s3] sm:$0xff]  ;;  %v990_v47 = vld [vmem:[%s1517_s0 + $0x38] sm:$0xff]  ;;  %v123_v55 = vld [vmem:[%s1520_s3 + $0x8] sm:$0xff] }
   0xb   :  { %v991_v48 = vld [vmem:[%s1517_s0 + $0x40] sm:$0xff]  ;;  %v1030_v49 = vld [vmem:[%s1517_s0 + $0x78] sm:$0xff]  ;;  %v1276_v0 = vld [vmem:[%s1520_s3 + $0x10] sm:$0xff] }
   0xc   :  { %268 = vperm.xlu1 %1105, %v997_v13   ;;  %v124_v51 = vld [vmem:[%s1519_s4] sm:$0xff]  ;;  %v1008_v59 = vld [vmem:[%s1519_s4 + $0x18] sm:$0xff]  ;;  %v1083_v2 = vld [vmem:[%s1519_s4 + $0x30] sm:$0xff] }
   0xd   :  { %v1027_v52 = vld [vmem:[%s1517_s0 + $0x60] sm:$0xff]  ;;  %v1028_v3 = vld [vmem:[%s1517_s0 + $0x68] sm:$0xff]  ;;  %v1296_v4 = vld [vmem:[%s1520_s3 + $0x18] sm:$0xff] }
   0xe   :  { %972 = vmatmul.msk.f32.gmra.mxu0 %vm40_vm0, %v27_v14  ;;  %974 = vmatmul.msk.f32.gmra.mxu1 %vm40_vm0, %v27_v14  ;;  %v1031_v1 = vld [vmem:[%s1517_s0 + $0x80] sm:$0xff]  ;;  %v1310_v6 = vld [vmem:[%s1518_s1 + $0x28] sm:$0xff] }
   0xf   :  { %976 = vmatmul.msk.f32.gmra.mxu2 %vm40_vm0, %v27_v14  ;;  %v1301_v5 = vld [vmem:[%s1518_s1 + $0x20] sm:$0xff] }
  0x11   :  { %506 = vperm.xlu2 %1106, %v1035_v32  }
  0x12   :  { %749 = vperm.xlu0 %1104, %v1074_v15  }
  0x14   :  { %744 = vperm.xlu1 %1105, %v1073_v16  }
  0x17   :  { %999 = vmatmul.msk.f32.vlgmr.msrb.gmra.mxu2 %vm40_vm0, %v1195_v17 }
  0x19   :  { %128 = vperm.xlu2 %1106, %v124_v51  }
  0x1a   :  { %133 = vperm.xlu0 %1104, %v125_v18  }
  0x1c   :  { %365 = vperm.xlu1 %1105, %v1007_v19  }
  0x1f   :  { %1000 = vmatmul.msk.f32.gmra.mxu2 %vm40_vm0, %v1208_v20 }
  0x21   :  { %370 = vperm.xlu2 %1106, %v1008_v59  }
  0x22   :  { %603 = vperm.xlu0 %1104, %v1045_v21  }
  0x24   :  { %608 = vperm.xlu1 %1105, %v1046_v22  }
  0x29   :  { %841 = vperm.xlu2 %1106, %v1083_v2  }
  0x2a   :  { %846 = vperm.xlu0 %1104, %v1084_v23  }
  0x63   :  { %v1318_v7 = vpop.permute.xlu2 %511 }
  0x6b   :  { %v1320_v8 = vpop.permute.xlu2 %506 }
  0x73   :  { %v129_v10 = vpop.permute.xlu2 %128 }
  0x74   :  { %v38_v24 = vpop.permute.xlu0 %37 }
  0x76   :  { %v1253_v54 = vpop.permute.xlu1 %273 }
  0x7c   :  { %v33_v28 = vpop.permute.xlu0 %32 }
  0x7e   :  { %v1261_v57 = vpop.permute.xlu1 %268 }
  0x83   :  { %v64_v25 = vpop.f32.mrf.mxu0  ;;  %v87_v26 = vpop.f32.mrf.mxu1 }
  0x84   :  { %v65_v33 = vadd.f32 %v64_v25, %v33_v28  ;;  %v88_v34 = vadd.f32 %v87_v26, %v33_v28  ;;  %v1322_v9 = vpop.permute.xlu0 %749 }
  0x86   :  { %v116_v39 = vmax.f32 %v65_v33, 0.0  ;;  %v117_v40 = vmax.f32 %v88_v34, 0.0 }
  0x8a   :  { %v110_v29 = vpop.f32.mrf.mxu2 }
  0x8b   :  { %v67_v30 = vpop.f32.mrf.mxu0  ;;  %v90_v31 = vpop.f32.mrf.mxu1  ;;  %v111_v45 = vadd.f32 %v110_v29, %v33_v28 }
  0x8c   :  { %v91_v35 = vadd.f32 %v90_v31, %v38_v24  ;;  %v68_v36 = vadd.f32 %v67_v30, %v38_v24  ;;  %v1327_v30 = vpop.permute.xlu1 %744 }
  0x8d   :  { %v118_v53 = vmax.f32 %v111_v45, 0.0 }
  0x8e   :  { %v120_v37 = vmax.f32 %v91_v35, 0.0  ;;  %v119_v38 = vmax.f32 %v68_v36, 0.0 }
  0x90   :  { %156 = vmatpush.msra.mxu3 %v119_v38  ;;  %179 = vmatpush.msrb.mxu0 %v120_v37 }
  0x92   :  { %v113_v44 = vpop.f32.mrf.mxu2  ;;  %157 = vmatpush.msra.mxu3 %v116_v39  ;;  %180 = vmatpush.msrb.mxu0 %v117_v40 }
  0x93   :  { %v114_v46 = vadd.f32 %v113_v44, %v38_v24  ;;  %977 = vmatmul.msk.f32.vlgmr.msra.gmra.mxu3 %vm40_vm0, %v122_v41  ;;  %979 = vmatmul.msk.f32.vlgmr.msrb.gmra.mxu0 %vm40_vm0, %v122_v41 }
  0x94   :  { %319 = vmatpush.msrb.mxu3 %v993_v42  ;;  %342 = vmatpush.msra.mxu0 %v994_v43  ;;  %v1341_v51 = vpop.permute.xlu1 %365 }
  0x95   :  { %v121_v50 = vmax.f32 %v114_v46, 0.0 }
  0x96   :  { %320 = vmatpush.msrb.mxu3 %v990_v47  ;;  %343 = vmatpush.msra.mxu0 %v991_v48 }
  0x97   :  { %202 = vmatpush.msrb.mxu1 %v121_v50 }
  0x98   :  { %534 = vmatpush.msrb.mxu0 %v1030_v49 }
  0x99   :  { %203 = vmatpush.msrb.mxu1 %v118_v53 }
  0x9a   :  { %535 = vmatpush.msrb.mxu0 %v1027_v52  ;;  %981 = vmatmul.msk.f32.vlgmr.msrb.gmra.mxu1 %vm40_vm0, %v122_v41  ;;  %v299_v56 = vpop.f32.mrf.mxu2 }
  0x9b   :  { %978 = vmatmul.msk.f32.gmra.mxu3 %vm40_vm0, %v123_v55  ;;  %980 = vmatmul.msk.f32.gmra.mxu0 %vm40_vm0, %v123_v55  ;;  %v300_v60 = vadd.f32 %v299_v56, %v1261_v57 }
  0x9d   :  { %v351_v63 = vmax.f32 %v300_v60, 0.0 }
  0xa2   :  { %982 = vmatmul.msk.f32.gmra.mxu1 %vm40_vm0, %v123_v55  ;;  %v302_v58 = vpop.f32.mrf.mxu2 }
  0xa3   :  { %v303_v61 = vadd.f32 %v302_v58, %v1253_v54  ;;  %1001 = vmatmul.msk.f32.vlgmr.msrb.gmra.mxu3 %vm40_vm0, %v1195_v17  ;;  %1003 = vmatmul.msk.f32.vlgmr.msra.gmra.mxu0 %vm40_vm0, %v1195_v17 }
  0xa5   :  { %v354_v62 = vmax.f32 %v303_v61, 0.0 }
  0xa7   :  { %393 = vmatpush.msra.mxu1 %v354_v62 }
  0xa9   :  { %394 = vmatpush.msra.mxu1 %v351_v63 }
  0xaa   :  { %1009 = vmatmul.msk.f32.vlgmr.msra.gmra.mxu1 %vm40_vm0, %v1276_v0 }
  0xab   :  { %1002 = vmatmul.msk.f32.gmra.mxu3 %vm40_vm0, %v1208_v20  ;;  %1004 = vmatmul.msk.f32.gmra.mxu0 %vm40_vm0, %v1208_v20  ;;  %v134_v20 = vpop.permute.xlu0 %133 }
  0xac   :  { %557 = vmatpush.msrb.mxu1 %v1031_v1 }
  0xae   :  { %558 = vmatpush.msrb.mxu1 %v1028_v3 }
  0xb2   :  { %1010 = vmatmul.msk.f32.gmra.mxu1 %vm40_vm0, %v1296_v4 }
  0xb3   :  { %1037 = vmatmul.msk.f32.vlgmr.msrb.gmra.mxu0 %vm40_vm0, %v1301_v5 }
  0xba   :  { %1039 = vmatmul.msk.f32.vlgmr.msrb.gmra.mxu1 %vm40_vm0, %v1301_v5 }
  0xbb   :  { %1038 = vmatmul.msk.f32.gmra.mxu0 %vm40_vm0, %v1310_v6 }
  0xc2   :  { %1040 = vmatmul.msk.f32.gmra.mxu1 %vm40_vm0, %v1310_v6 }
 0x110   :  { %v182_v11 = vpop.f32.mrf.mxu0 }
 0x111   :  { %v183_v12 = vadd.f32 %v182_v11, %v129_v10 }
 0x113   :  { %v984_v13 = vadd.f32 -0.01, %v183_v12  ;;  %vm224_vm1 = vcmp.lt.f32.partialorder %v183_v12, -0.01  ;;  %v230_v14 = vadd.f32 0.01, %v183_v12 }
 0x114   :  { %vm212_vm2 = vcmp.gt.f32.partialorder %v183_v12, 0.01 }
 0x115   :  { %v236_v15 = vsel %vm224_vm1, %v230_v14, 0.0 }
 0x116   :  { %v159_v16 = vpop.f32.mrf.mxu3  ;;  %v242_v17 = vsel %vm212_vm2, %v984_v13, %v236_v15 }
 0x117   :  { %v160_v18 = vadd.f32 %v159_v16, %v129_v10  ;;  %v205_v19 = vpop.f32.mrf.mxu1  ;;  %248 = vst [vmem:[%s1521_s5 + $0x8] sm:$0xff] %v242_v17 }
 0x118   :  { %v206_v21 = vadd.f32 %v205_v19, %v129_v10  ;;  %v185_v22 = vpop.f32.mrf.mxu0  ;;  %v1353_v10 = vpop.permute.xlu2 %370 }
 0x119   :  { %v983_v23 = vadd.f32 -0.01, %v160_v18  ;;  %vm223_vm3 = vcmp.lt.f32.partialorder %v160_v18, -0.01  ;;  %v186_v24 = vadd.f32 %v185_v22, %v134_v20  ;;  %v229_v25 = vadd.f32 0.01, %v160_v18 }
 0x11a   :  { %v985_v26 = vadd.f32 -0.01, %v206_v21  ;;  %vm211_vm4 = vcmp.gt.f32.partialorder %v160_v18, 0.01  ;;  %vm225_vm5 = vcmp.lt.f32.partialorder %v206_v21, -0.01 }
 0x11b   :  { %v231_v27 = vadd.f32 0.01, %v206_v21  ;;  %v235_v28 = vsel %vm223_vm3, %v229_v25, 0.0  ;;  %v987_v29 = vadd.f32 -0.01, %v186_v24  ;;  %v1032_v18 = vld [vmem:[%s1517_s0 + $0x88] sm:$0xff] }
 0x11c   :  { %vm227_vm6 = vcmp.lt.f32.partialorder %v186_v24, -0.01  ;;  %v241_v31 = vsel %vm211_vm4, %v983_v23, %v235_v28  ;;  %vm213_vm7 = vcmp.gt.f32.partialorder %v206_v21, 0.01  ;;  %v233_v33 = vadd.f32 0.01, %v186_v24 }
 0x11d   :  { %v237_v32 = vsel %vm225_vm5, %v231_v27, 0.0  ;;  %247 = vst [vmem:[%s1521_s5] sm:$0xff] %v241_v31  ;;  %vm215_vm8 = vcmp.gt.f32.partialorder %v186_v24, 0.01  ;;  %v1068_v22 = vld [vmem:[%s1517_s0 + $0xa8] sm:$0xff]  ;;  %v1065_v25 = vld [vmem:[%s1517_s0 + $0x90] sm:$0xff]  ;;  %v1383_v28 = vld [vmem:[%s1520_s3 + $0x20] sm:$0xff] }
 0x11e   :  { %v243_v34 = vsel %vm213_vm7, %v985_v26, %v237_v32  ;;  %v162_v35 = vpop.f32.mrf.mxu3  ;;  %v239_v36 = vsel %vm227_vm6, %v233_v33, 0.0 }
 0x11f   :  { %249 = vst [vmem:[%s1521_s5 + $0x10] sm:$0xff] %v243_v34  ;;  %v163_v37 = vadd.f32 %v162_v35, %v134_v20  ;;  %v208_v38 = vpop.f32.mrf.mxu1  ;;  %v245_v39 = vsel %vm215_vm8, %v987_v29, %v239_v36  ;;  %v1069_v29 = vld [vmem:[%s1517_s0 + $0xb0] sm:$0xff]  ;;  %v1066_v34 = vld [vmem:[%s1517_s0 + $0x98] sm:$0xff]  ;;  %v1400_v36 = vld [vmem:[%s1520_s3 + $0x28] sm:$0xff] }
 0x120   :  { %v209_v40 = vadd.f32 %v208_v38, %v134_v20  ;;  %v345_v41 = vpop.f32.mrf.mxu0  ;;  %251 = vst [vmem:[%s1521_s5 + $0x20] sm:$0xff] %v245_v39  ;;  %v1029_v20 = vld [vmem:[%s1517_s0 + $0x70] sm:$0xff]  ;;  %v1067_v38 = vld [vmem:[%s1517_s0 + $0xa0] sm:$0xff] }
 0x121   :  { %v986_v42 = vadd.f32 -0.01, %v163_v37  ;;  %vm226_vm9 = vcmp.lt.f32.partialorder %v163_v37, -0.01  ;;  %v232_v43 = vadd.f32 0.01, %v163_v37  ;;  %v346_v56 = vadd.f32 %v345_v41, %v1261_v57 }
 0x122   :  { %v988_v44 = vadd.f32 -0.01, %v209_v40  ;;  %vm228_vm10 = vcmp.lt.f32.partialorder %v209_v40, -0.01  ;;  %v234_v45 = vadd.f32 0.01, %v209_v40 }
 0x123   :  { %vm214_vm11 = vcmp.gt.f32.partialorder %v163_v37, 0.01  ;;  %v238_v46 = vsel %vm226_vm9, %v232_v43, 0.0  ;;  %vm216_vm12 = vcmp.gt.f32.partialorder %v209_v40, 0.01  ;;  %v353_v62 = vmax.f32 %v346_v56, 0.0 }
 0x124   :  { %v244_v47 = vsel %vm214_vm11, %v986_v42, %v238_v46  ;;  %v240_v48 = vsel %vm228_vm10, %v234_v45, 0.0  ;;  %v1070_v37 = vld [vmem:[%s1517_s0 + $0xb8] sm:$0xff]  ;;  %v1071_v39 = vld [vmem:[%s1518_s1 + $0x30] sm:$0xff] }
 0x125   :  { %250 = vst [vmem:[%s1521_s5 + $0x18] sm:$0xff] %v244_v47  ;;  %v246_v49 = vsel %vm216_vm12, %v988_v44, %v240_v48 }
 0x126   :  { %v322_v50 = vpop.f32.mrf.mxu3  ;;  %252 = vst [vmem:[%s1521_s5 + $0x28] sm:$0xff] %v246_v49 }
 0x127   :  { %v396_v52 = vpop.f32.mrf.mxu1  ;;  %v323_v3 = vadd.f32 %v322_v50, %v1261_v57 }
 0x128   :  { %v397_v53 = vadd.f32 %v396_v52, %v1341_v51  ;;  %v348_v55 = vpop.f32.mrf.mxu0 }
 0x129   :  { %v349_v58 = vadd.f32 %v348_v55, %v1253_v54  ;;  %v352_v57 = vmax.f32 %v323_v3, 0.0 }
 0x12a   :  { %v1015_v59 = vadd.f32 -0.01, %v397_v53  ;;  %vm460_vm13 = vcmp.lt.f32.partialorder %v397_v53, -0.01  ;;  %v466_v60 = vadd.f32 0.01, %v397_v53 }
 0x12b   :  { %v356_v61 = vmax.f32 %v349_v58, 0.0  ;;  %vm448_vm14 = vcmp.gt.f32.partialorder %v397_v53, 0.01 }
 0x12c   :  { %v472_v63 = vsel %vm460_vm13, %v466_v60, 0.0 }
 0x12d   :  { %439 = vmatpush.msra.mxu3 %v356_v61  ;;  %v478_v1 = vsel %vm448_vm14, %v1015_v59, %v472_v63  ;;  %v1440_v61 = vpop.permute.xlu0 %603 }
 0x12e   :  { %v325_v2 = vpop.f32.mrf.mxu3  ;;  %1021 = vst [vmem:[%s1521_s5 + $0x30] sm:$0xff] %v478_v1 }
 0x12f   :  { %v326_v11 = vadd.f32 %v325_v2, %v1253_v54  ;;  %v399_v12 = vpop.f32.mrf.mxu1  ;;  %440 = vmatpush.msra.mxu3 %v353_v62 }
 0x130   :  { %v400_v13 = vadd.f32 %v399_v12, %v1353_v10  ;;  %1013 = vmatmul.msk.f32.vlgmr.msra.gmra.mxu3 %vm40_vm0, %v1276_v0  ;;  %v537_v14 = vpop.f32.mrf.mxu0 }
 0x131   :  { %v355_v15 = vmax.f32 %v326_v11, 0.0 }
 0x132   :  { %v1018_v16 = vadd.f32 -0.01, %v400_v13  ;;  %vm463_vm15 = vcmp.lt.f32.partialorder %v400_v13, -0.01  ;;  %v469_v17 = vadd.f32 0.01, %v400_v13 }
 0x133   :  { %416 = vmatpush.msra.mxu2 %v355_v15  ;;  %vm451_vm1 = vcmp.gt.f32.partialorder %v400_v13, 0.01 }
 0x134   :  { %v475_v54 = vsel %vm463_vm15, %v469_v17, 0.0 }
 0x135   :  { %417 = vmatpush.msra.mxu2 %v352_v57  ;;  %v481_v19 = vsel %vm451_vm1, %v1018_v16, %v475_v54 }
 0x136   :  { %1011 = vmatmul.msk.f32.vlgmr.msra.gmra.mxu2 %vm40_vm0, %v1276_v0  ;;  %1024 = vst [vmem:[%s1521_s5 + $0x48] sm:$0xff] %v481_v19  ;;  %v538_v0 = vadd.f32 %v537_v14, %v1320_v8  ;;  %v1450_v19 = vpop.permute.xlu1 %608 }
 0x137   :  { %v560_v21 = vpop.f32.mrf.mxu1  ;;  %580 = vmatpush.msrb.mxu2 %v1032_v18 }
 0x138   :  { %1014 = vmatmul.msk.f32.gmra.mxu3 %vm40_vm0, %v1296_v4  ;;  %v540_v23 = vpop.f32.mrf.mxu0  ;;  %v589_v27 = vmax.f32 %v538_v0, 0.0  ;;  %v561_v32 = vadd.f32 %v560_v21, %v1320_v8 }
 0x139   :  { %v541_v24 = vadd.f32 %v540_v23, %v1318_v7  ;;  %581 = vmatpush.msrb.mxu2 %v1029_v20 }
 0x13b   :  { %772 = vmatpush.msra.mxu2 %v1068_v22  ;;  %v592_v26 = vmax.f32 %v541_v24, 0.0 }
 0x13d   :  { %773 = vmatpush.msra.mxu2 %v1065_v25  ;;  %631 = vmatpush.msrb.mxu3 %v592_v26 }
 0x13e   :  { %1012 = vmatmul.msk.f32.gmra.mxu2 %vm40_vm0, %v1296_v4  ;;  %v590_v4 = vmax.f32 %v561_v32, 0.0 }
 0x13f   :  { %v563_v31 = vpop.f32.mrf.mxu1  ;;  %632 = vmatpush.msrb.mxu3 %v589_v27 }
 0x140   :  { %v564_v33 = vadd.f32 %v563_v31, %v1318_v7  ;;  %1047 = vmatmul.msk.f32.vlgmr.msrb.gmra.mxu3 %vm40_vm0, %v1383_v28 }
 0x141   :  { %795 = vmatpush.msra.mxu3 %v1069_v29 }
 0x142   :  { %v593_v35 = vmax.f32 %v564_v33, 0.0 }
 0x143   :  { %796 = vmatpush.msra.mxu3 %v1066_v34 }
 0x144   :  { %654 = vmatpush.msra.mxu0 %v593_v35 }
 0x146   :  { %655 = vmatpush.msra.mxu0 %v590_v4  ;;  %1041 = vmatmul.msk.f32.vlgmr.msrb.gmra.mxu2 %vm40_vm0, %v1301_v5  ;;  %v1072_v5 = vld [vmem:[%s1518_s1 + $0x38] sm:$0xff] }
 0x147   :  { %1049 = vmatmul.msk.f32.vlgmr.msra.gmra.mxu0 %vm40_vm0, %v1383_v28 }
 0x148   :  { %1048 = vmatmul.msk.f32.gmra.mxu3 %vm40_vm0, %v1400_v36  ;;  %818 = vmatpush.msrb.mxu0 %v1070_v37 }
 0x14a   :  { %819 = vmatpush.msrb.mxu0 %v1067_v38 }
 0x14e   :  { %1042 = vmatmul.msk.f32.gmra.mxu2 %vm40_vm0, %v1310_v6 }
 0x14f   :  { %1050 = vmatmul.msk.f32.gmra.mxu0 %vm40_vm0, %v1400_v36 }
 0x150   :  { %1077 = vmatmul.msk.f32.vlgmr.msra.gmra.mxu3 %vm40_vm0, %v1071_v39 }
 0x156   :  { %1075 = vmatmul.msk.f32.vlgmr.msra.gmra.mxu2 %vm40_vm0, %v1071_v39 }
 0x157   :  { %1079 = vmatmul.msk.f32.vlgmr.msrb.gmra.mxu0 %vm40_vm0, %v1071_v39 }
 0x158   :  { %1078 = vmatmul.msk.f32.gmra.mxu3 %vm40_vm0, %v1072_v5 }
 0x15e   :  { %1076 = vmatmul.msk.f32.gmra.mxu2 %vm40_vm0, %v1072_v5 }
 0x15f   :  { %1080 = vmatmul.msk.f32.gmra.mxu0 %vm40_vm0, %v1072_v5 }
 0x1b3   :  { %v442_v6 = vpop.f32.mrf.mxu3 }
 0x1b4   :  { %v443_v40 = vadd.f32 %v442_v6, %v1341_v51 }
 0x1b6   :  { %v1017_v41 = vadd.f32 -0.01, %v443_v40  ;;  %vm462_vm2 = vcmp.lt.f32.partialorder %v443_v40, -0.01  ;;  %v468_v42 = vadd.f32 0.01, %v443_v40 }
 0x1b7   :  { %vm450_vm3 = vcmp.gt.f32.partialorder %v443_v40, 0.01 }
 0x1b8   :  { %v474_v43 = vsel %vm462_vm2, %v468_v42, 0.0 }
 0x1b9   :  { %v419_v44 = vpop.f32.mrf.mxu2  ;;  %v480_v45 = vsel %vm450_vm3, %v1017_v41, %v474_v43 }
 0x1ba   :  { %v420_v46 = vadd.f32 %v419_v44, %v1341_v51  ;;  %1023 = vst [vmem:[%s1521_s5 + $0x40] sm:$0xff] %v480_v45 }
 0x1bb   :  { %v445_v47 = vpop.f32.mrf.mxu3 }
 0x1bc   :  { %v1016_v48 = vadd.f32 -0.01, %v420_v46  ;;  %vm461_vm4 = vcmp.lt.f32.partialorder %v420_v46, -0.01  ;;  %v446_v49 = vadd.f32 %v445_v47, %v1353_v10  ;;  %v467_v50 = vadd.f32 0.01, %v420_v46 }
 0x1bd   :  { %vm449_vm6 = vcmp.gt.f32.partialorder %v420_v46, 0.01  ;;  %v1081_v47 = vld [vmem:[%s1520_s3 + $0x30] sm:$0xff] }
 0x1be   :  { %v1020_v52 = vadd.f32 -0.01, %v446_v49  ;;  %vm465_vm5 = vcmp.lt.f32.partialorder %v446_v49, -0.01  ;;  %v473_v53 = vsel %vm461_vm4, %v467_v50, 0.0 }
 0x1bf   :  { %v471_v55 = vadd.f32 0.01, %v446_v49  ;;  %v479_v56 = vsel %vm449_vm6, %v1016_v48, %v473_v53  ;;  %vm453_vm7 = vcmp.gt.f32.partialorder %v446_v49, 0.01 }
 0x1c0   :  { %1022 = vst [vmem:[%s1521_s5 + $0x38] sm:$0xff] %v479_v56 }
 0x1c1   :  { %v477_v51 = vsel %vm465_vm5, %v471_v55, 0.0  ;;  %v422_v58 = vpop.f32.mrf.mxu2  ;;  %v1082_v55 = vld [vmem:[%s1520_s3 + $0x38] sm:$0xff] }
 0x1c2   :  { %v483_v59 = vsel %vm453_vm7, %v1020_v52, %v477_v51  ;;  %v423_v60 = vadd.f32 %v422_v58, %v1353_v10 }
 0x1c3   :  { %1026 = vst [vmem:[%s1521_s5 + $0x58] sm:$0xff] %v483_v59  ;;  %v634_v62 = vpop.f32.mrf.mxu3 }
 0x1c4   :  { %v1019_v63 = vadd.f32 -0.01, %v423_v60  ;;  %vm464_vm8 = vcmp.lt.f32.partialorder %v423_v60, -0.01  ;;  %v635_v1 = vadd.f32 %v634_v62, %v1440_v61  ;;  %v657_v2 = vpop.f32.mrf.mxu0  ;;  %v470_v3 = vadd.f32 0.01, %v423_v60 }
 0x1c5   :  { %v658_v11 = vadd.f32 %v657_v2, %v1440_v61  ;;  %vm452_vm10 = vcmp.gt.f32.partialorder %v423_v60, 0.01  ;;  %v842_v2 = vpop.permute.xlu2 %841 }
 0x1c6   :  { %v1053_v12 = vadd.f32 -0.01, %v635_v1  ;;  %vm698_vm9 = vcmp.lt.f32.partialorder %v635_v1, -0.01  ;;  %v476_v13 = vsel %vm464_vm8, %v470_v3, 0.0 }
 0x1c7   :  { %v704_v10 = vadd.f32 0.01, %v635_v1  ;;  %v482_v14 = vsel %vm452_vm10, %v1019_v63, %v476_v13  ;;  %v1054_v15 = vadd.f32 -0.01, %v658_v11  ;;  %vm699_vm11 = vcmp.lt.f32.partialorder %v658_v11, -0.01 }
 0x1c8   :  { %v705_v16 = vadd.f32 0.01, %v658_v11  ;;  %1025 = vst [vmem:[%s1521_s5 + $0x50] sm:$0xff] %v482_v14  ;;  %vm686_vm12 = vcmp.gt.f32.partialorder %v635_v1, 0.01 }
 0x1c9   :  { %v710_v57 = vsel %vm698_vm9, %v704_v10, 0.0  ;;  %v583_v17 = vpop.f32.mrf.mxu2  ;;  %vm687_vm13 = vcmp.gt.f32.partialorder %v658_v11, 0.01 }
 0x1ca   :  { %v716_v18 = vsel %vm686_vm12, %v1053_v12, %v710_v57  ;;  %v711_v54 = vsel %vm699_vm11, %v705_v16, 0.0  ;;  %v584_v29 = vadd.f32 %v583_v17, %v1320_v8 }
 0x1cb   :  { %1059 = vst [vmem:[%s1521_s5 + $0x60] sm:$0xff] %v716_v18  ;;  %v717_v20 = vsel %vm687_vm13, %v1054_v15, %v711_v54  ;;  %v637_v21 = vpop.f32.mrf.mxu3 }
 0x1cc   :  { %1060 = vst [vmem:[%s1521_s5 + $0x68] sm:$0xff] %v717_v20  ;;  %v638_v22 = vadd.f32 %v637_v21, %v1450_v19  ;;  %v660_v23 = vpop.f32.mrf.mxu0  ;;  %v591_v39 = vmax.f32 %v584_v29, 0.0 }
 0x1cd   :  { %v661_v0 = vadd.f32 %v660_v23, %v1450_v19 }
 0x1ce   :  { %v1056_v24 = vadd.f32 -0.01, %v638_v22  ;;  %vm701_vm14 = vcmp.lt.f32.partialorder %v638_v22, -0.01  ;;  %v707_v25 = vadd.f32 0.01, %v638_v22 }
 0x1cf   :  { %v1057_v26 = vadd.f32 -0.01, %v661_v0  ;;  %vm702_vm15 = vcmp.lt.f32.partialorder %v661_v0, -0.01  ;;  %v708_v27 = vadd.f32 0.01, %v661_v0 }
 0x1d0   :  { %vm689_vm1 = vcmp.gt.f32.partialorder %v638_v22, 0.01  ;;  %v713_v31 = vsel %vm701_vm14, %v707_v25, 0.0  ;;  %vm690_vm2 = vcmp.gt.f32.partialorder %v661_v0, 0.01 }
 0x1d1   :  { %v586_v32 = vpop.f32.mrf.mxu2  ;;  %v719_v33 = vsel %vm689_vm1, %v1056_v24, %v713_v31  ;;  %v714_v34 = vsel %vm702_vm15, %v708_v27, 0.0 }
 0x1d2   :  { %v587_v35 = vadd.f32 %v586_v32, %v1318_v7  ;;  %1062 = vst [vmem:[%s1521_s5 + $0x78] sm:$0xff] %v719_v33  ;;  %v720_v4 = vsel %vm690_vm2, %v1057_v26, %v714_v34 }
 0x1d3   :  { %v798_v37 = vpop.f32.mrf.mxu3  ;;  %1063 = vst [vmem:[%s1521_s5 + $0x80] sm:$0xff] %v720_v4 }
 0x1d4   :  { %v594_v38 = vmax.f32 %v587_v35, 0.0  ;;  %v821_v8 = vpop.f32.mrf.mxu0  ;;  %v799_v6 = vadd.f32 %v798_v37, %v1327_v30 }
 0x1d5   :  { %v822_v42 = vadd.f32 %v821_v8, %v1327_v30 }
 0x1d6   :  { %677 = vmatpush.msra.mxu1 %v594_v38  ;;  %v828_v46 = vmax.f32 %v799_v6, 0.0 }
 0x1d8   :  { %678 = vmatpush.msra.mxu1 %v591_v39 }
 0x1d9   :  { %1051 = vmatmul.msk.f32.vlgmr.msra.gmra.mxu1 %vm40_vm0, %v1383_v28  ;;  %v775_v5 = vpop.f32.mrf.mxu2  ;;  %v829_v28 = vmax.f32 %v822_v42, 0.0 }
 0x1da   :  { %v776_v49 = vadd.f32 %v775_v5, %v1327_v30 }
 0x1db   :  { %v801_v7 = vpop.f32.mrf.mxu3 }
 0x1dc   :  { %v802_v40 = vadd.f32 %v801_v7, %v1322_v9  ;;  %v824_v41 = vpop.f32.mrf.mxu0  ;;  %v827_v53 = vmax.f32 %v776_v49, 0.0 }
 0x1dd   :  { %v825_v43 = vadd.f32 %v824_v41, %v1322_v9 }
 0x1de   :  { %v831_v44 = vmax.f32 %v802_v40, 0.0 }
 0x1df   :  { %v832_v45 = vmax.f32 %v825_v43, 0.0 }
 0x1e0   :  { %892 = vmatpush.msrb.mxu2 %v831_v44 }
 0x1e1   :  { %915 = vmatpush.msrb.mxu3 %v832_v45  ;;  %1052 = vmatmul.msk.f32.gmra.mxu1 %vm40_vm0, %v1400_v36  ;;  %v778_v48 = vpop.f32.mrf.mxu2 }
 0x1e2   :  { %v779_v50 = vadd.f32 %v778_v48, %v1322_v9  ;;  %893 = vmatpush.msrb.mxu2 %v828_v46 }
 0x1e3   :  { %916 = vmatpush.msrb.mxu3 %v829_v28  ;;  %1087 = vmatmul.msk.f32.vlgmr.msrb.gmra.mxu2 %vm40_vm0, %v1081_v47 }
 0x1e4   :  { %v830_v52 = vmax.f32 %v779_v50, 0.0  ;;  %1089 = vmatmul.msk.f32.vlgmr.msrb.gmra.mxu3 %vm40_vm0, %v1081_v47 }
 0x1e6   :  { %869 = vmatpush.msrb.mxu1 %v830_v52 }
 0x1e8   :  { %870 = vmatpush.msrb.mxu1 %v827_v53 }
 0x1e9   :  { %1085 = vmatmul.msk.f32.vlgmr.msrb.gmra.mxu1 %vm40_vm0, %v1081_v47 }
 0x1eb   :  { %1088 = vmatmul.msk.f32.gmra.mxu2 %vm40_vm0, %v1082_v55 }
 0x1ec   :  { %1090 = vmatmul.msk.f32.gmra.mxu3 %vm40_vm0, %v1082_v55 }
 0x1f1   :  { %1086 = vmatmul.msk.f32.gmra.mxu1 %vm40_vm0, %v1082_v55 }
 0x256   :  { %v680_v9 = vpop.f32.mrf.mxu1 }
 0x257   :  { %v681_v30 = vadd.f32 %v680_v9, %v1440_v61 }
 0x259   :  { %v1055_v36 = vadd.f32 -0.01, %v681_v30  ;;  %vm700_vm3 = vcmp.lt.f32.partialorder %v681_v30, -0.01  ;;  %v706_v56 = vadd.f32 0.01, %v681_v30 }
 0x25a   :  { %vm688_vm4 = vcmp.gt.f32.partialorder %v681_v30, 0.01 }
 0x25b   :  { %v712_v51 = vsel %vm700_vm3, %v706_v56, 0.0 }
 0x25c   :  { %v718_v58 = vsel %vm688_vm4, %v1055_v36, %v712_v51 }
 0x25d   :  { %1061 = vst [vmem:[%s1521_s5 + $0x70] sm:$0xff] %v718_v58 }
 0x25e   :  { %v683_v59 = vpop.f32.mrf.mxu1 }
 0x25f   :  { %v684_v60 = vadd.f32 %v683_v59, %v1450_v19  ;;  %v847_v19 = vpop.permute.xlu0 %846 }
 0x261   :  { %v1058_v62 = vadd.f32 -0.01, %v684_v60  ;;  %vm703_vm5 = vcmp.lt.f32.partialorder %v684_v60, -0.01  ;;  %v709_v63 = vadd.f32 0.01, %v684_v60 }
 0x262   :  { %vm691_vm0 = vcmp.gt.f32.partialorder %v684_v60, 0.01 }
 0x263   :  { %v715_v1 = vsel %vm703_vm5, %v709_v63, 0.0 }
 0x264   :  { %v721_v61 = vsel %vm691_vm0, %v1058_v62, %v715_v1 }
 0x265   :  { %1064 = vst [vmem:[%s1521_s5 + $0x88] sm:$0xff] %v721_v61 }
 0x266   :  { %v872_v3 = vpop.f32.mrf.mxu1  ;;  %v895_v11 = vpop.f32.mrf.mxu2 }
 0x267   :  { %v873_v12 = vadd.f32 %v872_v3, %v842_v2  ;;  %v896_v13 = vadd.f32 %v895_v11, %v842_v2  ;;  %v918_v10 = vpop.f32.mrf.mxu3 }
 0x268   :  { %v919_v14 = vadd.f32 %v918_v10, %v842_v2 }
 0x269   :  { %v1091_v15 = vadd.f32 -0.01, %v873_v12  ;;  %vm936_vm6 = vcmp.lt.f32.partialorder %v873_v12, -0.01  ;;  %v942_v16 = vadd.f32 0.01, %v873_v12 }
 0x26a   :  { %v1092_v57 = vadd.f32 -0.01, %v896_v13  ;;  %vm924_vm7 = vcmp.gt.f32.partialorder %v873_v12, 0.01  ;;  %vm937_vm8 = vcmp.lt.f32.partialorder %v896_v13, -0.01 }
 0x26b   :  { %v943_v17 = vadd.f32 0.01, %v896_v13  ;;  %v948_v18 = vsel %vm936_vm6, %v942_v16, 0.0  ;;  %v1093_v54 = vadd.f32 -0.01, %v919_v14 }
 0x26c   :  { %vm938_vm9 = vcmp.lt.f32.partialorder %v919_v14, -0.01  ;;  %v954_v20 = vsel %vm924_vm7, %v1091_v15, %v948_v18  ;;  %vm925_vm10 = vcmp.gt.f32.partialorder %v896_v13, 0.01  ;;  %v944_v22 = vadd.f32 0.01, %v919_v14 }
 0x26d   :  { %v949_v21 = vsel %vm937_vm8, %v943_v17, 0.0  ;;  %1097 = vst [vmem:[%s1521_s5 + $0x90] sm:$0xff] %v954_v20  ;;  %vm926_vm11 = vcmp.gt.f32.partialorder %v919_v14, 0.01 }
 0x26e   :  { %v955_v23 = vsel %vm925_vm10, %v1092_v57, %v949_v21  ;;  %v875_v0 = vpop.f32.mrf.mxu1  ;;  %v898_v24 = vpop.f32.mrf.mxu2  ;;  %v950_v25 = vsel %vm938_vm9, %v944_v22, 0.0 }
 0x26f   :  { %1098 = vst [vmem:[%s1521_s5 + $0x98] sm:$0xff] %v955_v23  ;;  %v876_v26 = vadd.f32 %v875_v0, %v847_v19  ;;  %v899_v27 = vadd.f32 %v898_v24, %v847_v19  ;;  %v921_v29 = vpop.f32.mrf.mxu3  ;;  %v956_v31 = vsel %vm926_vm11, %v1093_v54, %v950_v25 }
 0x270   :  { %v922_v32 = vadd.f32 %v921_v29, %v847_v19  ;;  %1099 = vst [vmem:[%s1521_s5 + $0xa0] sm:$0xff] %v956_v31 }
 0x271   :  { %v1094_v33 = vadd.f32 -0.01, %v876_v26  ;;  %vm927_vm12 = vcmp.gt.f32.partialorder %v876_v26, 0.01  ;;  %vm939_vm13 = vcmp.lt.f32.partialorder %v876_v26, -0.01 }
 0x272   :  { %v945_v34 = vadd.f32 0.01, %v876_v26  ;;  %v1095_v35 = vadd.f32 -0.01, %v899_v27  ;;  %vm940_vm14 = vcmp.lt.f32.partialorder %v899_v27, -0.01 }
 0x273   :  { %v946_v4 = vadd.f32 0.01, %v899_v27  ;;  %vm928_vm15 = vcmp.gt.f32.partialorder %v899_v27, 0.01  ;;  %v1096_v38 = vadd.f32 -0.01, %v922_v32 }
 0x274   :  { %v951_v37 = vsel %vm939_vm13, %v945_v34, 0.0  ;;  %vm941_vm1 = vcmp.lt.f32.partialorder %v922_v32, -0.01  ;;  %v947_v5 = vadd.f32 0.01, %v922_v32 }
 0x275   :  { %v957_v8 = vsel %vm927_vm12, %v1094_v33, %v951_v37  ;;  %v952_v39 = vsel %vm940_vm14, %v946_v4, 0.0  ;;  %vm929_vm2 = vcmp.gt.f32.partialorder %v922_v32, 0.01 }
 0x276   :  { %1100 = vst [vmem:[%s1521_s5 + $0xa8] sm:$0xff] %v957_v8  ;;  %v958_v7 = vsel %vm928_vm15, %v1095_v35, %v952_v39  ;;  %v953_v6 = vsel %vm941_vm1, %v947_v5, 0.0 }
 0x277   :  { %1101 = vst [vmem:[%s1521_s5 + $0xb0] sm:$0xff] %v958_v7  ;;  %v959_v40 = vsel %vm929_vm2, %v1096_v38, %v953_v6 }
 0x278   :  { %1102 = vst [vmem:[%s1521_s5 + $0xb8] sm:$0xff] %v959_v40 }

// kernel: reverse.1
= control target key start
LH: loop header
LB: loop body
LE: loop exit
PB: predicated region body
PF: predicated region fallthrough
CT: control target
= control target key end

     0   :  { %s344_s0 = inlined_call_operand.vmem [shape: f32[2,32,16,7], index: 0, kind: input, shape index: {}]   ;;  %s345_s1 = inlined_call_operand.vmem [shape: f32[2,32,16,7], index: 1, kind: output, shape index: {}]  }
   0x1   :  { %v112_v0 = vld [vmem:[%s344_s0 + $0x60] sm:$0xff]  ;;  %v113_v1 = vld [vmem:[%s344_s0 + $0xd0] sm:$0xff]  ;;  %v138_v14 = vld [vmem:[%s344_s0 + $0x68] sm:$0xff] }
   0x2   :  { %v115_v2 = vld [vmem:[%s344_s0 + $0x50] sm:$0xff]  ;;  %4 = vst [vmem:[%s345_s1] sm:$0xff] %v112_v0  ;;  %v117_v3 = vld [vmem:[%s344_s0 + $0xc0] sm:$0xff]  ;;  %v140_v15 = vld [vmem:[%s344_s0 + $0xd8] sm:$0xff] }
   0x3   :  { %114 = vst [vmem:[%s345_s1 + $0x70] sm:$0xff] %v113_v1  ;;  %v119_v4 = vld [vmem:[%s344_s0 + $0x40] sm:$0xff]  ;;  %v121_v5 = vld [vmem:[%s344_s0 + $0xb0] sm:$0xff]  ;;  %v142_v16 = vld [vmem:[%s344_s0 + $0x58] sm:$0xff] }
   0x4   :  { %116 = vst [vmem:[%s345_s1 + $0x10] sm:$0xff] %v115_v2  ;;  %v123_v6 = vld [vmem:[%s344_s0 + $0x30] sm:$0xff]  ;;  %v125_v7 = vld [vmem:[%s344_s0 + $0xa0] sm:$0xff]  ;;  %v144_v17 = vld [vmem:[%s344_s0 + $0xc8] sm:$0xff] }
   0x5   :  { %118 = vst [vmem:[%s345_s1 + $0x80] sm:$0xff] %v117_v3  ;;  %v127_v8 = vld [vmem:[%s344_s0 + $0x20] sm:$0xff]  ;;  %v129_v9 = vld [vmem:[%s344_s0 + $0x90] sm:$0xff]  ;;  %v146_v18 = vld [vmem:[%s344_s0 + $0x48] sm:$0xff] }
   0x6   :  { %120 = vst [vmem:[%s345_s1 + $0x20] sm:$0xff] %v119_v4  ;;  %v131_v10 = vld [vmem:[%s344_s0 + $0x10] sm:$0xff]  ;;  %v133_v11 = vld [vmem:[%s344_s0 + $0x80] sm:$0xff]  ;;  %v148_v19 = vld [vmem:[%s344_s0 + $0xb8] sm:$0xff] }
   0x7   :  { %122 = vst [vmem:[%s345_s1 + $0x90] sm:$0xff] %v121_v5  ;;  %v49_v12 = vld [vmem:[%s344_s0] sm:$0xff]  ;;  %v136_v13 = vld [vmem:[%s344_s0 + $0x70] sm:$0xff]  ;;  %v150_v20 = vld [vmem:[%s344_s0 + $0x38] sm:$0xff] }
   0x8   :  { %124 = vst [vmem:[%s345_s1 + $0x30] sm:$0xff] %v123_v6  ;;  %v152_v21 = vld [vmem:[%s344_s0 + $0xa8] sm:$0xff]  ;;  %v156_v23 = vld [vmem:[%s344_s0 + $0x98] sm:$0xff] }
   0x9   :  { %126 = vst [vmem:[%s345_s1 + $0xa0] sm:$0xff] %v125_v7  ;;  %v154_v22 = vld [vmem:[%s344_s0 + $0x28] sm:$0xff]  ;;  %v158_v24 = vld [vmem:[%s344_s0 + $0x18] sm:$0xff] }
   0xa   :  { %128 = vst [vmem:[%s345_s1 + $0x40] sm:$0xff] %v127_v8  ;;  %v160_v25 = vld [vmem:[%s344_s0 + $0x88] sm:$0xff]  ;;  %v164_v27 = vld [vmem:[%s344_s0 + $0x78] sm:$0xff] }
   0xb   :  { %130 = vst [vmem:[%s345_s1 + $0xb0] sm:$0xff] %v129_v9  ;;  %v162_v26 = vld [vmem:[%s344_s0 + $0x8] sm:$0xff] }
   0xc   :  { %132 = vst [vmem:[%s345_s1 + $0x50] sm:$0xff] %v131_v10 }
   0xd   :  { %134 = vst [vmem:[%s345_s1 + $0xc0] sm:$0xff] %v133_v11 }
   0xe   :  { %135 = vst [vmem:[%s345_s1 + $0x60] sm:$0xff] %v49_v12 }
   0xf   :  { %137 = vst [vmem:[%s345_s1 + $0xd0] sm:$0xff] %v136_v13 }
  0x10   :  { %139 = vst [vmem:[%s345_s1 + $0x8] sm:$0xff] %v138_v14 }
  0x11   :  { %141 = vst [vmem:[%s345_s1 + $0x78] sm:$0xff] %v140_v15 }
  0x12   :  { %143 = vst [vmem:[%s345_s1 + $0x18] sm:$0xff] %v142_v16 }
  0x13   :  { %145 = vst [vmem:[%s345_s1 + $0x88] sm:$0xff] %v144_v17 }
  0x14   :  { %147 = vst [vmem:[%s345_s1 + $0x28] sm:$0xff] %v146_v18 }
  0x15   :  { %149 = vst [vmem:[%s345_s1 + $0x98] sm:$0xff] %v148_v19 }
  0x16   :  { %151 = vst [vmem:[%s345_s1 + $0x38] sm:$0xff] %v150_v20 }
  0x17   :  { %153 = vst [vmem:[%s345_s1 + $0xa8] sm:$0xff] %v152_v21 }
  0x18   :  { %155 = vst [vmem:[%s345_s1 + $0x48] sm:$0xff] %v154_v22 }
  0x19   :  { %157 = vst [vmem:[%s345_s1 + $0xb8] sm:$0xff] %v156_v23 }
  0x1a   :  { %159 = vst [vmem:[%s345_s1 + $0x58] sm:$0xff] %v158_v24 }
  0x1b   :  { %161 = vst [vmem:[%s345_s1 + $0xc8] sm:$0xff] %v160_v25 }
  0x1c   :  { %163 = vst [vmem:[%s345_s1 + $0x68] sm:$0xff] %v162_v26 }
  0x1d   :  { %165 = vst [vmem:[%s345_s1 + $0xd8] sm:$0xff] %v164_v27 }

</bundles_post_ra>
